<compile_context>
chip_gen: v7x
topology: tpu7x:2x2x1
jax: 0.10.0
libtpu: 0.0.40
codegen_flags: <defaults>
</compile_context>

<pallas_src>
import functools

import jax
import jax.numpy as jnp
from jax.experimental import pallas as pl
from jax.experimental.pallas import tpu as pltpu

# Use exact f32 matmuls everywhere (kernel and pure-JAX reference) so the
# numerical comparison below is meaningful.
jax.config.update("jax_default_matmul_precision", "highest")

LN_EPS = 1e-5  # torch.nn.LayerNorm default


def _layernorm(x, gamma, beta):
    mean = jnp.mean(x, axis=-1, keepdims=True)
    var = jnp.mean((x - mean) ** 2, axis=-1, keepdims=True)  # biased, as in torch
    return (x - mean) * jax.lax.rsqrt(var + LN_EPS) * gamma + beta


# ----------------------------------------------------------------------------
# Kernel 1: fused MHA (rank-1 projections + linear_final folded) + LN + FFN + LN
# One grid step = one (branch, batch-tile); all heads processed in-step so the
# stored output block is lane-dense (Bt, D).
# ----------------------------------------------------------------------------
def _branch_kernel(q_ref, kv_ref, gt_ref, mt_ref, rep_ref, rept_ref,
                   lnag_ref, lnab_ref, w1_ref, b1_ref, w2_ref, b2_ref,
                   lnfg_ref, lnfb_ref, o_ref, acc_ref, *, num_heads):
    Bt, D = q_ref.shape
    H = num_heads
    P = D // H

    q = q_ref[...]          # (Bt, D) query rows (also the residual)
    kv = kv_ref[...]        # (Bt, D) key == value rows (as in the PyTorch module)
    gt = gt_ref[...]        # (D, D)  tile(Wq_h @ Wk_h^T) * scale
    mt = mt_ref[...]        # (D, D)  tile(Wf_h @ Wv_h^T)
    rep = rep_ref[...]      # (P, D)  0/1 "repeat each element H times" matrix
    rept = rept_ref[...]    # (D, P)  its transpose (group-sum over H)

    # --- multi-head attention, head by head (static slices, unrolled) ---------
    for h in range(H):
        sl = slice(h * P, (h + 1) * P)
        xq = q[:, sl]                                   # (Bt, P)
        xk = kv[:, sl]
        xv = kv[:, sl]
        # repeat each element H times along the lane axis (matmul, no reshapes)
        xq_rep = jnp.dot(xq, rep, preferred_element_type=jnp.float32)  # (Bt, D)
        xk_rep = jnp.dot(xk, rep, preferred_element_type=jnp.float32)
        xv_rep = jnp.dot(xv, rep, preferred_element_type=jnp.float32)

        # scores (scale already folded into gt): s[b,m,n] = xq_rep*xk_rep*gt
        s = (xq_rep[:, :, None] * xk_rep[:, None, :]) * gt[None, :, :]  # (Bt,D,D)

        # softmax over the *query* axis m  (== torch nn.Softmax(dim=2))
        mx = jnp.max(s, axis=1, keepdims=True)
        e = jnp.exp(s - mx)
        den = jnp.sum(e, axis=1, keepdims=True)
        p = e * pl.reciprocal(den, approx=True)
        # TODO(synk): attention dropout / attn_mask omitted (eval mode, mask=None)

        # (p @ v) followed by linear_final, folded via M: contribution of head h
        # to output columns [hP, (h+1)P).
        u = jnp.sum(p * xv_rep[:, None, :] * mt[None, :, :], axis=2)    # (Bt, D)
        acc_ref[:, sl] = jnp.dot(u, rept, preferred_element_type=jnp.float32)

    # --- MHA epilogue: dropout(id) + residual + LayerNorm ---------------------
    z = q + acc_ref[...]
    z = _layernorm(z, lnag_ref[...], lnab_ref[...])

    # --- position-wise FFN + residual + LayerNorm -----------------------------
    hmid = jnp.dot(z, w1_ref[...], preferred_element_type=jnp.float32) + b1_ref[...]
    hmid = jnp.maximum(hmid, 0.0)
    y = jnp.dot(hmid, w2_ref[...], preferred_element_type=jnp.float32) + b2_ref[...]
    o_ref[...] = _layernorm(y + z, lnfg_ref[...], lnfb_ref[...])


# ----------------------------------------------------------------------------
# Kernel 2: fusion linear  out = out1 @ Wa + out2 @ Wb + b   (no (B,2D) concat)
# ----------------------------------------------------------------------------
def _fusion_kernel(x_ref, w_ref, b_ref, o_ref):
    o_ref[...] = (
        jnp.dot(x_ref[0], w_ref[0], preferred_element_type=jnp.float32)
        + jnp.dot(x_ref[1], w_ref[1], preferred_element_type=jnp.float32)
        + b_ref[...]
    )


# ----------------------------------------------------------------------------
# Parameter preprocessing: fold the rank-1 projections / linear_final into two
# (H, H) matrices per branch, pre-transpose all Linear weights to (in, out),
# stack everything along a leading branch axis of size 2.  Done once.
# ----------------------------------------------------------------------------
def prepare_params(params, model_dim, num_heads):
    D, H = model_dim, num_heads
    P = D // H
    # mirrors torch:  scale = (key.size(-1) // num_heads) ** (-0.5)
    scale = float(P // H) ** (-0.5)

    def attn_mats(a):
        wq, wk, wv = a["wq"][:, 0], a["wk"][:, 0], a["wv"][:, 0]
        wf = a["w_final"][0]
        g = wq.reshape(H, P) @ wk.reshape(H, P).T     # (H, H)
        m = wf.reshape(H, P) @ wv.reshape(H, P).T     # (H, H)
        gt = jnp.tile(g, (P, P)) * scale              # (D, D): gt[m,n]=scale*G[m%H,n%H]
        mt = jnp.tile(m, (P, P))                      # (D, D)
        return gt, mt

    gt1, mt1 = attn_mats(params["attn1"])
    gt2, mt2 = attn_mats(params["attn2"])
    # rep[r, m] = 1  iff  m // H == r   (so  x @ rep repeats each element H times)
    rep = jnp.repeat(jnp.eye(P, dtype=jnp.float32), H, axis=1)   # (P, D)

    st = lambda x1, x2: jnp.stack([x1, x2], axis=0)
    a1, a2 = params["attn1"], params["attn2"]
    f1, f2 = params["ffn1"], params["ffn2"]
    fw = params["fusion_w"]

    return {
        "gt": st(gt1, gt2), "mt": st(mt1, mt2),
        "rep": rep, "rept": rep.T,
        "lnag": st(a1["ln_gamma"], a2["ln_gamma"])[:, None, :],
        "lnab": st(a1["ln_beta"], a2["ln_beta"])[:, None, :],
        "w1t": st(f1["w1"].T, f2["w1"].T),            # (2, D, F)
        "b1": st(f1["b1"], f2["b1"])[:, None, :],     # (2, 1, F)
        "w2t": st(f1["w2"].T, f2["w2"].T),            # (2, F, D)
        "b2": st(f1["b2"], f2["b2"])[:, None, :],     # (2, 1, D)
        "lnfg": st(f1["ln_gamma"], f2["ln_gamma"])[:, None, :],
        "lnfb": st(f1["ln_beta"], f2["ln_beta"])[:, None, :],
        "fwT": st(fw[:, :D].T, fw[:, D:].T),          # (2, D, D)
        "fb": params["fusion_b"][None, :],            # (1, D)
    }


# ----------------------------------------------------------------------------
# Wrapper: whole multimodal_fusion_layer forward = 2 pallas_calls
# ----------------------------------------------------------------------------
def multimodal_fusion_layer_pallas(image_output, text_output, fused, num_heads):
    B, D = image_output.shape
    P = fused["rep"].shape[0]
    F = fused["w1t"].shape[-1]
    Bt = 8 if B % 8 == 0 else B        # (8,128) rule: Bt % 8 == 0 or Bt == B
    nbt = B // Bt

    # branch 0: query=image, kv=text   |   branch 1: query=text, kv=image
    q_s = jnp.stack([image_output, text_output], axis=0)    # (2, B, D)
    kv_s = jnp.stack([text_output, image_output], axis=0)   # (2, B, D)

    row_spec = pl.BlockSpec((None, Bt, D), lambda br, i: (br, i, 0))

    def bspec(*dims):      # branch-stacked weight, resident within a branch sweep
        return pl.BlockSpec((None,) + dims, lambda br, i: (br,) + (0,) * len(dims))

    def shared(*dims):     # branch-independent constant
        return pl.BlockSpec(dims, lambda br, i: (0,) * len(dims))

    branch_out = pl.pallas_call(
        functools.partial(_branch_kernel, num_heads=num_heads),
        out_shape=jax.ShapeDtypeStruct((2, B, D), jnp.float32),
        grid=(2, nbt),
        in_specs=[
            row_spec, row_spec,                       # q, kv
            bspec(D, D), bspec(D, D),                 # gt, mt
            shared(P, D), shared(D, P),               # rep, rep^T
            bspec(1, D), bspec(1, D),                 # MHA LayerNorm gamma, beta
            bspec(D, F), bspec(1, F),                 # FFN w1^T, b1
            bspec(F, D), bspec(1, D),                 # FFN w2^T, b2
            bspec(1, D), bspec(1, D),                 # FFN LayerNorm gamma, beta
        ],
        out_specs=row_spec,
        scratch_shapes=[pltpu.VMEM((Bt, D), jnp.float32)],
        compiler_params=pltpu.CompilerParams(
            dimension_semantics=("parallel", "parallel")),
    )(q_s, kv_s, fused["gt"], fused["mt"], fused["rep"], fused["rept"],
      fused["lnag"], fused["lnab"], fused["w1t"], fused["b1"],
      fused["w2t"], fused["b2"], fused["lnfg"], fused["lnfb"])

    out = pl.pallas_call(
        _fusion_kernel,
        out_shape=jax.ShapeDtypeStruct((B, D), jnp.float32),
        grid=(nbt,),
        in_specs=[
            pl.BlockSpec((2, Bt, D), lambda i: (0, i, 0)),
            pl.BlockSpec((2, D, D), lambda i: (0, 0, 0)),
            pl.BlockSpec((1, D), lambda i: (0, 0)),
        ],
        out_specs=pl.BlockSpec((Bt, D), lambda i: (i, 0)),
        compiler_params=pltpu.CompilerParams(dimension_semantics=("parallel",)),
    )(branch_out, fused["fwT"], fused["fb"])
    return out


# ----------------------------------------------------------------------------
# Pure-JAX reference (faithful transcription of the PyTorch module, eval mode)
# ----------------------------------------------------------------------------
def _ref_mha(query, key, value, a, num_heads):
    B, D = query.shape
    H = num_heads
    P = D // H
    residual = query
    q = (query[:, :, None] * a["wq"][:, 0][None, None, :]).reshape(B, H, D, P)
    k = (key[:, :, None] * a["wk"][:, 0][None, None, :]).reshape(B, H, D, P)
    v = (value[:, :, None] * a["wv"][:, 0][None, None, :]).reshape(B, H, D, P)
    scale = float(P // H) ** (-0.5)
    s = jnp.einsum("bhmp,bhnp->bhmn", q, k) * scale
    p = jax.nn.softmax(s, axis=2)                      # torch nn.Softmax(dim=2)
    attn = jnp.einsum("bhmn,bhnp->bhmp", p, v).reshape(B, D, D)
    out = attn @ a["w_final"][0]                       # (B, D)
    return _layernorm(residual + out, a["ln_gamma"][None, :], a["ln_beta"][None, :])


def _ref_ffn(x, f):
    h = jnp.maximum(x @ f["w1"].T + f["b1"], 0.0)
    y = h @ f["w2"].T + f["b2"]
    return _layernorm(y + x, f["ln_gamma"][None, :], f["ln_beta"][None, :])


def _ref_layer(image_output, text_output, params, num_heads):
    o1 = _ref_mha(image_output, text_output, text_output, params["attn1"], num_heads)
    o2 = _ref_mha(text_output, image_output, image_output, params["attn2"], num_heads)
    o1 = _ref_ffn(o1, params["ffn1"])
    o2 = _ref_ffn(o2, params["ffn2"])
    cat = jnp.concatenate([o1, o2], axis=1)
    return cat @ params["fusion_w"].T + params["fusion_b"]


# ----------------------------------------------------------------------------
# Deterministic parameters (PyTorch layouts) + smoke test
# ----------------------------------------------------------------------------
def make_params(key, D, H, F):
    ks = iter(jax.random.split(key, 32))

    def mha_params():
        return {
            "wq": jax.random.normal(next(ks), (D, 1), jnp.float32) * 0.05,
            "wk": jax.random.normal(next(ks), (D, 1), jnp.float32) * 0.05,
            "wv": jax.random.normal(next(ks), (D, 1), jnp.float32) * 0.05,
            "w_final": jax.random.normal(next(ks), (1, D), jnp.float32) * 0.05,
            "ln_gamma": jnp.ones((D,), jnp.float32),
            "ln_beta": jnp.zeros((D,), jnp.float32),
        }

    def ffn_params():
        return {
            "w1": jax.random.normal(next(ks), (F, D), jnp.float32) * 0.05,
            "b1": jax.random.normal(next(ks), (F,), jnp.float32) * 0.01,
            "w2": jax.random.normal(next(ks), (D, F), jnp.float32) * 0.05,
            "b2": jax.random.normal(next(ks), (D,), jnp.float32) * 0.01,
            "ln_gamma": jnp.ones((D,), jnp.float32),
            "ln_beta": jnp.zeros((D,), jnp.float32),
        }

    return {
        "attn1": mha_params(),
        "attn2": mha_params(),
        "ffn1": ffn_params(),
        "ffn2": ffn_params(),
        "fusion_w": jax.random.normal(next(ks), (D, 2 * D), jnp.float32) * 0.05,
        "fusion_b": jax.random.normal(next(ks), (D,), jnp.float32) * 0.01,
    }


if __name__ == "__main__":
    B, D, H, F = 2, 32, 4, 64   # batch, model_dim, num_heads, ffn_dim (small)
    root = jax.random.PRNGKey(0)
    k_img, k_txt, k_par = jax.random.split(root, 3)

    image_output = jax.random.normal(k_img, (B, D), jnp.float32)
    text_output = jax.random.normal(k_txt, (B, D), jnp.float32)
    params = make_params(k_par, D, H, F)
    fused = prepare_params(params, D, H)

    out = multimodal_fusion_layer_pallas(image_output, text_output, fused, H)
    out = jax.block_until_ready(out)

    assert out.shape == (B, D)
    assert bool(jnp.all(jnp.isfinite(out)))

    ref = jax.block_until_ready(_ref_layer(image_output, text_output, params, H))
    max_err = float(jnp.max(jnp.abs(out - ref)))
    assert max_err < 1e-2, f"mismatch vs pure-JAX reference: {max_err}"

    print("KERNEL_OK")
</pallas_src>

<mosaic_0001>
module attributes {stable_mosaic.version = 11 : i64} {
  func.func @_branch_kernel(%arg0: i32, %arg1: i32, %arg2: memref<1x2x32xf32, #tpu.memory_space<vmem>>, %arg3: memref<1x2x32xf32, #tpu.memory_space<vmem>>, %arg4: memref<1x32x32xf32, #tpu.memory_space<vmem>>, %arg5: memref<1x32x32xf32, #tpu.memory_space<vmem>>, %arg6: memref<8x32xf32, #tpu.memory_space<vmem>>, %arg7: memref<32x8xf32, #tpu.memory_space<vmem>>, %arg8: memref<1x1x32xf32, #tpu.memory_space<vmem>>, %arg9: memref<1x1x32xf32, #tpu.memory_space<vmem>>, %arg10: memref<1x32x64xf32, #tpu.memory_space<vmem>>, %arg11: memref<1x1x64xf32, #tpu.memory_space<vmem>>, %arg12: memref<1x64x32xf32, #tpu.memory_space<vmem>>, %arg13: memref<1x1x32xf32, #tpu.memory_space<vmem>>, %arg14: memref<1x1x32xf32, #tpu.memory_space<vmem>>, %arg15: memref<1x1x32xf32, #tpu.memory_space<vmem>>, %arg16: memref<1x2x32xf32, #tpu.memory_space<vmem>>, %arg17: memref<2x32xf32, #tpu.memory_space<vmem>>) attributes {dimension_semantics = [#tpu.dimension_semantics<parallel>, #tpu.dimension_semantics<parallel>], iteration_bounds = array<i64: 2, 1>, scalar_prefetch = 0 : i64, scratch_operands = 1 : i64, tpu.core_type = #tpu.core_type<tc>, window_params = [{transform_indices = @transform_0, window_bounds = array<i64: 1, 2, 32>}, {transform_indices = @transform_1, window_bounds = array<i64: 1, 2, 32>}, {transform_indices = @transform_2, window_bounds = array<i64: 1, 32, 32>}, {transform_indices = @transform_3, window_bounds = array<i64: 1, 32, 32>}, {pipeline_mode = #tpu.pipeline_mode<synchronous>, transform_indices = @transform_4, window_bounds = array<i64: 8, 32>}, {pipeline_mode = #tpu.pipeline_mode<synchronous>, transform_indices = @transform_5, window_bounds = array<i64: 32, 8>}, {transform_indices = @transform_6, window_bounds = array<i64: 1, 1, 32>}, {transform_indices = @transform_7, window_bounds = array<i64: 1, 1, 32>}, {transform_indices = @transform_8, window_bounds = array<i64: 1, 32, 64>}, {transform_indices = @transform_9, window_bounds = array<i64: 1, 1, 64>}, {transform_indices = @transform_10, window_bounds = array<i64: 1, 64, 32>}, {transform_indices = @transform_11, window_bounds = array<i64: 1, 1, 32>}, {transform_indices = @transform_12, window_bounds = array<i64: 1, 1, 32>}, {transform_indices = @transform_13, window_bounds = array<i64: 1, 1, 32>}, {transform_indices = @transform_14, window_bounds = array<i64: 1, 2, 32>}]} {
    %c0 = arith.constant 0 : index
    %c0_0 = arith.constant 0 : index
    %c0_1 = arith.constant 0 : index
    %0 = vector.load %arg2[%c0, %c0_0, %c0_1] : memref<1x2x32xf32, #tpu.memory_space<vmem>>, vector<1x2x32xf32>
    %1 = vector.shape_cast %0 : vector<1x2x32xf32> to vector<2x32xf32>
    %c0_2 = arith.constant 0 : index
    %c0_3 = arith.constant 0 : index
    %c0_4 = arith.constant 0 : index
    %2 = vector.load %arg3[%c0_2, %c0_3, %c0_4] : memref<1x2x32xf32, #tpu.memory_space<vmem>>, vector<1x2x32xf32>
    %3 = vector.shape_cast %2 : vector<1x2x32xf32> to vector<2x32xf32>
    %c0_5 = arith.constant 0 : index
    %c0_6 = arith.constant 0 : index
    %c0_7 = arith.constant 0 : index
    %4 = vector.load %arg4[%c0_5, %c0_6, %c0_7] : memref<1x32x32xf32, #tpu.memory_space<vmem>>, vector<1x32x32xf32>
    %5 = vector.shape_cast %4 : vector<1x32x32xf32> to vector<32x32xf32>
    %c0_8 = arith.constant 0 : index
    %c0_9 = arith.constant 0 : index
    %c0_10 = arith.constant 0 : index
    %6 = vector.load %arg5[%c0_8, %c0_9, %c0_10] : memref<1x32x32xf32, #tpu.memory_space<vmem>>, vector<1x32x32xf32>
    %7 = vector.shape_cast %6 : vector<1x32x32xf32> to vector<32x32xf32>
    %c0_11 = arith.constant 0 : index
    %c0_12 = arith.constant 0 : index
    %8 = vector.load %arg6[%c0_11, %c0_12] : memref<8x32xf32, #tpu.memory_space<vmem>>, vector<8x32xf32>
    %c0_13 = arith.constant 0 : index
    %c0_14 = arith.constant 0 : index
    %9 = vector.load %arg7[%c0_13, %c0_14] : memref<32x8xf32, #tpu.memory_space<vmem>>, vector<32x8xf32>
    %10 = vector.extract_strided_slice %1 {offsets = [0, 0], sizes = [2, 8], strides = [1, 1]} : vector<2x32xf32> to vector<2x8xf32>
    %11 = vector.extract_strided_slice %3 {offsets = [0, 0], sizes = [2, 8], strides = [1, 1]} : vector<2x32xf32> to vector<2x8xf32>
    %12 = vector.extract_strided_slice %3 {offsets = [0, 0], sizes = [2, 8], strides = [1, 1]} : vector<2x32xf32> to vector<2x8xf32>
    %cst = arith.constant dense<0.000000e+00> : vector<2x32xf32>
    %13 = tpu.matmul %10, %8, %cst {dimension_numbers = #tpu.dot_dimension_numbers<[1], [0], [0], [1], [0, 0, 1, 1], [], []>, precision = #tpu.contract_precision<fp32>} : vector<2x8xf32>, vector<8x32xf32>, vector<2x32xf32> -> vector<2x32xf32>
    %cst_15 = arith.constant dense<0.000000e+00> : vector<2x32xf32>
    %14 = tpu.matmul %11, %8, %cst_15 {dimension_numbers = #tpu.dot_dimension_numbers<[1], [0], [0], [1], [0, 0, 1, 1], [], []>, precision = #tpu.contract_precision<fp32>} : vector<2x8xf32>, vector<8x32xf32>, vector<2x32xf32> -> vector<2x32xf32>
    %cst_16 = arith.constant dense<0.000000e+00> : vector<2x32xf32>
    %15 = tpu.matmul %12, %8, %cst_16 {dimension_numbers = #tpu.dot_dimension_numbers<[1], [0], [0], [1], [0, 0, 1, 1], [], []>, precision = #tpu.contract_precision<fp32>} : vector<2x8xf32>, vector<8x32xf32>, vector<2x32xf32> -> vector<2x32xf32>
    %16 = vector.shape_cast %13 : vector<2x32xf32> to vector<2x32x1xf32>
    %17 = vector.shape_cast %14 : vector<2x32xf32> to vector<2x1x32xf32>
    %18 = vector.broadcast %16 : vector<2x32x1xf32> to vector<2x32x32xf32>
    %19 = vector.broadcast %17 : vector<2x1x32xf32> to vector<2x32x32xf32>
    %20 = arith.mulf %18, %19 : vector<2x32x32xf32>
    %21 = vector.shape_cast %5 : vector<32x32xf32> to vector<1x32x32xf32>
    %22 = vector.broadcast %21 : vector<1x32x32xf32> to vector<2x32x32xf32>
    %23 = arith.mulf %20, %22 : vector<2x32x32xf32>
    %cst_17 = arith.constant dense<0xFF800000> : vector<2x32xf32>
    %24 = vector.multi_reduction <maximumf>, %23, %cst_17 [1] : vector<2x32x32xf32> to vector<2x32xf32>
    %25 = vector.shape_cast %24 : vector<2x32xf32> to vector<2x1x32xf32>
    %26 = vector.broadcast %25 : vector<2x1x32xf32> to vector<2x32x32xf32>
    %27 = arith.subf %23, %26 : vector<2x32x32xf32>
    %28 = math.exp %27 : vector<2x32x32xf32>
    %cst_18 = arith.constant dense<0.000000e+00> : vector<2x32xf32>
    %29 = vector.multi_reduction <add>, %28, %cst_18 [1] : vector<2x32x32xf32> to vector<2x32xf32>
    %30 = vector.shape_cast %29 : vector<2x32xf32> to vector<2x1x32xf32>
    %31 = tpu.reciprocal %30 {approx = true} : vector<2x1x32xf32> -> vector<2x1x32xf32>
    %32 = vector.broadcast %31 : vector<2x1x32xf32> to vector<2x32x32xf32>
    %33 = arith.mulf %28, %32 : vector<2x32x32xf32>
    %34 = vector.shape_cast %15 : vector<2x32xf32> to vector<2x1x32xf32>
    %35 = vector.broadcast %34 : vector<2x1x32xf32> to vector<2x32x32xf32>
    %36 = arith.mulf %33, %35 : vector<2x32x32xf32>
    %37 = vector.shape_cast %7 : vector<32x32xf32> to vector<1x32x32xf32>
    %38 = vector.broadcast %37 : vector<1x32x32xf32> to vector<2x32x32xf32>
    %39 = arith.mulf %36, %38 : vector<2x32x32xf32>
    %cst_19 = arith.constant dense<0.000000e+00> : vector<2x32xf32>
    %40 = vector.multi_reduction <add>, %39, %cst_19 [2] : vector<2x32x32xf32> to vector<2x32xf32>
    %cst_20 = arith.constant dense<0.000000e+00> : vector<2x8xf32>
    %41 = tpu.matmul %40, %9, %cst_20 {dimension_numbers = #tpu.dot_dimension_numbers<[1], [0], [0], [1], [0, 0, 1, 1], [], []>, precision = #tpu.contract_precision<fp32>} : vector<2x32xf32>, vector<32x8xf32>, vector<2x8xf32> -> vector<2x8xf32>
    %c0_21 = arith.constant 0 : index
    %c0_22 = arith.constant 0 : index
    %42 = vector.load %arg17[%c0_21, %c0_22] : memref<2x32xf32, #tpu.memory_space<vmem>>, vector<2x8xf32>
    tpu.vector_store %arg17[%c0_21, %c0_22], %41 {strides = array<i32>} : memref<2x32xf32, #tpu.memory_space<vmem>>, vector<2x8xf32>,
    %43 = vector.extract_strided_slice %1 {offsets = [0, 8], sizes = [2, 8], strides = [1, 1]} : vector<2x32xf32> to vector<2x8xf32>
    %44 = vector.extract_strided_slice %3 {offsets = [0, 8], sizes = [2, 8], strides = [1, 1]} : vector<2x32xf32> to vector<2x8xf32>
    %45 = vector.extract_strided_slice %3 {offsets = [0, 8], sizes = [2, 8], strides = [1, 1]} : vector<2x32xf32> to vector<2x8xf32>
    %cst_23 = arith.constant dense<0.000000e+00> : vector<2x32xf32>
    %46 = tpu.matmul %43, %8, %cst_23 {dimension_numbers = #tpu.dot_dimension_numbers<[1], [0], [0], [1], [0, 0, 1, 1], [], []>, precision = #tpu.contract_precision<fp32>} : vector<2x8xf32>, vector<8x32xf32>, vector<2x32xf32> -> vector<2x32xf32>
    %cst_24 = arith.constant dense<0.000000e+00> : vector<2x32xf32>
    %47 = tpu.matmul %44, %8, %cst_24 {dimension_numbers = #tpu.dot_dimension_numbers<[1], [0], [0], [1], [0, 0, 1, 1], [], []>, precision = #tpu.contract_precision<fp32>} : vector<2x8xf32>, vector<8x32xf32>, vector<2x32xf32> -> vector<2x32xf32>
    %cst_25 = arith.constant dense<0.000000e+00> : vector<2x32xf32>
    %48 = tpu.matmul %45, %8, %cst_25 {dimension_numbers = #tpu.dot_dimension_numbers<[1], [0], [0], [1], [0, 0, 1, 1], [], []>, precision = #tpu.contract_precision<fp32>} : vector<2x8xf32>, vector<8x32xf32>, vector<2x32xf32> -> vector<2x32xf32>
    %49 = vector.shape_cast %46 : vector<2x32xf32> to vector<2x32x1xf32>
    %50 = vector.shape_cast %47 : vector<2x32xf32> to vector<2x1x32xf32>
    %51 = vector.broadcast %49 : vector<2x32x1xf32> to vector<2x32x32xf32>
    %52 = vector.broadcast %50 : vector<2x1x32xf32> to vector<2x32x32xf32>
    %53 = arith.mulf %51, %52 : vector<2x32x32xf32>
    %54 = vector.shape_cast %5 : vector<32x32xf32> to vector<1x32x32xf32>
    %55 = vector.broadcast %54 : vector<1x32x32xf32> to vector<2x32x32xf32>
    %56 = arith.mulf %53, %55 : vector<2x32x32xf32>
    %cst_26 = arith.constant dense<0xFF800000> : vector<2x32xf32>
    %57 = vector.multi_reduction <maximumf>, %56, %cst_26 [1] : vector<2x32x32xf32> to vector<2x32xf32>
    %58 = vector.shape_cast %57 : vector<2x32xf32> to vector<2x1x32xf32>
    %59 = vector.broadcast %58 : vector<2x1x32xf32> to vector<2x32x32xf32>
    %60 = arith.subf %56, %59 : vector<2x32x32xf32>
    %61 = math.exp %60 : vector<2x32x32xf32>
    %cst_27 = arith.constant dense<0.000000e+00> : vector<2x32xf32>
    %62 = vector.multi_reduction <add>, %61, %cst_27 [1] : vector<2x32x32xf32> to vector<2x32xf32>
    %63 = vector.shape_cast %62 : vector<2x32xf32> to vector<2x1x32xf32>
    %64 = tpu.reciprocal %63 {approx = true} : vector<2x1x32xf32> -> vector<2x1x32xf32>
    %65 = vector.broadcast %64 : vector<2x1x32xf32> to vector<2x32x32xf32>
    %66 = arith.mulf %61, %65 : vector<2x32x32xf32>
    %67 = vector.shape_cast %48 : vector<2x32xf32> to vector<2x1x32xf32>
    %68 = vector.broadcast %67 : vector<2x1x32xf32> to vector<2x32x32xf32>
    %69 = arith.mulf %66, %68 : vector<2x32x32xf32>
    %70 = vector.shape_cast %7 : vector<32x32xf32> to vector<1x32x32xf32>
    %71 = vector.broadcast %70 : vector<1x32x32xf32> to vector<2x32x32xf32>
    %72 = arith.mulf %69, %71 : vector<2x32x32xf32>
    %cst_28 = arith.constant dense<0.000000e+00> : vector<2x32xf32>
    %73 = vector.multi_reduction <add>, %72, %cst_28 [2] : vector<2x32x32xf32> to vector<2x32xf32>
    %cst_29 = arith.constant dense<0.000000e+00> : vector<2x8xf32>
    %74 = tpu.matmul %73, %9, %cst_29 {dimension_numbers = #tpu.dot_dimension_numbers<[1], [0], [0], [1], [0, 0, 1, 1], [], []>, precision = #tpu.contract_precision<fp32>} : vector<2x32xf32>, vector<32x8xf32>, vector<2x8xf32> -> vector<2x8xf32>
    %c0_30 = arith.constant 0 : index
    %c8 = arith.constant 8 : index
    %75 = vector.load %arg17[%c0_30, %c8] : memref<2x32xf32, #tpu.memory_space<vmem>>, vector<2x8xf32>
    tpu.vector_store %arg17[%c0_30, %c8], %74 {strides = array<i32>} : memref<2x32xf32, #tpu.memory_space<vmem>>, vector<2x8xf32>,
    %76 = vector.extract_strided_slice %1 {offsets = [0, 16], sizes = [2, 8], strides = [1, 1]} : vector<2x32xf32> to vector<2x8xf32>
    %77 = vector.extract_strided_slice %3 {offsets = [0, 16], sizes = [2, 8], strides = [1, 1]} : vector<2x32xf32> to vector<2x8xf32>
    %78 = vector.extract_strided_slice %3 {offsets = [0, 16], sizes = [2, 8], strides = [1, 1]} : vector<2x32xf32> to vector<2x8xf32>
    %cst_31 = arith.constant dense<0.000000e+00> : vector<2x32xf32>
    %79 = tpu.matmul %76, %8, %cst_31 {dimension_numbers = #tpu.dot_dimension_numbers<[1], [0], [0], [1], [0, 0, 1, 1], [], []>, precision = #tpu.contract_precision<fp32>} : vector<2x8xf32>, vector<8x32xf32>, vector<2x32xf32> -> vector<2x32xf32>
    %cst_32 = arith.constant dense<0.000000e+00> : vector<2x32xf32>
    %80 = tpu.matmul %77, %8, %cst_32 {dimension_numbers = #tpu.dot_dimension_numbers<[1], [0], [0], [1], [0, 0, 1, 1], [], []>, precision = #tpu.contract_precision<fp32>} : vector<2x8xf32>, vector<8x32xf32>, vector<2x32xf32> -> vector<2x32xf32>
    %cst_33 = arith.constant dense<0.000000e+00> : vector<2x32xf32>
    %81 = tpu.matmul %78, %8, %cst_33 {dimension_numbers = #tpu.dot_dimension_numbers<[1], [0], [0], [1], [0, 0, 1, 1], [], []>, precision = #tpu.contract_precision<fp32>} : vector<2x8xf32>, vector<8x32xf32>, vector<2x32xf32> -> vector<2x32xf32>
    %82 = vector.shape_cast %79 : vector<2x32xf32> to vector<2x32x1xf32>
    %83 = vector.shape_cast %80 : vector<2x32xf32> to vector<2x1x32xf32>
    %84 = vector.broadcast %82 : vector<2x32x1xf32> to vector<2x32x32xf32>
    %85 = vector.broadcast %83 : vector<2x1x32xf32> to vector<2x32x32xf32>
    %86 = arith.mulf %84, %85 : vector<2x32x32xf32>
    %87 = vector.shape_cast %5 : vector<32x32xf32> to vector<1x32x32xf32>
    %88 = vector.broadcast %87 : vector<1x32x32xf32> to vector<2x32x32xf32>
    %89 = arith.mulf %86, %88 : vector<2x32x32xf32>
    %cst_34 = arith.constant dense<0xFF800000> : vector<2x32xf32>
    %90 = vector.multi_reduction <maximumf>, %89, %cst_34 [1] : vector<2x32x32xf32> to vector<2x32xf32>
    %91 = vector.shape_cast %90 : vector<2x32xf32> to vector<2x1x32xf32>
    %92 = vector.broadcast %91 : vector<2x1x32xf32> to vector<2x32x32xf32>
    %93 = arith.subf %89, %92 : vector<2x32x32xf32>
    %94 = math.exp %93 : vector<2x32x32xf32>
    %cst_35 = arith.constant dense<0.000000e+00> : vector<2x32xf32>
    %95 = vector.multi_reduction <add>, %94, %cst_35 [1] : vector<2x32x32xf32> to vector<2x32xf32>
    %96 = vector.shape_cast %95 : vector<2x32xf32> to vector<2x1x32xf32>
    %97 = tpu.reciprocal %96 {approx = true} : vector<2x1x32xf32> -> vector<2x1x32xf32>
    %98 = vector.broadcast %97 : vector<2x1x32xf32> to vector<2x32x32xf32>
    %99 = arith.mulf %94, %98 : vector<2x32x32xf32>
    %100 = vector.shape_cast %81 : vector<2x32xf32> to vector<2x1x32xf32>
    %101 = vector.broadcast %100 : vector<2x1x32xf32> to vector<2x32x32xf32>
    %102 = arith.mulf %99, %101 : vector<2x32x32xf32>
    %103 = vector.shape_cast %7 : vector<32x32xf32> to vector<1x32x32xf32>
    %104 = vector.broadcast %103 : vector<1x32x32xf32> to vector<2x32x32xf32>
    %105 = arith.mulf %102, %104 : vector<2x32x32xf32>
    %cst_36 = arith.constant dense<0.000000e+00> : vector<2x32xf32>
    %106 = vector.multi_reduction <add>, %105, %cst_36 [2] : vector<2x32x32xf32> to vector<2x32xf32>
    %cst_37 = arith.constant dense<0.000000e+00> : vector<2x8xf32>
    %107 = tpu.matmul %106, %9, %cst_37 {dimension_numbers = #tpu.dot_dimension_numbers<[1], [0], [0], [1], [0, 0, 1, 1], [], []>, precision = #tpu.contract_precision<fp32>} : vector<2x32xf32>, vector<32x8xf32>, vector<2x8xf32> -> vector<2x8xf32>
    %c0_38 = arith.constant 0 : index
    %c16 = arith.constant 16 : index
    %108 = vector.load %arg17[%c0_38, %c16] : memref<2x32xf32, #tpu.memory_space<vmem>>, vector<2x8xf32>
    tpu.vector_store %arg17[%c0_38, %c16], %107 {strides = array<i32>} : memref<2x32xf32, #tpu.memory_space<vmem>>, vector<2x8xf32>,
    %109 = vector.extract_strided_slice %1 {offsets = [0, 24], sizes = [2, 8], strides = [1, 1]} : vector<2x32xf32> to vector<2x8xf32>
    %110 = vector.extract_strided_slice %3 {offsets = [0, 24], sizes = [2, 8], strides = [1, 1]} : vector<2x32xf32> to vector<2x8xf32>
    %111 = vector.extract_strided_slice %3 {offsets = [0, 24], sizes = [2, 8], strides = [1, 1]} : vector<2x32xf32> to vector<2x8xf32>
    %cst_39 = arith.constant dense<0.000000e+00> : vector<2x32xf32>
    %112 = tpu.matmul %109, %8, %cst_39 {dimension_numbers = #tpu.dot_dimension_numbers<[1], [0], [0], [1], [0, 0, 1, 1], [], []>, precision = #tpu.contract_precision<fp32>} : vector<2x8xf32>, vector<8x32xf32>, vector<2x32xf32> -> vector<2x32xf32>
    %cst_40 = arith.constant dense<0.000000e+00> : vector<2x32xf32>
    %113 = tpu.matmul %110, %8, %cst_40 {dimension_numbers = #tpu.dot_dimension_numbers<[1], [0], [0], [1], [0, 0, 1, 1], [], []>, precision = #tpu.contract_precision<fp32>} : vector<2x8xf32>, vector<8x32xf32>, vector<2x32xf32> -> vector<2x32xf32>
    %cst_41 = arith.constant dense<0.000000e+00> : vector<2x32xf32>
    %114 = tpu.matmul %111, %8, %cst_41 {dimension_numbers = #tpu.dot_dimension_numbers<[1], [0], [0], [1], [0, 0, 1, 1], [], []>, precision = #tpu.contract_precision<fp32>} : vector<2x8xf32>, vector<8x32xf32>, vector<2x32xf32> -> vector<2x32xf32>
    %115 = vector.shape_cast %112 : vector<2x32xf32> to vector<2x32x1xf32>
    %116 = vector.shape_cast %113 : vector<2x32xf32> to vector<2x1x32xf32>
    %117 = vector.broadcast %115 : vector<2x32x1xf32> to vector<2x32x32xf32>
    %118 = vector.broadcast %116 : vector<2x1x32xf32> to vector<2x32x32xf32>
    %119 = arith.mulf %117, %118 : vector<2x32x32xf32>
    %120 = vector.shape_cast %5 : vector<32x32xf32> to vector<1x32x32xf32>
    %121 = vector.broadcast %120 : vector<1x32x32xf32> to vector<2x32x32xf32>
    %122 = arith.mulf %119, %121 : vector<2x32x32xf32>
    %cst_42 = arith.constant dense<0xFF800000> : vector<2x32xf32>
    %123 = vector.multi_reduction <maximumf>, %122, %cst_42 [1] : vector<2x32x32xf32> to vector<2x32xf32>
    %124 = vector.shape_cast %123 : vector<2x32xf32> to vector<2x1x32xf32>
    %125 = vector.broadcast %124 : vector<2x1x32xf32> to vector<2x32x32xf32>
    %126 = arith.subf %122, %125 : vector<2x32x32xf32>
    %127 = math.exp %126 : vector<2x32x32xf32>
    %cst_43 = arith.constant dense<0.000000e+00> : vector<2x32xf32>
    %128 = vector.multi_reduction <add>, %127, %cst_43 [1] : vector<2x32x32xf32> to vector<2x32xf32>
    %129 = vector.shape_cast %128 : vector<2x32xf32> to vector<2x1x32xf32>
    %130 = tpu.reciprocal %129 {approx = true} : vector<2x1x32xf32> -> vector<2x1x32xf32>
    %131 = vector.broadcast %130 : vector<2x1x32xf32> to vector<2x32x32xf32>
    %132 = arith.mulf %127, %131 : vector<2x32x32xf32>
    %133 = vector.shape_cast %114 : vector<2x32xf32> to vector<2x1x32xf32>
    %134 = vector.broadcast %133 : vector<2x1x32xf32> to vector<2x32x32xf32>
    %135 = arith.mulf %132, %134 : vector<2x32x32xf32>
    %136 = vector.shape_cast %7 : vector<32x32xf32> to vector<1x32x32xf32>
    %137 = vector.broadcast %136 : vector<1x32x32xf32> to vector<2x32x32xf32>
    %138 = arith.mulf %135, %137 : vector<2x32x32xf32>
    %cst_44 = arith.constant dense<0.000000e+00> : vector<2x32xf32>
    %139 = vector.multi_reduction <add>, %138, %cst_44 [2] : vector<2x32x32xf32> to vector<2x32xf32>
    %cst_45 = arith.constant dense<0.000000e+00> : vector<2x8xf32>
    %140 = tpu.matmul %139, %9, %cst_45 {dimension_numbers = #tpu.dot_dimension_numbers<[1], [0], [0], [1], [0, 0, 1, 1], [], []>, precision = #tpu.contract_precision<fp32>} : vector<2x32xf32>, vector<32x8xf32>, vector<2x8xf32> -> vector<2x8xf32>
    %c0_46 = arith.constant 0 : index
    %c24 = arith.constant 24 : index
    %141 = vector.load %arg17[%c0_46, %c24] : memref<2x32xf32, #tpu.memory_space<vmem>>, vector<2x8xf32>
    tpu.vector_store %arg17[%c0_46, %c24], %140 {strides = array<i32>} : memref<2x32xf32, #tpu.memory_space<vmem>>, vector<2x8xf32>,
    %c0_47 = arith.constant 0 : index
    %c0_48 = arith.constant 0 : index
    %142 = vector.load %arg17[%c0_47, %c0_48] : memref<2x32xf32, #tpu.memory_space<vmem>>, vector<2x32xf32>
    %143 = arith.addf %1, %142 : vector<2x32xf32>
    %c0_49 = arith.constant 0 : index
    %c0_50 = arith.constant 0 : index
    %c0_51 = arith.constant 0 : index
    %144 = vector.load %arg8[%c0_49, %c0_50, %c0_51] : memref<1x1x32xf32, #tpu.memory_space<vmem>>, vector<1x1x32xf32>
    %145 = vector.shape_cast %144 : vector<1x1x32xf32> to vector<1x32xf32>
    %c0_52 = arith.constant 0 : index
    %c0_53 = arith.constant 0 : index
    %c0_54 = arith.constant 0 : index
    %146 = vector.load %arg9[%c0_52, %c0_53, %c0_54] : memref<1x1x32xf32, #tpu.memory_space<vmem>>, vector<1x1x32xf32>
    %147 = vector.shape_cast %146 : vector<1x1x32xf32> to vector<1x32xf32>
    %cst_55 = arith.constant dense<0.000000e+00> : vector<2xf32>
    %148 = vector.multi_reduction <add>, %143, %cst_55 [1] : vector<2x32xf32> to vector<2xf32>
    %149 = vector.shape_cast %148 : vector<2xf32> to vector<2x1xf32>
    %cst_56 = arith.constant 3.200000e+01 : f32
    %150 = vector.broadcast %cst_56 : f32 to vector<2x1xf32>
    %151 = arith.divf %149, %150 : vector<2x1xf32>
    %152 = vector.broadcast %151 : vector<2x1xf32> to vector<2x32xf32>
    %153 = arith.subf %143, %152 : vector<2x32xf32>
    %154 = arith.mulf %153, %153 : vector<2x32xf32>
    %cst_57 = arith.constant dense<0.000000e+00> : vector<2xf32>
    %155 = vector.multi_reduction <add>, %154, %cst_57 [1] : vector<2x32xf32> to vector<2xf32>
    %156 = vector.shape_cast %155 : vector<2xf32> to vector<2x1xf32>
    %cst_58 = arith.constant 3.200000e+01 : f32
    %157 = vector.broadcast %cst_58 : f32 to vector<2x1xf32>
    %158 = arith.divf %156, %157 : vector<2x1xf32>
    %159 = vector.broadcast %151 : vector<2x1xf32> to vector<2x32xf32>
    %160 = arith.subf %143, %159 : vector<2x32xf32>
    %cst_59 = arith.constant 9.99999974E-6 : f32
    %161 = vector.broadcast %cst_59 : f32 to vector<2x1xf32>
    %162 = arith.addf %158, %161 : vector<2x1xf32>
    %163 = math.rsqrt %162 : vector<2x1xf32>
    %164 = vector.broadcast %163 : vector<2x1xf32> to vector<2x32xf32>
    %165 = arith.mulf %160, %164 : vector<2x32xf32>
    %166 = vector.broadcast %145 : vector<1x32xf32> to vector<2x32xf32>
    %167 = arith.mulf %165, %166 : vector<2x32xf32>
    %168 = vector.broadcast %147 : vector<1x32xf32> to vector<2x32xf32>
    %169 = arith.addf %167, %168 : vector<2x32xf32>
    %c0_60 = arith.constant 0 : index
    %c0_61 = arith.constant 0 : index
    %c0_62 = arith.constant 0 : index
    %170 = vector.load %arg10[%c0_60, %c0_61, %c0_62] : memref<1x32x64xf32, #tpu.memory_space<vmem>>, vector<1x32x64xf32>
    %171 = vector.shape_cast %170 : vector<1x32x64xf32> to vector<32x64xf32>
    %cst_63 = arith.constant dense<0.000000e+00> : vector<2x64xf32>
    %172 = tpu.matmul %169, %171, %cst_63 {dimension_numbers = #tpu.dot_dimension_numbers<[1], [0], [0], [1], [0, 0, 1, 1], [], []>, precision = #tpu.contract_precision<fp32>} : vector<2x32xf32>, vector<32x64xf32>, vector<2x64xf32> -> vector<2x64xf32>
    %c0_64 = arith.constant 0 : index
    %c0_65 = arith.constant 0 : index
    %c0_66 = arith.constant 0 : index
    %173 = vector.load %arg11[%c0_64, %c0_65, %c0_66] : memref<1x1x64xf32, #tpu.memory_space<vmem>>, vector<1x1x64xf32>
    %174 = vector.shape_cast %173 : vector<1x1x64xf32> to vector<1x64xf32>
    %175 = vector.broadcast %174 : vector<1x64xf32> to vector<2x64xf32>
    %176 = arith.addf %172, %175 : vector<2x64xf32>
    %cst_67 = arith.constant 0.000000e+00 : f32
    %177 = vector.broadcast %cst_67 : f32 to vector<2x64xf32>
    %178 = arith.maximumf %176, %177 : vector<2x64xf32>
    %c0_68 = arith.constant 0 : index
    %c0_69 = arith.constant 0 : index
    %c0_70 = arith.constant 0 : index
    %179 = vector.load %arg12[%c0_68, %c0_69, %c0_70] : memref<1x64x32xf32, #tpu.memory_space<vmem>>, vector<1x64x32xf32>
    %180 = vector.shape_cast %179 : vector<1x64x32xf32> to vector<64x32xf32>
    %cst_71 = arith.constant dense<0.000000e+00> : vector<2x32xf32>
    %181 = tpu.matmul %178, %180, %cst_71 {dimension_numbers = #tpu.dot_dimension_numbers<[1], [0], [0], [1], [0, 0, 1, 1], [], []>, precision = #tpu.contract_precision<fp32>} : vector<2x64xf32>, vector<64x32xf32>, vector<2x32xf32> -> vector<2x32xf32>
    %c0_72 = arith.constant 0 : index
    %c0_73 = arith.constant 0 : index
    %c0_74 = arith.constant 0 : index
    %182 = vector.load %arg13[%c0_72, %c0_73, %c0_74] : memref<1x1x32xf32, #tpu.memory_space<vmem>>, vector<1x1x32xf32>
    %183 = vector.shape_cast %182 : vector<1x1x32xf32> to vector<1x32xf32>
    %184 = vector.broadcast %183 : vector<1x32xf32> to vector<2x32xf32>
    %185 = arith.addf %181, %184 : vector<2x32xf32>
    %186 = arith.addf %185, %169 : vector<2x32xf32>
    %c0_75 = arith.constant 0 : index
    %c0_76 = arith.constant 0 : index
    %c0_77 = arith.constant 0 : index
    %187 = vector.load %arg14[%c0_75, %c0_76, %c0_77] : memref<1x1x32xf32, #tpu.memory_space<vmem>>, vector<1x1x32xf32>
    %188 = vector.shape_cast %187 : vector<1x1x32xf32> to vector<1x32xf32>
    %c0_78 = arith.constant 0 : index
    %c0_79 = arith.constant 0 : index
    %c0_80 = arith.constant 0 : index
    %189 = vector.load %arg15[%c0_78, %c0_79, %c0_80] : memref<1x1x32xf32, #tpu.memory_space<vmem>>, vector<1x1x32xf32>
    %190 = vector.shape_cast %189 : vector<1x1x32xf32> to vector<1x32xf32>
    %cst_81 = arith.constant dense<0.000000e+00> : vector<2xf32>
    %191 = vector.multi_reduction <add>, %186, %cst_81 [1] : vector<2x32xf32> to vector<2xf32>
    %192 = vector.shape_cast %191 : vector<2xf32> to vector<2x1xf32>
    %cst_82 = arith.constant 3.200000e+01 : f32
    %193 = vector.broadcast %cst_82 : f32 to vector<2x1xf32>
    %194 = arith.divf %192, %193 : vector<2x1xf32>
    %195 = vector.broadcast %194 : vector<2x1xf32> to vector<2x32xf32>
    %196 = arith.subf %186, %195 : vector<2x32xf32>
    %197 = arith.mulf %196, %196 : vector<2x32xf32>
    %cst_83 = arith.constant dense<0.000000e+00> : vector<2xf32>
    %198 = vector.multi_reduction <add>, %197, %cst_83 [1] : vector<2x32xf32> to vector<2xf32>
    %199 = vector.shape_cast %198 : vector<2xf32> to vector<2x1xf32>
    %cst_84 = arith.constant 3.200000e+01 : f32
    %200 = vector.broadcast %cst_84 : f32 to vector<2x1xf32>
    %201 = arith.divf %199, %200 : vector<2x1xf32>
    %202 = vector.broadcast %194 : vector<2x1xf32> to vector<2x32xf32>
    %203 = arith.subf %186, %202 : vector<2x32xf32>
    %cst_85 = arith.constant 9.99999974E-6 : f32
    %204 = vector.broadcast %cst_85 : f32 to vector<2x1xf32>
    %205 = arith.addf %201, %204 : vector<2x1xf32>
    %206 = math.rsqrt %205 : vector<2x1xf32>
    %207 = vector.broadcast %206 : vector<2x1xf32> to vector<2x32xf32>
    %208 = arith.mulf %203, %207 : vector<2x32xf32>
    %209 = vector.broadcast %188 : vector<1x32xf32> to vector<2x32xf32>
    %210 = arith.mulf %208, %209 : vector<2x32xf32>
    %211 = vector.broadcast %190 : vector<1x32xf32> to vector<2x32xf32>
    %212 = arith.addf %210, %211 : vector<2x32xf32>
    %c0_86 = arith.constant 0 : index
    %c0_87 = arith.constant 0 : index
    %c0_88 = arith.constant 0 : index
    %213 = vector.load %arg16[%c0_86, %c0_87, %c0_88] : memref<1x2x32xf32, #tpu.memory_space<vmem>>, vector<1x2x32xf32>
    %214 = vector.shape_cast %213 : vector<1x2x32xf32> to vector<2x32xf32>
    %215 = vector.shape_cast %212 : vector<2x32xf32> to vector<1x2x32xf32>
    tpu.vector_store %arg16[%c0_86, %c0_87, %c0_88], %215 {strides = array<i32>} : memref<1x2x32xf32, #tpu.memory_space<vmem>>, vector<1x2x32xf32>,
    return
  }
  func.func @transform_0(%arg0: i32, %arg1: i32) -> (i32, i32, i32) {
    %c0_i32 = arith.constant 0 : i32
    %c0_i32_0 = arith.constant 0 : i32
    return %arg0, %arg1, %c0_i32 : i32, i32, i32
  }
  func.func @transform_1(%arg0: i32, %arg1: i32) -> (i32, i32, i32) {
    %c0_i32 = arith.constant 0 : i32
    %c0_i32_0 = arith.constant 0 : i32
    return %arg0, %arg1, %c0_i32 : i32, i32, i32
  }
  func.func @transform_2(%arg0: i32, %arg1: i32) -> (i32, i32, i32) {
    %c0_i32 = arith.constant 0 : i32
    %c0_i32_0 = arith.constant 0 : i32
    %c0_i32_1 = arith.constant 0 : i32
    return %arg0, %c0_i32, %c0_i32_0 : i32, i32, i32
  }
  func.func @transform_3(%arg0: i32, %arg1: i32) -> (i32, i32, i32) {
    %c0_i32 = arith.constant 0 : i32
    %c0_i32_0 = arith.constant 0 : i32
    %c0_i32_1 = arith.constant 0 : i32
    return %arg0, %c0_i32, %c0_i32_0 : i32, i32, i32
  }
  func.func @transform_4(%arg0: i32, %arg1: i32) -> (i32, i32) {
    %c0_i32 = arith.constant 0 : i32
    %c0_i32_0 = arith.constant 0 : i32
    %c0_i32_1 = arith.constant 0 : i32
    return %c0_i32, %c0_i32_0 : i32, i32
  }
  func.func @transform_5(%arg0: i32, %arg1: i32) -> (i32, i32) {
    %c0_i32 = arith.constant 0 : i32
    %c0_i32_0 = arith.constant 0 : i32
    %c0_i32_1 = arith.constant 0 : i32
    return %c0_i32, %c0_i32_0 : i32, i32
  }
  func.func @transform_6(%arg0: i32, %arg1: i32) -> (i32, i32, i32) {
    %c0_i32 = arith.constant 0 : i32
    %c0_i32_0 = arith.constant 0 : i32
    %c0_i32_1 = arith.constant 0 : i32
    return %arg0, %c0_i32, %c0_i32_0 : i32, i32, i32
  }
  func.func @transform_7(%arg0: i32, %arg1: i32) -> (i32, i32, i32) {
    %c0_i32 = arith.constant 0 : i32
    %c0_i32_0 = arith.constant 0 : i32
    %c0_i32_1 = arith.constant 0 : i32
    return %arg0, %c0_i32, %c0_i32_0 : i32, i32, i32
  }
  func.func @transform_8(%arg0: i32, %arg1: i32) -> (i32, i32, i32) {
    %c0_i32 = arith.constant 0 : i32
    %c0_i32_0 = arith.constant 0 : i32
    %c0_i32_1 = arith.constant 0 : i32
    return %arg0, %c0_i32, %c0_i32_0 : i32, i32, i32
  }
  func.func @transform_9(%arg0: i32, %arg1: i32) -> (i32, i32, i32) {
    %c0_i32 = arith.constant 0 : i32
    %c0_i32_0 = arith.constant 0 : i32
    %c0_i32_1 = arith.constant 0 : i32
    return %arg0, %c0_i32, %c0_i32_0 : i32, i32, i32
  }
  func.func @transform_10(%arg0: i32, %arg1: i32) -> (i32, i32, i32) {
    %c0_i32 = arith.constant 0 : i32
    %c0_i32_0 = arith.constant 0 : i32
    %c0_i32_1 = arith.constant 0 : i32
    return %arg0, %c0_i32, %c0_i32_0 : i32, i32, i32
  }
  func.func @transform_11(%arg0: i32, %arg1: i32) -> (i32, i32, i32) {
    %c0_i32 = arith.constant 0 : i32
    %c0_i32_0 = arith.constant 0 : i32
    %c0_i32_1 = arith.constant 0 : i32
    return %arg0, %c0_i32, %c0_i32_0 : i32, i32, i32
  }
  func.func @transform_12(%arg0: i32, %arg1: i32) -> (i32, i32, i32) {
    %c0_i32 = arith.constant 0 : i32
    %c0_i32_0 = arith.constant 0 : i32
    %c0_i32_1 = arith.constant 0 : i32
    return %arg0, %c0_i32, %c0_i32_0 : i32, i32, i32
  }
  func.func @transform_13(%arg0: i32, %arg1: i32) -> (i32, i32, i32) {
    %c0_i32 = arith.constant 0 : i32
    %c0_i32_0 = arith.constant 0 : i32
    %c0_i32_1 = arith.constant 0 : i32
    return %arg0, %c0_i32, %c0_i32_0 : i32, i32, i32
  }
  func.func @transform_14(%arg0: i32, %arg1: i32) -> (i32, i32, i32) {
    %c0_i32 = arith.constant 0 : i32
    %c0_i32_0 = arith.constant 0 : i32
    return %arg0, %arg1, %c0_i32 : i32, i32, i32
  }
}

</mosaic_0001>

<bundles_post_ra>
// kernel: tpu_custom_call.1
= control target key start
LH: loop header
LB: loop body
LE: loop exit
PB: predicated region body
PF: predicated region fallthrough
CT: control target
= control target key end

     0   :  { %s12099_s0 = inlined_call_operand.vmem [shape: f32[2,2,32], index: 0, kind: input, shape index: {}]   ;;  %s12100_s1 = inlined_call_operand.hbm [shape: f32[2,2,32], index: 1, kind: input, shape index: {}]   ;;  %s12101_s2 = inlined_call_operand.vmem [shape: f32[2,32,32], index: 2, kind: input, shape index: {}]   ;;  %s12102_s3 = inlined_call_operand.vmem [shape: f32[2,32,32], index: 3, kind: input, shape index: {}]   ;;  %s12103_s4 = inlined_call_operand.vmem [shape: f32[8,32], index: 4, kind: input, shape index: {}]   ;;  %s12104_s5 = inlined_call_operand.vmem [shape: f32[32,8], index: 5, kind: input, shape index: {}]   ;;  %s12105_s6 = inlined_call_operand.hbm [shape: f32[2,1,32], index: 6, kind: input, shape index: {}]   ;;  %s12106_s7 = inlined_call_operand.hbm [shape: f32[2,1,32], index: 7, kind: input, shape index: {}]   ;;  %s12107_s8 = inlined_call_operand.vmem [shape: f32[2,32,64], index: 8, kind: input, shape index: {}]   ;;  %s12108_s9 = inlined_call_operand.hbm [shape: f32[2,1,64], index: 9, kind: input, shape index: {}]   ;;  %s12109_s10 = inlined_call_operand.vmem [shape: f32[2,64,32], index: 10, kind: input, shape index: {}]   ;;  %s12110_s11 = inlined_call_operand.vmem [shape: f32[2,1,32], index: 11, kind: input, shape index: {}]   ;;  %s12111_s12 = inlined_call_operand.vmem [shape: f32[2,1,32], index: 12, kind: input, shape index: {}]   ;;  %s12112_s13 = inlined_call_operand.vmem [shape: f32[2,1,32], index: 13, kind: input, shape index: {}]   ;;  %s12113_s14 = inlined_call_operand.hbm [shape: f32[2,2,32], index: 14, kind: output, shape index: {}]  }
   0x1   :  { %12128 = sst [smem:[#allocation24_spill]] %s12105_s6 }
   0x2   :  { %12129 = sst [smem:[#allocation25_spill]] %s12109_s10 }
   0x3   :  { %12130 = sst [smem:[#allocation26_spill]] %s12110_s11 }
   0x4   :  { %12131 = sst [smem:[#allocation27_spill]] %s12111_s12 }
   0x5   :  { %12132 = sst [smem:[#allocation28_spill]] %s12112_s13 }
   0x6   :  { %12133 = sst [smem:[#allocation29_spill]] %s12113_s14 }
   0x7   :  { %19 = vsyncpa [#allocation4], 0 }
   0x8   :  { %21 = vsyncpa [#allocation4 + $0x1], 0 }
   0x9   :  { %22 = vsyncpa [#allocation7], 0 }
   0xa   :  { %24 = vsyncpa [#allocation7 + $0x1], 0 }
   0xb   :  { %25 = vsyncpa [#allocation10], 0 }
   0xc   :  { %27 = vsyncpa [#allocation10 + $0x1], 0 }
   0xd   :  { %28 = vsyncpa [#allocation5], 0 }
   0xe   :  { %30 = vsyncpa [#allocation5 + $0x1], 0  ;;  %s10627_s29 = smov 0   ;;  %s10629_s30 = smov 0  }
   0xf   :  { %s10631_s15 = smov 0   ;;  %s10633_s16 = smov 0  }
  0x10   :  { %s10635_s17 = smov 0   ;;  %s10637_s18 = smov 0  }
  0x11 LB: > { %12134 = sst [smem:[#allocation16_spill]] %s10515_s29  ;;  %s10658_s19 = sadd.s32 4294967295, %s10535_s18   ;;  %s10535_s18 = sphi %s10637_s18, %s36_s18   ;;  %s10531_s17 = sphi %s10635_s17, %s12175_s17   ;;  %s10527_s16 = sphi %s10633_s16, %s12171_s16   ;;  %s10523_s15 = sphi %s10631_s15, %s12170_s15   ;;  %s10519_s30 = sphi %s10629_s30, %s12174_s30   ;;  %s10515_s29 = sphi %s10627_s29, %s12173_s29  }
  0x12   : > { %12135 = sst [smem:[#allocation17_spill]] %s10523_s15  ;;  %s8744_s20 = sadd.s32 4294967294, %s10535_s18  }
  0x13   : > { %12136 = sst [smem:[#allocation18_spill]] %s10531_s17  ;;  %s48_s21 = sadd.s32 1, %s10531_s17 }
  0x14   : > { %12137 = sst [smem:[#allocation19_spill]] %s10535_s18  ;;  %s85_s22 = sadd.s32 1, %s10523_s15 }
  0x15   : > { %p50_p0 = scmp.ge.s32.totalorder %s48_s21, 2  ;;  %p92_p1 = scmp.ne.s32.totalorder %s10523_s15, %s10519_s30 }
  0x16   : > { %p93_p2 = scmp.eq.s32.totalorder %s10535_s18, 0  ;;  %p98_p3 = scmp.ne.s32.totalorder %s10519_s30, %s10515_s29 }
  0x17   : > { %s12177_s21 = smov (%p50_p0, %s48_s21), 0  ;;  %p99_p5 = scmp.eq.s32.totalorder %s10658_s19, 0 }
  0x18   : > { %12138 = sst [smem:[#allocation20_spill]] %s12177_s21  ;;  %p10670_p4 = por %p93_p2, %p92_p1 }
  0x19   : > { %s80_s24 = ssub.s32 %s10531_s17, %s12177_s21  ;;  %p426_p6 = scmp.eq.s32.totalorder %s10658_s19, 1 }
  0x1a   : > { %p83_p7 = scmp.eq.s32.totalorder %s80_s24, 0  ;;  %p10678_p8 = por %p99_p5, %p98_p3 }
  0x1b   : > { %p10682_p9 = por %p426_p6, %p92_p1  ;;  %p432_p10 = scmp.eq.s32.totalorder %s8744_s20, 1 }
  0x1c   : > { %s12140_s25 = scalar_select %p10678_p8, 1, 0 }
  0x1d   : > { %s12141_s26 = scalar_select %p10682_p9, 1, 0 }
  0x1e   : > { %s10687_s27 = scalar_select %p83_p7, %s10523_s15, %s85_s22  }
  0x1f   : > { %12142 = sst [smem:[#allocation21_spill]] %s12141_s26  ;;  %p10689_p11 = por %p432_p10, %p98_p3 }
  0x20   : > { %12143 = sst [smem:[#allocation22_spill]] %s10687_s27  ;;  %p10172_p13 = scmp.lt.s32.totalorder %s10535_s18, 2 }
  0x21   : > { %s12144_s28 = scalar_select %p10689_p11, 1, 0 }
  0x22   : > { %s10696_s21 = sand.u32 1, %s10523_s15   ;;  %s503_s24 = sand.u32 1, %s10535_s18  }
  0x23   : > { %12145 = sst [smem:[#allocation23_spill]] %s12144_s28  ;;  %p10701_p0 = pnand %p10172_p13, %p10670_p4 }
  0x24   : > { %s10706_s14 = sshll.u32 %s10531_s17, 4  ;;  %s506_s20 = scalar_lea.vmem [#allocation6], %s10696_s21 }
  0x25   : > { %s12146_s29 = scalar_select %p10701_p0, 1, 0 }
  0x26   : > { %s513_s22 = sshll.u32 %s506_s20, 4  ;;  %s12147_s6 = sld [smem:[#allocation24_spill]]  ;;  %s10715_s22 = int_to_ptr.vmem [resolvable:$true] %s513_s22 }
  0x27   : > { %s10718_s23 = scalar_lea.sflag [#allocation7], %s503_s24  ;;  %p10724_p3 = pneg %p10701_p0 }
  0x2c   : > { %s10713_s28 = scalar_lea.hbm %s12147_s6, %s10706_s14  ;;  %s10330_s20 = scalar_lea.hbm %s12147_s6, 32 }
  0x2d   : > { %s10325_s15 = scalar_lea.hbm %s10713_s28, 16  ;;  %p10331_p6 = scmp.lt.u32.totalorder %s10713_s28, %s12147_s6 }
  0x2e   : > { %p10326_p2 = scmp.ne.s32.totalorder %s10713_s28, %s10325_s15  ;;  %p10332_p7 = scmp.lt.u32.totalorder %s10330_s20, %s10325_s15 }
  0x2f   : > { %p10334_p13 = scmp.lt.u32.totalorder %s10325_s15, %s10713_s28 }
  0x30   : > { %p10328_p4 = pnand %p10724_p3, %p10326_p2  ;;  %p10333_p10 = por %p10332_p7, %p10331_p6 }
  0x32   : > { %p10329_p5 = pneg %p10328_p4  ;;  %p10335_p12 = por %p10334_p13, %p10333_p10 }
  0x34   : > { %p10336_p1 = pnand %p10335_p12, %p10329_p5 }
  0x36   : > { %10339 = shalt.err (!%p10336_p1)
}
  0x37   : > { %s10340_s24 = scalar_lea.vmem %s10715_s22, 16  ;;  %s10537_s26 = smov [#allocation6]  }
  0x38   : > { %p10341_p2 = scmp.ne.s32.totalorder %s10715_s22, %s10340_s24  ;;  %s10345_s27 = sshll.u32 %s10537_s26, 4  ;;  %s10346_s27 = int_to_ptr.vmem [resolvable:$false] %s10345_s27 }
  0x39   : > { %s10347_s11 = scalar_lea.vmem %s10346_s27, 32  ;;  %p10348_p9 = scmp.lt.s32.totalorder %s10715_s22, %s10346_s27 }
  0x3a   : > { %p10343_p4 = pnand %p10341_p2, %p10724_p3  ;;  %p10349_p8 = scmp.lt.s32.totalorder %s10347_s11, %s10340_s24 }
  0x3c   : > { %p10344_p11 = pneg %p10343_p4  ;;  %p10350_p6 = por %p10349_p8, %p10348_p9 }
  0x3e   : > { %p10351_p7 = pnand %p10350_p6, %p10344_p11 }
  0x40   : > { %10354 = shalt.err (!%p10351_p7)
}
  0x41   : > { %10161 = dma.hbm_to_vmem [thread:$0]  (!%p10701_p0), %s10713_s28, 16, %s10715_s22, %s10718_s23  }
  0x42   : > { %p586_p12 = scmp.lt.s32.totalorder %s10535_s18, 3  ;;  %p12149_p1 = scmp.ge.s32.totalorder %s10535_s18, 1 }
  0x43   : > { %s8747_s15 = sshll.u32 %s10696_s21, 1  ;;  %s8748_s20 = sshll.u32 %s10531_s17, 5 }
  0x44   : > { %p10751_p5 = pnand %p12149_p1, %p586_p12  ;;  %s10760_s27 = scalar_lea.hbm %s12100_s1, %s8748_s20 }
  0x45   : > { %s472_s11 = scalar_lea.vmem [#allocation3], %s8747_s15  ;;  %s469_s28 = scalar_lea.sflag [#allocation4], %s10696_s21 }
  0x46   : > { %s12150_s12 = scalar_select %p10751_p5, 1, 0 }
  0x47   : > { %s480_s6 = sshll.u32 %s472_s11, 4  ;;  %s10355_s22 = scalar_lea.hbm %s10760_s27, 32  ;;  %s481_s6 = int_to_ptr.vmem [resolvable:$true] %s480_s6 }
  0x48   : > { %p10356_p8 = scmp.ne.s32.totalorder %s10760_s27, %s10355_s22  ;;  %s10360_s10 = scalar_lea.hbm %s12100_s1, 64 }
  0x49   : > { %p10361_p10 = scmp.lt.u32.totalorder %s10760_s27, %s12100_s1  ;;  %p10362_p13 = scmp.lt.u32.totalorder %s10360_s10, %s10355_s22 }
  0x4a   : > { %p10358_p9 = pnand %p10356_p8, %p10724_p3  ;;  %p10364_p4 = scmp.lt.u32.totalorder %s10355_s22, %s10760_s27 }
  0x4b   : > { %p10363_p2 = por %p10362_p13, %p10361_p10 }
  0x4c   : > { %p10359_p11 = pneg %p10358_p9 }
  0x4d   : > { %p10365_p6 = por %p10364_p4, %p10363_p2 }
  0x4f   : > { %p10366_p7 = pnand %p10365_p6, %p10359_p11 }
  0x51   : > { %10369 = shalt.err (!%p10366_p7)
}
  0x52   : > { %s10370_s15 = scalar_lea.vmem %s481_s6, 32  ;;  %s10538_s26 = smov [#allocation3]  }
  0x53   : > { %p10371_p12 = scmp.ne.s32.totalorder %s481_s6, %s10370_s15  ;;  %s10375_s11 = sshll.u32 %s10538_s26, 4  ;;  %s10376_s11 = int_to_ptr.vmem [resolvable:$false] %s10375_s11 }
  0x54   : > { %s10377_s17 = scalar_lea.vmem %s10376_s11, 64  ;;  %p10378_p9 = scmp.lt.s32.totalorder %s481_s6, %s10376_s11 }
  0x55   : > { %p10373_p1 = pnand %p10371_p12, %p10724_p3  ;;  %p10379_p5 = scmp.lt.s32.totalorder %s10377_s17, %s10370_s15 }
  0x57   : > { %p10374_p8 = pneg %p10373_p1  ;;  %p10380_p0 = por %p10379_p5, %p10378_p9 }
  0x59   : > { %p10381_p10 = pnand %p10380_p0, %p10374_p8 }
  0x5b   : > { %10384 = shalt.err (!%p10381_p10)
}
  0x5c   : > { %p12151_p13 = scmp.ne.s32.totalorder %s12146_s29, 0  ;;  %s10784_s22 = scalar_lea.hbm %s12106_s7, %s10706_s14 }
  0x5d   : > { %s523_s24 = scalar_lea.vmem [#allocation8], %s10696_s21  ;;  %s10385_s15 = scalar_lea.hbm %s10784_s22, 16 }
  0x5e   : > { %10158 = dma.hbm_to_vmem [thread:$0]  (!%p12151_p13), %s10760_s27, 32, %s481_s6, %s469_s28  }
  0x5f   : > { %s530_s20 = sshll.u32 %s523_s24, 4  ;;  %p10386_p0 = scmp.ne.s32.totalorder %s10784_s22, %s10385_s15  ;;  %s531_s20 = int_to_ptr.vmem [resolvable:$true] %s530_s20 }
  0x60   : > { %s10390_s6 = scalar_lea.hbm %s12106_s7, 32  ;;  %p10391_p2 = scmp.lt.u32.totalorder %s10784_s22, %s12106_s7 }
  0x61   : > { %p10388_p5 = pnand %p10386_p0, %p10724_p3  ;;  %p10392_p4 = scmp.lt.u32.totalorder %s10390_s6, %s10385_s15 }
  0x62   : > { %p10394_p7 = scmp.lt.u32.totalorder %s10385_s15, %s10784_s22 }
  0x63   : > { %p10389_p11 = pneg %p10388_p5  ;;  %p10393_p6 = por %p10392_p4, %p10391_p2 }
  0x65   : > { %p10395_p12 = por %p10394_p7, %p10393_p6 }
  0x67   : > { %p10396_p1 = pnand %p10395_p12, %p10389_p11 }
  0x69   : > { %10399 = shalt.err (!%p10396_p1)
}
  0x6a   : > { %s10400_s17 = scalar_lea.vmem %s531_s20, 16  ;;  %s10539_s10 = smov [#allocation8]  }
  0x6b   : > { %p10401_p8 = scmp.ne.s32.totalorder %s531_s20, %s10400_s17  ;;  %s10405_s18 = sshll.u32 %s10539_s10, 4  ;;  %s10406_s18 = int_to_ptr.vmem [resolvable:$false] %s10405_s18 }
  0x6c   : > { %s10407_s24 = scalar_lea.vmem %s10406_s18, 32  ;;  %p10408_p0 = scmp.lt.s32.totalorder %s531_s20, %s10406_s18 }
  0x6d   : > { %p10403_p9 = pnand %p10401_p8, %p10724_p3  ;;  %p10409_p5 = scmp.lt.s32.totalorder %s10407_s24, %s10400_s17 }
  0x6f   : > { %p10404_p10 = pneg %p10403_p9  ;;  %p10410_p13 = por %p10409_p5, %p10408_p0 }
  0x71   : > { %p10411_p2 = pnand %p10410_p13, %p10404_p10 }
  0x73   : > { %10414 = shalt.err (!%p10411_p2)
}
  0x74   : > { %p12152_p4 = scmp.ne.s32.totalorder %s12146_s29, 0  ;;  %s10809_s11 = scalar_lea.hbm %s12108_s9, %s10706_s14 }
  0x75   : > { %s548_s6 = scalar_lea.vmem [#allocation9], %s10696_s21  ;;  %s546_s28 = scalar_lea.sflag [#allocation10], %s10696_s21 }
  0x76   : > { %10164 = dma.hbm_to_vmem [thread:$0]  (!%p12152_p4), %s10784_s22, 16, %s531_s20, %s10718_s23  }
  0x77   : > { %s555_s27 = sshll.u32 %s548_s6, 4  ;;  %s10415_s17 = scalar_lea.hbm %s10809_s11, 16  ;;  %s556_s27 = int_to_ptr.vmem [resolvable:$true] %s555_s27 }
  0x78   : > { %p10416_p13 = scmp.ne.s32.totalorder %s10809_s11, %s10415_s17  ;;  %s10420_s22 = scalar_lea.hbm %s12108_s9, 32 }
  0x79   : > { %p10421_p7 = scmp.lt.u32.totalorder %s10809_s11, %s12108_s9  ;;  %p10422_p12 = scmp.lt.u32.totalorder %s10420_s22, %s10415_s17 }
  0x7a   : > { %p10418_p11 = pnand %p10416_p13, %p10724_p3  ;;  %p10424_p8 = scmp.lt.u32.totalorder %s10415_s17, %s10809_s11 }
  0x7b   : > { %p10423_p1 = por %p10422_p12, %p10421_p7 }
  0x7c   : > { %p10419_p6 = pneg %p10418_p11 }
  0x7d   : > { %p10425_p9 = por %p10424_p8, %p10423_p1 }
  0x7f   : > { %p10426_p10 = pnand %p10425_p9, %p10419_p6 }
  0x81   : > { %10429 = shalt.err (!%p10426_p10)
}
  0x82   : > { %s10430_s21 = scalar_lea.vmem %s556_s27, 16  ;;  %s10540_s18 = smov [#allocation9]  }
  0x83   : > { %p10431_p0 = scmp.ne.s32.totalorder %s556_s27, %s10430_s21  ;;  %s10435_s24 = sshll.u32 %s10540_s18, 4  ;;  %s10436_s24 = int_to_ptr.vmem [resolvable:$false] %s10435_s24 }
  0x84   : > { %s10437_s15 = scalar_lea.vmem %s10436_s24, 32  ;;  %p10438_p13 = scmp.lt.s32.totalorder %s556_s27, %s10436_s24 }
  0x85   : > { %p10433_p5 = pnand %p10431_p0, %p10724_p3  ;;  %p10439_p11 = scmp.lt.s32.totalorder %s10437_s15, %s10430_s21 }
  0x87   : > { %p10434_p2 = pneg %p10433_p5  ;;  %p10440_p4 = por %p10439_p11, %p10438_p13 }
  0x89   : > { %p10441_p7 = pnand %p10440_p4, %p10434_p2 }
  0x8b   : > { %10444 = shalt.err (!%p10441_p7)
}
  0x8c   : > { %p12153_p12 = scmp.ne.s32.totalorder %s12146_s29, 0  ;;  %p12154_p6 = scmp.ne.s32.totalorder %s12150_s12, 0 }
  0x8d   : > { %s10833_s13 = sand.u32 (!%p12154_p6), 1, %s10519_s30   ;;  %p12155_p3 = scmp.ne.s32.totalorder (!%p12154_p6), %s12140_s25, 0 }
  0x8e   : > { %10167 = dma.hbm_to_vmem [thread:$0]  (!%p12153_p12), %s10809_s11, 16, %s556_s27, %s546_s28  }
  0x8f   : > { %590 = sbr.rel (%p12154_p6) target bundleno = 2643 (0xa53), region = 76  ;;  %s8753_s26 = sshll.u32 (!%p12154_p6), %s10833_s13, 1 }
  0x90   : > { %s593_s6 = scalar_lea.sflag (!%p12154_p6), [#allocation4], %s10833_s13  ;;  %s596_s17 = scalar_lea.vmem (!%p12154_p6), [#allocation3], %s8753_s26 }
  0x96   : > { %10498 = dma.done.wait (%p12155_p3), %s593_s6, 32  }
  0x97   : > { %10500 = vsyncadd (%p12155_p3), %s593_s6, 4294967264  ;;  %s601_s29 = sand.u32 1, %s10658_s19   ;;  %s604_s11 = scalar_lea.vmem [#allocation6], %s10833_s13 }
  0x98   : > { %s602_s12 = scalar_lea.sflag [#allocation7], %s601_s29 }
  0x99   : > { %10502 = dma.done.wait (%p12155_p3), %s602_s12, 32  }
  0x9a   : > { %10504 = vsyncadd (%p12155_p3), %s602_s12, 4294967264  ;;  %s612_s27 = scalar_lea.vmem [#allocation8], %s10833_s13  ;;  %s618_s28 = scalar_lea.sflag [#allocation10], %s10833_s13 }
  0x9b   : > { %s620_s10 = scalar_lea.vmem [#allocation9], %s10833_s13 }
  0x9c   : > { %10506 = dma.done.wait (%p12155_p3), %s618_s28, 16  }
  0x9d   : > { %10508 = vsyncadd (%p12155_p3), %s618_s28, 4294967280  ;;  %p713_p4 = scmp.lt.s32.totalorder %s10527_s16, 1  ;;  %v10541_v0 = vmov 0.0   ;;  %vm10542_vm0 = vmmov 0   ;;  %vm764_vm1 = vcmask 64512   ;;  %v759_v2 = vld [vmem:[%s12103_s4] sm:$0xff]  ;;  %v1663_v48 = vlaneseq }
  0x9e   : > { %9078 = vmatprep.subr.mxu0 %v10541_v0  ;;  %9080 = vmatprep.mubr.msk.f32.mxu0 %vm10542_vm0, %v10541_v0  ;;  %v10878_v3 = vld [vmem:[%s596_s17] sm:$0x3]  ;;  %s10543_s18 = smov 120   ;;  %v10881_v4 = vand.u32 4294901760, %v759_v2  ;;  %s10544_s24 = smov 112   ;;  %vm1750_vm2 = vcmask 261120  }
  0x9f   : > { %s10861_s19 = scalar_select %p713_p4, %s10527_s16, 1  ;;  %9108 = vmatprep.subr.mxu1 %v10541_v0  ;;  %9110 = vmatprep.mubr.msk.f32.mxu1 %vm10542_vm0, %v10541_v0  ;;  %v1215_v6 = vsel %vm764_vm1, %v10878_v3, 0  ;;  %v11027_v50 = vshrl.u32 %v1663_v48, 7  ;;  %vm1896_vm3 = vcmask 130112   ;;  %vm1903_vm4 = vcmask 195712  }
  0xa0   : > { %v1283_v8 = vand.u32 4294901760, %v1215_v6  ;;  %9079 = vmatpush3.msra.mxu0 %v10881_v4  ;;  %v10890_v9 = vsub.f32 %v759_v2, %v10881_v4  ;;  %9109 = vmatpush3.msra.mxu1 %v10881_v4  ;;  %s10545_s15 = smov 104   ;;  %vm1910_vm5 = vcmask 261312   ;;  %vm1931_vm6 = vcmask 1041409   ;;  %s10549_s28 = smov 16  }
  0xa1   : > { %s8755_s25 = sshll.u32 %s10861_s19, 1  ;;  %9083 = vmatprep.subr.mxu0 %v10541_v0  ;;  %9113 = vmatprep.subr.mxu1 %v10541_v0  ;;  %v11031_v51 = vsub.s32 0, %v11027_v50  ;;  %v11041_v57 = vsub.s32 1, %v11027_v50  ;;  %s11117_s6 = sshll.u32 %s10861_s19, 5  ;;  %vm2420_vm7 = vcmask 58368   ;;  %vm4073_vm8 = vcmask 123968  }
  0xa2   : > { %s10870_s20 = scalar_lea.vmem %s12099_s0, %s8755_s25  ;;  %v1284_v11 = vsub.f32 %v1215_v6, %v1283_v8  ;;  %v10896_v12 = vand.u32 4294901760, %v10890_v9  ;;  %s11123_s12 = scalar_lea.vmem %s12101_s2, %s11117_s6  ;;  %vm5726_vm9 = vcmask 189568   ;;  %vm7379_vm10 = vcmask 255168  }
  0xa3   : > { %v10873_v1 = vld [vmem:[%s10870_s20] sm:$0x3]  ;;  %s11191_s23 = scalar_lea.vmem %s12102_s3, %s11117_s6  ;;  %s10550_s25 = smov 24   ;;  %vm7385_vm11 = vcmask 254976   ;;  %vm7929_vm12 = vcmask 523264  }
  0xa4   : > { %2422 = vrot.lane.b32.xlu0 %v10873_v1, %s10543_s18  ;;  %v766_v5 = vsel %vm764_vm1, %v10873_v1, 0  ;;  %4075 = vrot.lane.b32.xlu1 %v10873_v1, %s10544_s24  ;;  %v1285_v14 = vand.u32 4294901760, %v1284_v11  ;;  %v848_v15 = vsub.f32 %v10890_v9, %v10896_v12  ;;  %s734_s14 = scalar_lea.vmem %s12107_s8, %s11117_s6  ;;  %s12156_s6 = sld [smem:[#allocation25_spill]] }
  0xa5   : > { %v834_v7 = vand.u32 4294901760, %v766_v5  ;;  %s12159_s22 = sld [smem:[#allocation28_spill]] }
  0xa6   : > { %v1286_v17 = vsub.f32 %v1284_v11, %v1285_v14  ;;  %v10902_v18 = vand.u32 4294901760, %v848_v15 }
  0xa7   : > { %v835_v10 = vsub.f32 %v766_v5, %v834_v7 }
  0xa8   : > { %2872 = vrot.lane.b32.xlu0 %v10878_v3, %s10543_s18  ;;  %4525 = vrot.lane.b32.xlu1 %v10878_v3, %s10544_s24  ;;  %v1287_v20 = vand.u32 4294901760, %v1286_v17  ;;  %s12157_s24 = sld [smem:[#allocation26_spill]]  ;;  %s12161_s18 = sld [smem:[#allocation29_spill]] }
  0xa9   : > { %v836_v13 = vand.u32 4294901760, %v835_v10 }
  0xaa   : > { %9111 = vmatmul.mubr.f32.vlgmr.msra.gmra.mrb[0].mxu1 %v1287_v20 }
  0xab   : > { %v837_v16 = vsub.f32 %v835_v10, %v836_v13  ;;  %9114 = vmatpush3.msra.mxu1 %v10902_v18  ;;  %9115 = vmatprep.mubr.msk.f32.mxu1 %vm10542_vm0, %v10541_v0 }
  0xac   : > { %9118 = vmatprep.subr.mxu1 %v10541_v0  ;;  %5728 = vrot.lane.b32.xlu0 %v10873_v1, %s10545_s15 }
  0xad   : > { %v838_v19 = vand.u32 4294901760, %v837_v16  ;;  %6178 = vrot.lane.b32.xlu1 %v10878_v3, %s10545_s15 }
  0xae   : > { %s742_s15 = scalar_lea.vmem %s12157_s24, %s10861_s19  ;;  %s12162_s24 = smov %s12161_s18 }
  0xaf   : > { %9081 = vmatmul.mubr.f32.vlgmr.msra.gmra.mrb[0].mxu0 %v838_v19 }
  0xb0   : > { %9084 = vmatpush3.msra.mxu0 %v10902_v18  ;;  %9085 = vmatprep.mubr.msk.f32.mxu0 %vm10542_vm0, %v10541_v0 }
  0xb1   : > { %9088 = vmatprep.subr.mxu0 %v10541_v0 }
  0xb2   : > { %9116 = vmatmul.mubr.f32.vlgmr.msra.gmra.mrb[0].mxu1 %v1283_v8 }
  0xb3   : > { %9119 = vmatpush3.msra.mxu1 %v10890_v9  ;;  %9120 = vmatprep.mubr.msk.f32.mxu1 %vm10542_vm0, %v10541_v0 }
  0xb4   : > { %9123 = vmatprep.subr.mxu1 %v10541_v0 }
  0xb7   : > { %9086 = vmatmul.mubr.f32.vlgmr.msra.gmra.mrb[0].mxu0 %v834_v7 }
  0xb8   : > { %9089 = vmatpush3.msra.mxu0 %v10890_v9  ;;  %9090 = vmatprep.mubr.msk.f32.mxu0 %vm10542_vm0, %v10541_v0 }
  0xb9   : > { %9093 = vmatprep.subr.mxu0 %v10541_v0 }
  0xba   : > { %9121 = vmatmul.mubr.f32.vlgmr.msra.gmra.mrb[0].mxu1 %v1284_v11 }
  0xbb   : > { %9124 = vmatpush3.msra.mxu1 %v10881_v4  ;;  %9125 = vmatprep.mubr.msk.f32.mxu1 %vm10542_vm0, %v10541_v0 }
  0xbc   : > { %9128 = vmatprep.subr.mxu1 %v10541_v0 }
  0xbf   : > { %9091 = vmatmul.mubr.f32.vlgmr.msra.gmra.mrb[0].mxu0 %v835_v10 }
  0xc0   : > { %9094 = vmatpush3.msra.mxu0 %v10881_v4  ;;  %9095 = vmatprep.mubr.msk.f32.mxu0 %vm10542_vm0, %v10541_v0 }
  0xc1   : > { %9098 = vmatprep.subr.mxu0 %v10541_v0 }
  0xc2   : > { %9126 = vmatmul.mubr.f32.vlgmr.msra.gmra.mrb[0].mxu1 %v1285_v14 }
  0xc3   : > { %9129 = vmatpush3.msra.mxu1 %v10896_v12  ;;  %9130 = vmatprep.mubr.msk.f32.mxu1 %vm10542_vm0, %v10541_v0 }
  0xc4   : > { %9133 = vmatprep.subr.mxu1 %v10541_v0 }
  0xc7   : > { %9096 = vmatmul.mubr.f32.vlgmr.msra.gmra.mrb[0].mxu0 %v836_v13  ;;  %v10546_v13 = vmov 1966171168  }
  0xc8   : > { %9099 = vmatpush3.msra.mxu0 %v10896_v12  ;;  %9100 = vmatprep.mubr.msk.f32.mxu0 %vm10542_vm0, %v10541_v0  ;;  %v1703_v14 = vunpack.c.l.s4 %v10546_v13 }
  0xc9   : > { %9103 = vmatprep.subr.mxu0 %v10541_v0 }
  0xca   : > { %9131 = vmatmul.mubr.f32.vlgmr.msra.gmra.mrb[0].mxu1 %v1283_v8  ;;  %v1704_v15 = vunpack.c.0.s8 %v1703_v14 }
  0xcb   : > { %9134 = vmatpush3.msra.mxu1 %v10881_v4  ;;  %9135 = vmatprep.mubr.msk.f32.mxu1 %vm10542_vm0, %v10541_v0 }
  0xcc   : > { %9204 = vmatprep.subr.mxu1 %v10541_v0  ;;  %v11107_v16 = vsub.s32 %v1704_v15, %v11027_v50 }
  0xcf   : > { %9101 = vmatmul.mubr.f32.vlgmr.msra.gmra.mrb[0].mxu0 %v834_v7 }
  0xd0   : > { %9104 = vmatpush3.msra.mxu0 %v10881_v4  ;;  %9105 = vmatprep.mubr.msk.f32.mxu0 %vm10542_vm0, %v10541_v0 }
  0xd2   : > { %9136 = vmatmul.mubr.f32.vlgmr.msra.gmra.mrb[0].mxu1 %v1283_v8 }
  0xd3   : > { %9205 = vmatpush3.msra.mxu1 %v10881_v4  ;;  %9206 = vmatprep.mubr.msk.f32.mxu1 %vm10542_vm0, %v10541_v0 }
  0xd4   : > { %9209 = vmatprep.subr.mxu1 %v10541_v0 }
  0xd7   : > { %9106 = vmatmul.mubr.f32.vlgmr.msra.gmra.mrb[0].mxu0 %v834_v7 }
  0xd8   : > { %9146 = vmatprep.mubr.msk.f32.mxu0 %vm10542_vm0, %v10541_v0 }
 0x116   : > { %v2423_v21 = vpop.permute.xlu0 %2422  ;;  %v4076_v35 = vpop.permute.xlu1 %4075 }
 0x117   : > { %v2424_v22 = vsel %vm764_vm1, %v2423_v21, 0  ;;  %v4077_v36 = vsel %vm764_vm1, %v4076_v35, 0 }
 0x118   : > { %v2492_v23 = vand.u32 4294901760, %v2424_v22  ;;  %v4145_v37 = vand.u32 4294901760, %v4077_v36 }
 0x11a   : > { %v2493_v24 = vsub.f32 %v2424_v22, %v2492_v23  ;;  %v2873_v28 = vpop.permute.xlu0 %2872  ;;  %v4146_v38 = vsub.f32 %v4077_v36, %v4145_v37  ;;  %v4526_v42 = vpop.permute.xlu1 %4525 }
 0x11b   : > { %v2874_v29 = vsel %vm764_vm1, %v2873_v28, 0  ;;  %v4527_v43 = vsel %vm764_vm1, %v4526_v42, 0 }
 0x11c   : > { %v2494_v25 = vand.u32 4294901760, %v2493_v24  ;;  %v2942_v30 = vand.u32 4294901760, %v2874_v29  ;;  %v4147_v39 = vand.u32 4294901760, %v4146_v38  ;;  %v4595_v44 = vand.u32 4294901760, %v4527_v43 }
 0x11e   : > { %v2495_v26 = vsub.f32 %v2493_v24, %v2494_v25  ;;  %v2943_v31 = vsub.f32 %v2874_v29, %v2942_v30  ;;  %v4148_v40 = vsub.f32 %v4146_v38, %v4147_v39  ;;  %v4596_v45 = vsub.f32 %v4527_v43, %v4595_v44  ;;  %v5729_v59 = vpop.permute.xlu0 %5728 }
 0x11f   : > { %v5730_v60 = vsel %vm764_vm1, %v5729_v59, 0  ;;  %v6179_v3 = vpop.permute.xlu1 %6178 }
 0x120   : > { %v2496_v27 = vand.u32 4294901760, %v2495_v26  ;;  %v2944_v32 = vand.u32 4294901760, %v2943_v31  ;;  %v4149_v41 = vand.u32 4294901760, %v4148_v40  ;;  %v4597_v46 = vand.u32 4294901760, %v4596_v45  ;;  %v11138_v26 = vld [vmem:[%s11123_s12] sm:$0xff] }
 0x121   : > { %v5798_v61 = vand.u32 4294901760, %v5730_v60  ;;  %v6180_v5 = vsel %vm764_vm1, %v6179_v3, 0 }
 0x122   : > { %9207 = vmatmul.mubr.f32.vlgmr.msra.gmra.mrb[2].mxu1 %v2496_v27  ;;  %v2945_v33 = vsub.f32 %v2943_v31, %v2944_v32  ;;  %v4598_v47 = vsub.f32 %v4596_v45, %v4597_v46  ;;  %v11078_v6 = vand.u32 4294901760, %v6180_v5 }
 0x123   : > { %9210 = vmatpush3.msra.mxu1 %v10902_v18  ;;  %9211 = vmatprep.mubr.msk.f32.mxu1 %vm10542_vm0, %v10541_v0  ;;  %v5799_v62 = vsub.f32 %v5730_v60, %v5798_v61 }
 0x124   : > { %9214 = vmatprep.subr.mxu1 %v10541_v0  ;;  %v2946_v34 = vand.u32 4294901760, %v2945_v33  ;;  %v4599_v49 = vand.u32 4294901760, %v4598_v47  ;;  %v6249_v7 = vsub.f32 %v6180_v5, %v11078_v6 }
 0x125   : > { %v5800_v63 = vand.u32 4294901760, %v5799_v62 }
 0x126   : > { %v6250_v8 = vand.u32 4294901760, %v6249_v7 }
 0x127   : > { %v5801_v1 = vsub.f32 %v5799_v62, %v5800_v63 }
 0x128   : > { %v6251_v10 = vsub.f32 %v6249_v7, %v6250_v8 }
 0x129   : > { %v5802_v2 = vand.u32 4294901760, %v5801_v1 }
 0x12a   : > { %9212 = vmatmul.mubr.f32.vlgmr.msra.gmra.mrb[2].mxu1 %v2492_v23  ;;  %v6252_v11 = vand.u32 4294901760, %v6251_v10 }
 0x12b   : > { %9215 = vmatpush3.msra.mxu1 %v10890_v9  ;;  %9216 = vmatprep.mubr.msk.f32.mxu1 %vm10542_vm0, %v10541_v0 }
 0x12c   : > { %9219 = vmatprep.subr.mxu1 %v10541_v0 }
 0x132   : > { %9217 = vmatmul.mubr.f32.vlgmr.msra.gmra.mrb[2].mxu1 %v2493_v24  ;;  %v11134_v24 = vld [vmem:[%s11123_s12 + $0x8] sm:$0xff] }
 0x133   : > { %9220 = vmatpush3.msra.mxu1 %v10881_v4  ;;  %9221 = vmatprep.mubr.msk.f32.mxu1 %vm10542_vm0, %v10541_v0 }
 0x134   : > { %9224 = vmatprep.subr.mxu1 %v10541_v0 }
 0x13a   : > { %9222 = vmatmul.mubr.f32.vlgmr.msra.gmra.mrb[2].mxu1 %v2494_v25 }
 0x13b   : > { %9225 = vmatpush3.msra.mxu1 %v10896_v12  ;;  %9226 = vmatprep.mubr.msk.f32.mxu1 %vm10542_vm0, %v10541_v0 }
 0x13c   : > { %9229 = vmatprep.subr.mxu1 %v10541_v0 }
 0x142   : > { %9227 = vmatmul.mubr.f32.vlgmr.msra.gmra.mrb[2].mxu1 %v2492_v23 }
 0x143   : > { %9230 = vmatpush3.msra.mxu1 %v10881_v4  ;;  %9231 = vmatprep.mubr.msk.f32.mxu1 %vm10542_vm0, %v10541_v0 }
 0x144   : > { %9234 = vmatprep.subr.mxu1 %v10541_v0 }
 0x14a   : > { %9232 = vmatmul.mubr.f32.vlgmr.msra.gmra.mrb[2].mxu1 %v2492_v23 }
 0x14b   : > { %9235 = vmatpush3.msra.mxu1 %v10881_v4  ;;  %9236 = vmatprep.mubr.msk.f32.mxu1 %vm10542_vm0, %v10541_v0 }
 0x14c   : > { %9239 = vmatprep.subr.mxu1 %v10541_v0 }
 0x14e   : > { %9237 = vmatmul.mubr.f32.vlgmr.msra.gmra.mrb[4].mxu1 %v2946_v34 }
 0x14f   : > { %9240 = vmatpush3.msra.mxu1 %v10902_v18  ;;  %9241 = vmatprep.mubr.msk.f32.mxu1 %vm10542_vm0, %v10541_v0 }
 0x150   : > { %9244 = vmatprep.subr.mxu1 %v10541_v0 }
 0x156   : > { %9242 = vmatmul.mubr.f32.vlgmr.msra.gmra.mrb[4].mxu1 %v2942_v30 }
 0x157   : > { %9245 = vmatpush3.msra.mxu1 %v10890_v9  ;;  %9246 = vmatprep.mubr.msk.f32.mxu1 %vm10542_vm0, %v10541_v0 }
 0x158   : > { %9249 = vmatprep.subr.mxu1 %v10541_v0 }
 0x15e   : > { %9247 = vmatmul.mubr.f32.vlgmr.msra.gmra.mrb[4].mxu1 %v2943_v31 }
 0x15f   : > { %9250 = vmatpush3.msra.mxu1 %v10881_v4  ;;  %9251 = vmatprep.mubr.msk.f32.mxu1 %vm10542_vm0, %v10541_v0 }
 0x160   : > { %9254 = vmatprep.subr.mxu1 %v10541_v0 }
 0x166   : > { %9252 = vmatmul.mubr.f32.vlgmr.msra.gmra.mrb[4].mxu1 %v2944_v32  ;;  %v11148_v32 = vld [vmem:[%s11123_s12 + $0x10] sm:$0xff] }
 0x167   : > { %9255 = vmatpush3.msra.mxu1 %v10896_v12  ;;  %9256 = vmatprep.mubr.msk.f32.mxu1 %vm10542_vm0, %v10541_v0 }
 0x168   : > { %9259 = vmatprep.subr.mxu1 %v10541_v0 }
 0x16e   : > { %9257 = vmatmul.mubr.f32.vlgmr.msra.gmra.mrb[4].mxu1 %v2942_v30 }
 0x16f   : > { %9260 = vmatpush3.msra.mxu1 %v10881_v4  ;;  %9261 = vmatprep.mubr.msk.f32.mxu1 %vm10542_vm0, %v10541_v0 }
 0x170   : > { %9330 = vmatprep.subr.mxu1 %v10541_v0 }
 0x176   : > { %9262 = vmatmul.mubr.f32.vlgmr.msra.gmra.mrb[4].mxu1 %v2942_v30 }
 0x177   : > { %9331 = vmatpush3.msra.mxu1 %v10881_v4  ;;  %9332 = vmatprep.mubr.msk.f32.mxu1 %vm10542_vm0, %v10541_v0 }
 0x178   : > { %9335 = vmatprep.subr.mxu1 %v10541_v0 }
 0x17a   : > { %9333 = vmatmul.mubr.f32.vlgmr.msra.gmra.mrb[6].mxu1 %v4149_v41 }
 0x17b   : > { %9336 = vmatpush3.msra.mxu1 %v10902_v18  ;;  %9337 = vmatprep.mubr.msk.f32.mxu1 %vm10542_vm0, %v10541_v0 }
 0x17c   : > { %9340 = vmatprep.subr.mxu1 %v10541_v0 }
 0x182   : > { %9338 = vmatmul.mubr.f32.vlgmr.msra.gmra.mrb[6].mxu1 %v4145_v37 }
 0x183   : > { %9341 = vmatpush3.msra.mxu1 %v10890_v9  ;;  %9342 = vmatprep.mubr.msk.f32.mxu1 %vm10542_vm0, %v10541_v0 }
 0x184   : > { %9345 = vmatprep.subr.mxu1 %v10541_v0 }
 0x18a   : > { %9343 = vmatmul.mubr.f32.vlgmr.msra.gmra.mrb[6].mxu1 %v4146_v38 }
 0x18b   : > { %9346 = vmatpush3.msra.mxu1 %v10881_v4  ;;  %9347 = vmatprep.mubr.msk.f32.mxu1 %vm10542_vm0, %v10541_v0 }
 0x18c   : > { %9350 = vmatprep.subr.mxu1 %v10541_v0 }
 0x192   : > { %9348 = vmatmul.mubr.f32.vlgmr.msra.gmra.mrb[6].mxu1 %v4147_v39 }
 0x193   : > { %9351 = vmatpush3.msra.mxu1 %v10896_v12  ;;  %9352 = vmatprep.mubr.msk.f32.mxu1 %vm10542_vm0, %v10541_v0 }
 0x194   : > { %9355 = vmatprep.subr.mxu1 %v10541_v0 }
 0x19a   : > { %9353 = vmatmul.mubr.f32.vlgmr.msra.gmra.mrb[6].mxu1 %v4145_v37 }
 0x19b   : > { %9356 = vmatpush3.msra.mxu1 %v10881_v4  ;;  %9357 = vmatprep.mubr.msk.f32.mxu1 %vm10542_vm0, %v10541_v0 }
 0x19c   : > { %9360 = vmatprep.subr.mxu1 %v10541_v0 }
 0x1a2   : > { %9358 = vmatmul.mubr.f32.vlgmr.msra.gmra.mrb[6].mxu1 %v4145_v37 }
 0x1a3   : > { %9361 = vmatpush3.msra.mxu1 %v10881_v4  ;;  %9362 = vmatprep.mubr.msk.f32.mxu1 %vm10542_vm0, %v10541_v0 }
 0x1a4   : > { %9365 = vmatprep.subr.mxu1 %v10541_v0 }
 0x1a5   : > { %v11037_v53 = vpop.f32.mrb[0].mxu1 }
 0x1a6   : > { %9363 = vmatmul.mubr.f32.vlgmr.msra.gmra.mrb[8].mxu1 %v4599_v49  ;;  %v9137_v56 = vpop.f32.mrb[1].mxu1 }
 0x1a7   : > { %9366 = vmatpush3.msra.mxu1 %v10902_v18  ;;  %9367 = vmatprep.mubr.msk.f32.mxu1 %vm10542_vm0, %v10541_v0 }
 0x1a8   : > { %9370 = vmatprep.subr.mxu1 %v10541_v0 }
 0x1aa   : > { %v1210_v52 = vpop.f32.mrb[0].mxu0 }
 0x1ab   : > { %v1666_v54 = vrot.slane %v1210_v52, %v11031_v51  ;;  %v9107_v55 = vpop.f32.mrb[1].mxu0  ;;  %v1685_v58 = vrot.slane %v1210_v52, %v11041_v57 }
 0x1ad   : > { %1672 = vbcast.lane.b32.xlu1 %v1666_v54, 264  ;;  %1668 = vbcast.lane.b32.xlu0 %v1666_v54, 256 }
 0x1ae   : > { %9368 = vmatmul.mubr.f32.vlgmr.msra.gmra.mrb[8].mxu1 %v4595_v44 }
 0x1af   : > { %9371 = vmatpush3.msra.mxu1 %v10890_v9  ;;  %9372 = vmatprep.mubr.msk.f32.mxu1 %vm10542_vm0, %v10541_v0 }
 0x1b0   : > { %9375 = vmatprep.subr.mxu1 %v10541_v0 }
 0x1b1   : > { %1680 = vbcast.lane.b32.xlu1 %v1666_v54, 280  ;;  %1676 = vbcast.lane.b32.xlu0 %v1666_v54, 272 }
 0x1b5   : > { %1691 = vbcast.lane.b32.xlu1 %v1685_v58, 264  ;;  %1687 = vbcast.lane.b32.xlu0 %v1685_v58, 256 }
 0x1b6   : > { %9373 = vmatmul.mubr.f32.vlgmr.msra.gmra.mrb[8].mxu1 %v4596_v45 }
 0x1b7   : > { %9376 = vmatpush3.msra.mxu1 %v10881_v4  ;;  %9377 = vmatprep.mubr.msk.f32.mxu1 %vm10542_vm0, %v10541_v0 }
 0x1b8   : > { %9380 = vmatprep.subr.mxu1 %v10541_v0 }
 0x1b9   : > { %1699 = vbcast.lane.b32.xlu1 %v1685_v58, 280  ;;  %1695 = vbcast.lane.b32.xlu0 %v1685_v58, 272 }
 0x1be   : > { %9378 = vmatmul.mubr.f32.vlgmr.msra.gmra.mrb[8].mxu1 %v4597_v46 }
 0x1bf   : > { %9381 = vmatpush3.msra.mxu1 %v10896_v12  ;;  %9382 = vmatprep.mubr.msk.f32.mxu1 %vm10542_vm0, %v10541_v0 }
 0x1c0   : > { %9385 = vmatprep.subr.mxu1 %v10541_v0 }
 0x1c6   : > { %9383 = vmatmul.mubr.f32.vlgmr.msra.gmra.mrb[8].mxu1 %v4595_v44 }
 0x1c7   : > { %9386 = vmatpush3.msra.mxu1 %v10881_v4  ;;  %9387 = vmatprep.mubr.msk.f32.mxu1 %vm10542_vm0, %v10541_v0 }
 0x1c8   : > { %9456 = vmatprep.subr.mxu1 %v10541_v0 }
 0x1ce   : > { %9388 = vmatmul.mubr.f32.vlgmr.msra.gmra.mrb[8].mxu1 %v4595_v44 }
 0x1cf   : > { %9457 = vmatpush3.msra.mxu1 %v10881_v4  ;;  %9458 = vmatprep.mubr.msk.f32.mxu1 %vm10542_vm0, %v10541_v0 }
 0x1d0   : > { %9461 = vmatprep.subr.mxu1 %v10541_v0 }
 0x1d2   : > { %9459 = vmatmul.mubr.f32.vlgmr.msra.gmra.mrb[10].mxu1 %v5802_v2 }
 0x1d3   : > { %9462 = vmatpush3.msra.mxu1 %v10902_v18  ;;  %9463 = vmatprep.mubr.msk.f32.mxu1 %vm10542_vm0, %v10541_v0 }
 0x1d4   : > { %9466 = vmatprep.subr.mxu1 %v10541_v0 }
 0x1da   : > { %9464 = vmatmul.mubr.f32.vlgmr.msra.gmra.mrb[10].mxu1 %v5798_v61 }
 0x1db   : > { %9467 = vmatpush3.msra.mxu1 %v10890_v9  ;;  %9468 = vmatprep.mubr.msk.f32.mxu1 %vm10542_vm0, %v10541_v0 }
 0x1dc   : > { %9471 = vmatprep.subr.mxu1 %v10541_v0 }
 0x1e2   : > { %9469 = vmatmul.mubr.f32.vlgmr.msra.gmra.mrb[10].mxu1 %v5799_v62 }
 0x1e3   : > { %9472 = vmatpush3.msra.mxu1 %v10881_v4  ;;  %9473 = vmatprep.mubr.msk.f32.mxu1 %vm10542_vm0, %v10541_v0 }
 0x1e4   : > { %9476 = vmatprep.subr.mxu1 %v10541_v0 }
 0x1ea   : > { %9474 = vmatmul.mubr.f32.vlgmr.msra.gmra.mrb[10].mxu1 %v5800_v63 }
 0x1eb   : > { %9477 = vmatpush3.msra.mxu1 %v10896_v12  ;;  %9478 = vmatprep.mubr.msk.f32.mxu1 %vm10542_vm0, %v10541_v0 }
 0x1ec   : > { %9481 = vmatprep.subr.mxu1 %v10541_v0 }
 0x1f2   : > { %9479 = vmatmul.mubr.f32.vlgmr.msra.gmra.mrb[10].mxu1 %v5798_v61 }
 0x1f3   : > { %9482 = vmatpush3.msra.mxu1 %v10881_v4  ;;  %9483 = vmatprep.mubr.msk.f32.mxu1 %vm10542_vm0, %v10541_v0 }
 0x1f4   : > { %9486 = vmatprep.subr.mxu1 %v10541_v0 }
 0x1fa   : > { %9484 = vmatmul.mubr.f32.vlgmr.msra.gmra.mrb[10].mxu1 %v5798_v61 }
 0x1fb   : > { %9487 = vmatpush3.msra.mxu1 %v10881_v4  ;;  %9488 = vmatprep.mubr.msk.f32.mxu1 %vm10542_vm0, %v10541_v0 }
 0x1fc   : > { %9491 = vmatprep.subr.mxu1 %v10541_v0 }
 0x1fe   : > { %9489 = vmatmul.mubr.f32.vlgmr.msra.gmra.mrb[12].mxu1 %v6252_v11 }
 0x1ff   : > { %9492 = vmatpush3.msra.mxu1 %v10902_v18  ;;  %9493 = vmatprep.mubr.msk.f32.mxu1 %vm10542_vm0, %v10541_v0 }
 0x200   : > { %9496 = vmatprep.subr.mxu1 %v10541_v0 }
 0x206   : > { %9494 = vmatmul.mubr.f32.vlgmr.msra.gmra.mrb[12].mxu1 %v11078_v6 }
 0x207   : > { %9497 = vmatpush3.msra.mxu1 %v10890_v9  ;;  %9498 = vmatprep.mubr.msk.f32.mxu1 %vm10542_vm0, %v10541_v0  ;;  %v1708_v9 = vrot.slane %v11037_v53, %v11107_v16 }
 0x208   : > { %9501 = vmatprep.subr.mxu1 %v10541_v0 }
 0x209   : > { %v1716_v17 = vrot.slane %v1708_v9, %v11107_v16  ;;  %v1709_v19 = vcombine.high %v1708_v9, %v1708_v9 }
 0x20b   : > { %v1723_v28 = vrot.slane %v1709_v19, %v11107_v16 }
 0x20d   : > { %v11153_v36 = vrot.slane %v1723_v28, %v11031_v51 }
 0x20e   : > { %9499 = vmatmul.mubr.f32.vlgmr.msra.gmra.mrb[12].mxu1 %v6249_v7 }
 0x20f   : > { %9502 = vmatpush3.msra.mxu1 %v10881_v4  ;;  %9503 = vmatprep.mubr.msk.f32.mxu1 %vm10542_vm0, %v10541_v0 }
 0x210   : > { %9506 = vmatprep.subr.mxu1 %v10541_v0 }
 0x216   : > { %9504 = vmatmul.mubr.f32.vlgmr.msra.gmra.mrb[12].mxu1 %v6250_v8 }
 0x217   : > { %9507 = vmatpush3.msra.mxu1 %v10896_v12  ;;  %9508 = vmatprep.mubr.msk.f32.mxu1 %vm10542_vm0, %v10541_v0  ;;  %v11126_v12 = vrot.slane %v1716_v17, %v11031_v51 }
 0x218   : > { %9511 = vmatprep.subr.mxu1 %v10541_v0 }
 0x21d   : > { %v2868_v18 = vpop.f32.mrb[2].mxu1 }
 0x21e   : > { %v3325_v20 = vrot.slane %v2868_v18, %v11031_v51  ;;  %v9233_v21 = vpop.f32.mrb[3].mxu1  ;;  %9509 = vmatmul.mubr.f32.vlgmr.msra.gmra.mrb[12].mxu1 %v11078_v6  ;;  %v3344_v37 = vrot.slane %v2868_v18, %v11041_v57 }
 0x21f   : > { %v1673_v22 = vpop.permute.xlu1 %1672  ;;  %v1669_v23 = vpop.permute.xlu0 %1668  ;;  %9512 = vmatpush3.msra.mxu1 %v10881_v4  ;;  %9513 = vmatprep.mubr.msk.f32.mxu1 %vm10542_vm0, %v10541_v0  ;;  %v11145_v4 = vld [vmem:[%s11123_s12 + $0x18] sm:$0xff] }
 0x220   : > { %v1735_v25 = vmul.f32 %v11126_v12, %v1673_v22  ;;  %v1734_v27 = vmul.f32 %v11126_v12, %v1669_v23  ;;  %3331 = vbcast.lane.b32.xlu1 %v3325_v20, 264  ;;  %3327 = vbcast.lane.b32.xlu0 %v3325_v20, 256 }
 0x222   : > { %v1743_v29 = vmul.f32 %v1735_v25, %v11134_v24  ;;  %v1742_v30 = vmul.f32 %v1734_v27, %v11138_v26 }
 0x223   : > { %v1681_v31 = vpop.permute.xlu1 %1680  ;;  %v1677_v33 = vpop.permute.xlu0 %1676 }
 0x224   : > { %v1737_v34 = vmul.f32 %v11126_v12, %v1681_v31  ;;  %v1736_v35 = vmul.f32 %v11126_v12, %v1677_v33  ;;  %3339 = vbcast.lane.b32.xlu1 %v3325_v20, 280  ;;  %3335 = vbcast.lane.b32.xlu0 %v3325_v20, 272  ;;  %v1752_v40 = vsel %vm1750_vm2, %v1743_v29, -inf  ;;  %v1751_v41 = vsel %vm1750_vm2, %v1742_v30, -inf }
 0x226   : > { %v1745_v38 = vmul.f32 %v1737_v34, %v11145_v4  ;;  %v1744_v39 = vmul.f32 %v1736_v35, %v11148_v32  ;;  %9514 = vmatmul.mubr.f32.vlgmr.msra.gmra.mrb[12].mxu1 %v11078_v6 }
 0x227   : > { %v1692_v42 = vpop.permute.xlu1 %1691  ;;  %v1688_v43 = vpop.permute.xlu0 %1687  ;;  %9590 = vmatprep.mubr.msk.f32.mxu1 %vm10542_vm0, %v10541_v0 }
 0x228   : > { %v1755_v44 = vsel %vm1750_vm2, %v1745_v38, -inf  ;;  %v1753_v45 = vsel %vm1750_vm2, %v1744_v39, -inf  ;;  %v1739_v46 = vmul.f32 %v11153_v36, %v1692_v42  ;;  %v1738_v47 = vmul.f32 %v11153_v36, %v1688_v43  ;;  %3350 = vbcast.lane.b32.xlu1 %v3344_v37, 264  ;;  %3346 = vbcast.lane.b32.xlu0 %v3344_v37, 256 }
 0x229   : > { %v1756_v49 = vmax.f32 %v1752_v40, %v1755_v44  ;;  %v1754_v52 = vmax.f32 %v1751_v41, %v1753_v45 }
 0x22a   : > { %v1747_v54 = vmul.f32 %v1739_v46, %v11134_v24  ;;  %v1746_v58 = vmul.f32 %v1738_v47, %v11138_v26 }
 0x22b   : > { %v1757_v53 = vmax.f32 %v1754_v52, %v1756_v49  ;;  %v1700_v55 = vpop.permute.xlu1 %1699  ;;  %v1696_v56 = vpop.permute.xlu0 %1695 }
 0x22c   : > { %v1741_v59 = vmul.f32 %v11153_v36, %v1700_v55  ;;  %v1740_v60 = vmul.f32 %v11153_v36, %v1696_v56  ;;  %3358 = vbcast.lane.b32.xlu1 %v3344_v37, 280  ;;  %3354 = vbcast.lane.b32.xlu0 %v3344_v37, 272  ;;  %v1765_v2 = vsel %vm1750_vm2, %v1747_v54, -inf  ;;  %v1764_v3 = vsel %vm1750_vm2, %v1746_v58, -inf }
 0x22d   : > { %v1758_v61 = vrot.slane %v1757_v53, 4 }
 0x22e   : > { %v1749_v62 = vmul.f32 %v1741_v59, %v11145_v4  ;;  %v1748_v63 = vmul.f32 %v1740_v60, %v11148_v32 }
 0x22f   : > { %v1759_v1 = vmax.f32 %v1757_v53, %v1758_v61 }
 0x230   : > { %v1768_v5 = vsel %vm1750_vm2, %v1749_v62, -inf  ;;  %v1766_v6 = vsel %vm1750_vm2, %v1748_v63, -inf }
 0x231   : > { %v1760_v7 = vrot.slane %v1759_v1, 2  ;;  %v1769_v8 = vmax.f32 %v1765_v2, %v1768_v5  ;;  %v1767_v10 = vmax.f32 %v1764_v3, %v1766_v6 }
 0x233   : > { %v1761_v11 = vmax.f32 %v1759_v1, %v1760_v7  ;;  %v1770_v13 = vmax.f32 %v1767_v10, %v1769_v8 }
 0x235   : > { %v1762_v14 = vrot.slane %v1761_v11, 1  ;;  %v1771_v15 = vrot.slane %v1770_v13, 4 }
 0x237   : > { %v1763_v9 = vmax.f32 %v1761_v11, %v1762_v14  ;;  %v1772_v17 = vmax.f32 %v1770_v13, %v1771_v15 }
 0x239   : > { %v1777_v18 = vsub.f32 %v1742_v30, %v1763_v9  ;;  %v1778_v19 = vsub.f32 %v1743_v29, %v1763_v9  ;;  %v1779_v20 = vsub.f32 %v1744_v39, %v1763_v9  ;;  %v1780_v21 = vsub.f32 %v1745_v38, %v1763_v9 }
 0x23a   : > { %v1773_v22 = vrot.slane %v1772_v17, 2 }
 0x23b   : > { %v1785_v23 = vmul.f32 1.442695, %v1777_v18  ;;  %v1787_v25 = vmul.f32 1.442695, %v1778_v19  ;;  %v1789_v27 = vmul.f32 1.442695, %v1779_v20 }
 0x23c   : > { %v1791_v28 = vmul.f32 1.442695, %v1780_v21  ;;  %v1774_v31 = vmax.f32 %v1772_v17, %v1773_v22 }
 0x23d   : > { %10232 = vpow2.f32 %v1785_v23 }
 0x23e   : > { %10234 = vpow2.f32 %v1787_v25  ;;  %v1775_v33 = vrot.slane %v1774_v31, 1 }
 0x23f   : > { %10236 = vpow2.f32 %v1789_v27 }
 0x240   : > { %10238 = vpow2.f32 %v1791_v28  ;;  %v1776_v34 = vmax.f32 %v1774_v31, %v1775_v33  ;;  %v11196_v31 = vld [vmem:[%s11191_s23 + $0x8] sm:$0xff]  ;;  %v11199_v33 = vld [vmem:[%s11191_s23] sm:$0xff] }
 0x242   : > { %v1781_v35 = vsub.f32 %v1746_v58, %v1776_v34  ;;  %v1782_v37 = vsub.f32 %v1747_v54, %v1776_v34  ;;  %v1783_v40 = vsub.f32 %v1748_v63, %v1776_v34  ;;  %v1784_v41 = vsub.f32 %v1749_v62, %v1776_v34 }
 0x244   : > { %v1793_v30 = vmul.f32 1.442695, %v1781_v35  ;;  %v1795_v29 = vmul.f32 1.442695, %v1782_v37  ;;  %v1797_v39 = vmul.f32 1.442695, %v1783_v40 }
 0x245   : > { %v1799_v38 = vmul.f32 1.442695, %v1784_v41  ;;  %v11205_v40 = vld [vmem:[%s11191_s23 + $0x10] sm:$0xff] }
 0x246   : > { %10240 = vpow2.f32 %v1793_v30 }
 0x247   : > { %v10233_v42 = vpop.eup %10232  ;;  %10242 = vpow2.f32 %v1795_v29 }
 0x248   : > { %v10235_v43 = vpop.eup %10234  ;;  %v1801_v44 = vsel %vm1750_vm2, %v10233_v42, 0.0  ;;  %10244 = vpow2.f32 %v1797_v39 }
 0x249   : > { %v10237_v45 = vpop.eup %10236  ;;  %v1802_v46 = vsel %vm1750_vm2, %v10235_v43, 0.0  ;;  %10246 = vpow2.f32 %v1799_v38  ;;  %v11179_v47 = vpop.f32.mrb[4].mxu1 }
 0x24a   : > { %v10239_v49 = vpop.eup %10238  ;;  %v1803_v52 = vadd.f32 %v1802_v46, %v1801_v44  ;;  %v9263_v53 = vpop.f32.mrb[5].mxu1  ;;  %v1804_v54 = vsel %vm1750_vm2, %v10237_v45, 0.0 }
 0x24b   : > { %v1806_v56 = vsel %vm1750_vm2, %v10239_v49, 0.0 }
 0x24c   : > { %v1805_v55 = vadd.f32 %v1804_v54, %v1803_v52 }
 0x24e   : > { %v1807_v58 = vadd.f32 %v1806_v56, %v1805_v55 }
 0x250   : > { %v10241_v59 = vpop.eup %10240  ;;  %v1808_v60 = vrot.slane %v1807_v58, 4 }
 0x251   : > { %v10243_v61 = vpop.eup %10242  ;;  %v1814_v62 = vsel %vm1750_vm2, %v10241_v59, 0.0 }
 0x252   : > { %v10245_v63 = vpop.eup %10244  ;;  %v1809_v1 = vadd.f32 %v1808_v60, %v1807_v58  ;;  %v1815_v2 = vsel %vm1750_vm2, %v10243_v61, 0.0 }
 0x253   : > { %v10247_v3 = vpop.eup %10246  ;;  %v1816_v5 = vadd.f32 %v1815_v2, %v1814_v62  ;;  %v1817_v7 = vsel %vm1750_vm2, %v10245_v63, 0.0  ;;  %v3367_v2 = vrot.slane %v11179_v47, %v11107_v16 }
 0x254   : > { %v1810_v6 = vrot.slane %v1809_v1, 2  ;;  %v1819_v11 = vsel %vm1750_vm2, %v10247_v3, 0.0 }
 0x255   : > { %v1818_v8 = vadd.f32 %v1817_v7, %v1816_v5  ;;  %v3375_v5 = vrot.slane %v3367_v2, %v11107_v16 }
 0x256   : > { %v1811_v10 = vadd.f32 %v1810_v6, %v1809_v1  ;;  %v3368_v6 = vcombine.high %v3367_v2, %v3367_v2 }
 0x257   : > { %v1820_v13 = vadd.f32 %v1819_v11, %v1818_v8  ;;  %v11230_v7 = vrot.slane %v3375_v5, %v11031_v51 }
 0x258   : > { %v1812_v14 = vrot.slane %v1811_v10, 1 }
 0x259   : > { %v1821_v15 = vrot.slane %v1820_v13, 4 }
 0x25a   : > { %v1813_v9 = vadd.f32 %v1812_v14, %v1811_v10  ;;  %v3382_v14 = vrot.slane %v3368_v6, %v11107_v16 }
 0x25b   : > { %v1822_v17 = vadd.f32 %v1821_v15, %v1820_v13 }
 0x25c   : > { %10248 = vrcp.f32 %v1813_v9 }
 0x25d   : > { %v1823_v18 = vrot.slane %v1822_v17, 2 }
 0x25f   : > { %v1824_v19 = vadd.f32 %v1823_v18, %v1822_v17 }
 0x261   : > { %v1825_v20 = vrot.slane %v1824_v19, 1 }
 0x263   : > { %v1826_v21 = vadd.f32 %v1825_v20, %v1824_v19  ;;  %v11240_v20 = vrot.slane %v3382_v14, %v11031_v51 }
 0x265   : > { %10250 = vrcp.f32 %v1826_v21 }
 0x266   : > { %v10249_v22 = vpop.eup %10248 }
 0x267   : > { %v1830_v23 = vmul.f32 %v10249_v22, %v10235_v43  ;;  %v1829_v25 = vmul.f32 %v10249_v22, %v10233_v42  ;;  %v1831_v27 = vmul.f32 %v10249_v22, %v10237_v45  ;;  %v11193_v28 = vmul.f32 %v10249_v22, %v10239_v49 }
 0x269   : > { %v1838_v34 = vmul.f32 %v1830_v23, %v11126_v12  ;;  %v1837_v35 = vmul.f32 %v1829_v25, %v11126_v12  ;;  %v1839_v37 = vmul.f32 %v1831_v27, %v11126_v12  ;;  %v1840_v14 = vmul.f32 %v11193_v28, %v11126_v12 }
 0x26b   : > { %v1846_v41 = vmul.f32 %v1838_v34, %v11196_v31  ;;  %v1845_v30 = vmul.f32 %v1837_v35, %v11199_v33  ;;  %v1847_v38 = vmul.f32 %v1839_v37, %v11205_v40 }
 0x26d   : > { %v1856_v29 = vsel %vm1750_vm2, %v1846_v41, 0.0  ;;  %v1853_v39 = vsel %vm1750_vm2, %v1845_v30, 0.0  ;;  %v1859_v46 = vsel %vm1750_vm2, %v1847_v38, 0.0 }
 0x26e   : > { %1857 = vadd.xlane.f32.xlu1 %v1856_v29  ;;  %1854 = vadd.xlane.f32.xlu0 %v1853_v39 }
 0x26f   : > { %v10251_v42 = vpop.eup %10250 }
 0x270   : > { %v1833_v43 = vmul.f32 %v10251_v42, %v10241_v59  ;;  %v1834_v44 = vmul.f32 %v10251_v42, %v10243_v61  ;;  %v11212_v45 = vmul.f32 %v10251_v42, %v10247_v3  ;;  %v1835_v53 = vmul.f32 %v10251_v42, %v10245_v63 }
 0x272   : > { %1860 = vadd.xlane.f32.xlu1 %v1859_v46  ;;  %v1841_v49 = vmul.f32 %v1833_v43, %v11153_v36  ;;  %v1842_v52 = vmul.f32 %v1834_v44, %v11153_v36  ;;  %v1843_v59 = vmul.f32 %v1835_v53, %v11153_v36 }
 0x274   : > { %v1849_v54 = vmul.f32 %v1841_v49, %v11199_v33  ;;  %v1850_v60 = vmul.f32 %v1842_v52, %v11196_v31  ;;  %v1851_v62 = vmul.f32 %v1843_v59, %v11205_v40 }
 0x275   : > { %v4521_v55 = vpop.f32.mrb[6].mxu1 }
 0x276   : > { %v1865_v56 = vsel %vm1750_vm2, %v1849_v54, 0.0  ;;  %v9359_v58 = vpop.f32.mrb[7].mxu1  ;;  %v1868_v61 = vsel %vm1750_vm2, %v1850_v60, 0.0  ;;  %v1871_v1 = vsel %vm1750_vm2, %v1851_v62, 0.0  ;;  %v4978_v63 = vrot.slane %v4521_v55, %v11031_v51 }
 0x277   : > { %1866 = vadd.xlane.f32.xlu0 %v1865_v56  ;;  %v4997_v3 = vrot.slane %v4521_v55, %v11041_v57 }
 0x27b   : > { %1869 = vadd.xlane.f32.xlu0 %v1868_v61 }
 0x27f   : > { %1872 = vadd.xlane.f32.xlu0 %v1871_v1 }
 0x283   : > { %4984 = vbcast.lane.b32.xlu1 %v4978_v63, 264 }
 0x287   : > { %4992 = vbcast.lane.b32.xlu1 %v4978_v63, 280 }
 0x28b   : > { %5003 = vbcast.lane.b32.xlu1 %v4997_v3, 264 }
 0x28f   : > { %5011 = vbcast.lane.b32.xlu1 %v4997_v3, 280 }
 0x292   : > { %v3332_v8 = vpop.permute.xlu1 %3331  ;;  %v3328_v10 = vpop.permute.xlu0 %3327 }
 0x293   : > { %v3394_v11 = vmul.f32 %v11230_v7, %v3332_v8  ;;  %v3393_v13 = vmul.f32 %v11230_v7, %v3328_v10 }
 0x295   : > { %4980 = vbcast.lane.b32.xlu0 %v4978_v63, 256  ;;  %v3402_v47 = vmul.f32 %v3394_v11, %v11134_v24  ;;  %v3401_v15 = vmul.f32 %v3393_v13, %v11138_v26 }
 0x296   : > { %v3340_v9 = vpop.permute.xlu1 %3339  ;;  %v3336_v17 = vpop.permute.xlu0 %3335 }
 0x297   : > { %v3396_v18 = vmul.f32 %v11230_v7, %v3340_v9  ;;  %v3395_v19 = vmul.f32 %v11230_v7, %v3336_v17  ;;  %v3410_v23 = vsel %vm1750_vm2, %v3402_v47, -inf  ;;  %v3409_v25 = vsel %vm1750_vm2, %v3401_v15, -inf  ;;  %v11265_v9 = vld [vmem:[%s11191_s23 + $0x18] sm:$0xff] }
 0x299   : > { %v3404_v21 = vmul.f32 %v3396_v18, %v11145_v4  ;;  %v3403_v22 = vmul.f32 %v3395_v19, %v11148_v32  ;;  %4988 = vbcast.lane.b32.xlu0 %v4978_v63, 272 }
 0x29a   : > { %v3351_v27 = vpop.permute.xlu1 %3350  ;;  %v3347_v34 = vpop.permute.xlu0 %3346 }
 0x29b   : > { %v3413_v35 = vsel %vm1750_vm2, %v3404_v21, -inf  ;;  %v3411_v37 = vsel %vm1750_vm2, %v3403_v22, -inf  ;;  %v3398_v41 = vmul.f32 %v11240_v20, %v3351_v27  ;;  %v3397_v30 = vmul.f32 %v11240_v20, %v3347_v34 }
 0x29c   : > { %v3414_v29 = vmax.f32 %v3410_v23, %v3413_v35  ;;  %v3412_v39 = vmax.f32 %v3409_v25, %v3411_v37  ;;  %v1848_v34 = vmul.f32 %v1840_v14, %v11265_v9 }
 0x29d   : > { %4999 = vbcast.lane.b32.xlu0 %v4997_v3, 256  ;;  %v3406_v44 = vmul.f32 %v3398_v41, %v11134_v24  ;;  %v3405_v46 = vmul.f32 %v3397_v30, %v11138_v26 }
 0x29e   : > { %v3415_v38 = vmax.f32 %v3412_v39, %v3414_v29  ;;  %v3359_v42 = vpop.permute.xlu1 %3358  ;;  %v3355_v43 = vpop.permute.xlu0 %3354  ;;  %v1862_v29 = vsel %vm1750_vm2, %v1848_v34, 0.0 }
 0x29f   : > { %v3400_v49 = vmul.f32 %v11240_v20, %v3359_v42  ;;  %v3399_v52 = vmul.f32 %v11240_v20, %v3355_v43  ;;  %v3423_v59 = vsel %vm1750_vm2, %v3406_v44, -inf  ;;  %v3422_v61 = vsel %vm1750_vm2, %v3405_v46, -inf }
 0x2a0   : > { %v3416_v53 = vrot.slane %v3415_v38, 4 }
 0x2a1   : > { %v3408_v54 = vmul.f32 %v3400_v49, %v11145_v4  ;;  %v3407_v55 = vmul.f32 %v3399_v52, %v11148_v32  ;;  %5007 = vbcast.lane.b32.xlu0 %v4997_v3, 272  ;;  %v11256_v56 = vpop.f32.mrb[8].mxu1 }
 0x2a2   : > { %v3417_v58 = vmax.f32 %v3415_v38, %v3416_v53  ;;  %v9389_v60 = vpop.f32.mrb[9].mxu1 }
 0x2a3   : > { %v3426_v62 = vsel %vm1750_vm2, %v3408_v54, -inf  ;;  %v3424_v1 = vsel %vm1750_vm2, %v3407_v55, -inf }
 0x2a4   : > { %v3418_v63 = vrot.slane %v3417_v58, 2  ;;  %v3427_v2 = vmax.f32 %v3423_v59, %v3426_v62  ;;  %v3425_v5 = vmax.f32 %v3422_v61, %v3424_v1 }
 0x2a6   : > { %v3419_v6 = vmax.f32 %v3417_v58, %v3418_v63  ;;  %v3428_v8 = vmax.f32 %v3425_v5, %v3427_v2 }
 0x2a8   : > { %v3420_v10 = vrot.slane %v3419_v6, 1  ;;  %v3429_v3 = vrot.slane %v3428_v8, 4 }
 0x2aa   : > { %v3421_v11 = vmax.f32 %v3419_v6, %v3420_v10  ;;  %v3430_v13 = vmax.f32 %v3428_v8, %v3429_v3 }
 0x2ac   : > { %v3435_v17 = vsub.f32 %v3401_v15, %v3421_v11  ;;  %v3436_v18 = vsub.f32 %v3402_v47, %v3421_v11  ;;  %v3437_v19 = vsub.f32 %v3403_v22, %v3421_v11  ;;  %v3431_v23 = vrot.slane %v3430_v13, 2 }
 0x2ad   : > { %v3438_v37 = vsub.f32 %v3404_v21, %v3421_v11  ;;  %v1844_v21 = vmul.f32 %v11212_v45, %v11153_v36 }
 0x2ae   : > { %v3443_v25 = vmul.f32 1.442695, %v3435_v17  ;;  %v3445_v27 = vmul.f32 1.442695, %v3436_v18  ;;  %v3432_v35 = vmax.f32 %v3430_v13, %v3431_v23  ;;  %v3447_v41 = vmul.f32 1.442695, %v3437_v19 }
 0x2af   : > { %v3449_v12 = vmul.f32 1.442695, %v3438_v37  ;;  %v760_v37 = vld [vmem:[%s12104_s5] sm:$0xff] }
 0x2b0   : > { %10252 = vpow2.f32 %v3443_v25  ;;  %v3433_v30 = vrot.slane %v3432_v35, 1 }
 0x2b1   : > { %10254 = vpow2.f32 %v3445_v27 }
 0x2b2   : > { %v3434_v39 = vmax.f32 %v3432_v35, %v3433_v30  ;;  %10256 = vpow2.f32 %v3447_v41  ;;  %v761_v41 = vld [vmem:[%s12104_s5 + $0x8] sm:$0xff] }
 0x2b3   : > { %1863 = vadd.xlane.f32.xlu1 %v1862_v29  ;;  %10258 = vpow2.f32 %v3449_v12  ;;  %v1939_v12 = vand.u32 4294901760, %v761_v41 }
 0x2b4   : > { %v3439_v28 = vsub.f32 %v3405_v46, %v3434_v39  ;;  %v3440_v47 = vsub.f32 %v3406_v44, %v3434_v39  ;;  %v3441_v15 = vsub.f32 %v3407_v55, %v3434_v39  ;;  %v3442_v22 = vsub.f32 %v3408_v54, %v3434_v39 }
 0x2b5   : > { %v1852_v44 = vmul.f32 %v1844_v21, %v11265_v9  ;;  %v1936_v39 = vand.u32 4294901760, %v760_v37 }
 0x2b6   : > { %v3451_v38 = vmul.f32 1.442695, %v3439_v28  ;;  %v3453_v42 = vmul.f32 1.442695, %v3440_v47  ;;  %v3455_v43 = vmul.f32 1.442695, %v3441_v15 }
 0x2b7   : > { %v3457_v49 = vmul.f32 1.442695, %v3442_v22  ;;  %v1874_v45 = vsel %vm1750_vm2, %v1852_v44, 0.0  ;;  %v11313_v47 = vpack.c.bf16 %v1939_v12, %v1936_v39  ;;  %v2016_v15 = vsub.f32 %v760_v37, %v1936_v39 }
 0x2b8   : > { %10260 = vpow2.f32 %v3451_v38  ;;  %v10547_v22 = vmov 0.0|0.0   ;;  %v762_v38 = vld [vmem:[%s12104_s5 + $0x10] sm:$0xff] }
 0x2b9   : > { %10262 = vpow2.f32 %v3453_v42  ;;  %9762 = vmatprep.subr.bf16.mxu0 %v10547_v22  ;;  %v763_v42 = vld [vmem:[%s12104_s5 + $0x18] sm:$0xff]  ;;  %9906 = vmatprep.subr.bf16.mxu1 %v10547_v22  ;;  %v2017_v44 = vand.u32 4294901760, %v2016_v15 }
 0x2ba   : > { %v11271_v52 = vpop.eup %10252  ;;  %10264 = vpow2.f32 %v3455_v43  ;;  %v2023_v43 = vsub.f32 %v761_v41, %v1939_v12  ;;  %9764 = vmatpush3.bf16.msra.mxu0 %v11313_v47  ;;  %v11339_v41 = vand.u32 127, %v1663_v48 }
 0x2bb   : > { %v11273_v53 = vpop.eup %10254  ;;  %v3459_v46 = vsel %vm1750_vm2, %v11271_v52, 0.0  ;;  %10266 = vpow2.f32 %v3457_v49  ;;  %v1942_v49 = vand.u32 4294901760, %v762_v38  ;;  %9765 = vmatprep.subr.bf16.mxu0 %v10547_v22 }
 0x2bc   : > { %v3460_v54 = vsel %vm1750_vm2, %v11273_v53, 0.0  ;;  %v11280_v55 = vpop.eup %10256  ;;  %v1891_v39 = vadd.s32 4294967288, %v11339_v41 }
 0x2bd   : > { %v3461_v36 = vadd.f32 %v3460_v54, %v3459_v46  ;;  %v3462_v58 = vsel %vm1750_vm2, %v11280_v55, 0.0  ;;  %v11285_v60 = vpop.eup %10258  ;;  %v1945_v46 = vand.u32 4294901760, %v763_v42  ;;  %v2024_v54 = vand.u32 4294901760, %v2023_v43 }
 0x2be   : > { %v3464_v2 = vsel %vm1750_vm2, %v11285_v60, 0.0 }
 0x2bf   : > { %v3463_v59 = vadd.f32 %v3462_v58, %v3461_v36  ;;  %v11325_v36 = vpack.c.bf16 %v1945_v46, %v1942_v49  ;;  %v2025_v58 = vsub.f32 %v2023_v43, %v2024_v54 }
 0x2c0   : > { %1875 = vadd.xlane.f32.xlu0 %v1874_v45  ;;  %v2018_v45 = vsub.f32 %v2016_v15, %v2017_v44 }
 0x2c1   : > { %v3465_v8 = vadd.f32 %v3464_v2, %v3463_v59  ;;  %v2030_v59 = vsub.f32 %v762_v38, %v1942_v49  ;;  %9767 = vmatpush3.bf16.msra.mxu0 %v11325_v36  ;;  %v11347_v38 = vsub.s32 %v1891_v39, %v11027_v50  ;;  %v5020_v39 = vrot.slane %v11256_v56, %v11107_v16 }
 0x2c2   : > { %v11287_v61 = vpop.eup %10260  ;;  %9768 = vmatprep.subr.bf16.mxu0 %v10547_v22 }
 0x2c3   : > { %v11289_v62 = vpop.eup %10262  ;;  %v3472_v1 = vsel %vm1750_vm2, %v11287_v61, 0.0  ;;  %v3466_v14 = vrot.slane %v3465_v8, 4 }
 0x2c4   : > { %v11293_v63 = vpop.eup %10264  ;;  %v3473_v5 = vsel %vm1750_vm2, %v11289_v62, 0.0 }
 0x2c5   : > { %v11299_v6 = vpop.eup %10266  ;;  %v3474_v10 = vadd.f32 %v3473_v5, %v3472_v1  ;;  %v3475_v3 = vsel %vm1750_vm2, %v11293_v63, 0.0  ;;  %v3467_v19 = vadd.f32 %v3466_v14, %v3465_v8  ;;  %v2019_v5 = vand.u32 4294901760, %v2018_v45 }
 0x2c6   : > { %v3477_v13 = vsel %vm1750_vm2, %v11299_v6, 0.0  ;;  %v2026_v8 = vand.u32 4294901760, %v2025_v58 }
 0x2c7   : > { %v3476_v11 = vadd.f32 %v3475_v3, %v3474_v10  ;;  %v3468_v34 = vrot.slane %v3467_v19, 2  ;;  %v2031_v10 = vand.u32 4294901760, %v2030_v59  ;;  %v2037_v3 = vsub.f32 %v763_v42, %v1945_v46 }
 0x2c9   : > { %v3478_v17 = vadd.f32 %v3477_v13, %v3476_v11  ;;  %v3469_v30 = vadd.f32 %v3468_v34, %v3467_v19  ;;  %v11329_v11 = vpack.c.bf16 %v2026_v8, %v2019_v5  ;;  %v2032_v13 = vsub.f32 %v2030_v59, %v2031_v10 }
 0x2ca   : > { %v2038_v14 = vand.u32 4294901760, %v2037_v3 }
 0x2cb   : > { %v3479_v23 = vrot.slane %v3478_v17, 4  ;;  %v3470_v21 = vrot.slane %v3469_v30, 1 }
 0x2cc   : > { %v2039_v19 = vsub.f32 %v2037_v3, %v2038_v14 }
 0x2cd   : > { %v6174_v18 = vpop.f32.mrb[10].mxu1  ;;  %v3480_v35 = vadd.f32 %v3479_v23, %v3478_v17  ;;  %v3471_v1 = vadd.f32 %v3470_v21, %v3469_v30  ;;  %v11357_v21 = vpack.c.bf16 %v2024_v54, %v2017_v44  ;;  %v11367_v54 = vpack.c.bf16 %v2038_v14, %v2031_v10 }
 0x2ce   : > { %v6631_v25 = vrot.slane %v6174_v18, %v11031_v51  ;;  %v9485_v27 = vpop.f32.mrb[11].mxu1  ;;  %v6650_v28 = vrot.slane %v6174_v18, %v11041_v57  ;;  %v2033_v18 = vand.u32 4294901760, %v2032_v13  ;;  %v2040_v23 = vand.u32 4294901760, %v2039_v19 }
 0x2cf   : > { %v3481_v29 = vrot.slane %v3480_v35, 2  ;;  %10268 = vrcp.f32 %v3471_v1  ;;  %v11333_v27 = vpack.c.bf16 %v2023_v43, %v2016_v15 }
 0x2d0   : > { %6633 = vbcast.lane.b32.xlu1 %v6631_v25, 256 }
 0x2d1   : > { %v3482_v57 = vadd.f32 %v3481_v29, %v3480_v35  ;;  %v11335_v35 = vpack.c.bf16 %v2037_v3, %v2030_v59 }
 0x2d3   : > { %v3483_v2 = vrot.slane %v3482_v57, 1 }
 0x2d4   : > { %6641 = vbcast.lane.b32.xlu1 %v6631_v25, 272 }
 0x2d5   : > { %v3484_v17 = vadd.f32 %v3483_v2, %v3482_v57 }
 0x2d6   : > { %6637 = vbcast.lane.b32.xlu0 %v6631_v25, 264 }
 0x2d7   : > { %10270 = vrcp.f32 %v3484_v17 }
 0x2d8   : > { %6645 = vbcast.lane.b32.xlu1 %v6631_v25, 280  ;;  %v11331_v25 = vpack.c.bf16 %v2040_v23, %v2033_v18 }
 0x2d9   : > { %v10269_v34 = vpop.eup %10268 }
 0x2da   : > { %6652 = vbcast.lane.b32.xlu0 %v6650_v28, 256  ;;  %v3487_v37 = vmul.f32 %v10269_v34, %v11271_v52  ;;  %v3488_v15 = vmul.f32 %v10269_v34, %v11273_v53  ;;  %v11351_v52 = vsub.s32 %v11339_v41, %v11027_v50  ;;  %v3489_v58 = vmul.f32 %v10269_v34, %v11280_v55 }
 0x2db   : > { %v3490_v8 = vmul.f32 %v10269_v34, %v11285_v60 }
 0x2dc   : > { %6656 = vbcast.lane.b32.xlu1 %v6650_v28, 264  ;;  %v3495_v29 = vmul.f32 %v3487_v37, %v11230_v7  ;;  %v3496_v46 = vmul.f32 %v3488_v15, %v11230_v7  ;;  %v3497_v55 = vmul.f32 %v3489_v58, %v11230_v7 }
 0x2dd   : > { %v3498_v23 = vmul.f32 %v3490_v8, %v11230_v7 }
 0x2de   : > { %6660 = vbcast.lane.b32.xlu0 %v6650_v28, 272  ;;  %v3505_v19 = vmul.f32 %v3497_v55, %v11205_v40 }
 0x2e0   : > { %6664 = vbcast.lane.b32.xlu1 %v6650_v28, 280  ;;  %v3503_v28 = vmul.f32 %v3495_v29, %v11199_v33 }
 0x2e1   : > { %v10271_v30 = vpop.eup %10270 }
 0x2e2   : > { %v3491_v12 = vmul.f32 %v10271_v30, %v11287_v61  ;;  %v3492_v42 = vmul.f32 %v10271_v30, %v11289_v62  ;;  %v3511_v53 = vsel %vm1750_vm2, %v3503_v28, 0.0  ;;  %v3493_v45 = vmul.f32 %v10271_v30, %v11293_v63 }
 0x2e3   : > { %v3504_v63 = vmul.f32 %v3496_v46, %v11196_v31  ;;  %v3494_v10 = vmul.f32 %v10271_v30, %v11299_v6  ;;  %v3517_v6 = vsel %vm1750_vm2, %v3505_v19, 0.0  ;;  %v3506_v30 = vmul.f32 %v3498_v23, %v11265_v9 }
 0x2e4   : > { %v3499_v48 = vmul.f32 %v3491_v12, %v11240_v20  ;;  %v3500_v44 = vmul.f32 %v3492_v42, %v11240_v20  ;;  %v3501_v17 = vmul.f32 %v3493_v45, %v11240_v20 }
 0x2e5   : > { %v3514_v18 = vsel %vm1750_vm2, %v3504_v63, 0.0  ;;  %v3502_v34 = vmul.f32 %v3494_v10, %v11240_v20 }
 0x2e6   : > { %v3507_v1 = vmul.f32 %v3499_v48, %v11199_v33  ;;  %v3508_v13 = vmul.f32 %v3500_v44, %v11196_v31  ;;  %v3509_v60 = vmul.f32 %v3501_v17, %v11205_v40  ;;  %v5028_v48 = vrot.slane %v5020_v39, %v11107_v16 }
 0x2e7   : > { %v3510_v15 = vmul.f32 %v3502_v34, %v11265_v9 }
 0x2e8   : > { %v3523_v3 = vsel %vm1750_vm2, %v3507_v1, 0.0  ;;  %v3526_v29 = vsel %vm1750_vm2, %v3508_v13, 0.0  ;;  %v3529_v7 = vsel %vm1750_vm2, %v3509_v60, 0.0  ;;  %v11404_v46 = vrot.slane %v5028_v48, %v11031_v51 }
 0x2f9   : > { %v11355_v43 = vpop.f32.mrb[12].mxu1 }
 0x2fa   : > { %v9515_v61 = vpop.f32.mrb[13].mxu1 }
 0x2fb   : > { %v1858_v57 = vpop.xlane.xlu1 %1857  ;;  %v1855_v49 = vpop.xlane.xlu0 %1854  ;;  %v3520_v61 = vsel %vm1750_vm2, %v3506_v30, 0.0 }
 0x2fc   : > { %v1895_v59 = vrot.slane %v1858_v57, %v11347_v38  ;;  %v1890_v62 = vrot.slane %v1855_v49, %v11351_v52  ;;  %v3532_v49 = vsel %vm1750_vm2, %v3510_v15, 0.0 }
 0x2fd   : > { %3512 = vadd.xlane.f32.xlu0 %v3511_v53  ;;  %v5021_v53 = vcombine.high %v5020_v39, %v5020_v39 }
 0x2fe   : > { %v11370_v2 = vsel %vm1896_vm3, %v1895_v59, %v1890_v62 }
 0x2ff   : > { %v11372_v5 = vpop.xlane.xlu1 %1860  ;;  %v5035_v1 = vrot.slane %v5021_v53, %v11107_v16 }
 0x301   : > { %3524 = vadd.xlane.f32.xlu0 %v3523_v3  ;;  %v11413_v13 = vrot.slane %v5035_v1, %v11031_v51 }
 0x303   : > { %v4985_v14 = vpop.permute.xlu1 %4984 }
 0x304   : > { %v1867_v37 = vpop.xlane.xlu0 %1866  ;;  %3515 = vadd.xlane.f32.xlu1 %v3514_v18  ;;  %v5047_v59 = vmul.f32 %v11404_v46, %v4985_v14 }
 0x305   : > { %3527 = vadd.xlane.f32.xlu0 %v3526_v29  ;;  %v1915_v42 = vrot.slane %v1867_v37, %v11351_v52 }
 0x306   : > { %v5055_v55 = vmul.f32 %v5047_v59, %v11134_v24 }
 0x307   : > { %v4993_v12 = vpop.permute.xlu1 %4992 }
 0x308   : > { %v1870_v28 = vpop.xlane.xlu0 %1869  ;;  %3518 = vadd.xlane.f32.xlu1 %v3517_v6  ;;  %v5049_v58 = vmul.f32 %v11404_v46, %v4993_v12  ;;  %v5063_v23 = vsel %vm1750_vm2, %v5055_v55, -inf }
 0x309   : > { %v1919_v20 = vrot.slane %v1870_v28, %v11347_v38  ;;  %3530 = vadd.xlane.f32.xlu0 %v3529_v7 }
 0x30a   : > { %v5057_v63 = vmul.f32 %v5049_v58, %v11145_v4 }
 0x30b   : > { %v11397_v56 = vsel %vm1896_vm3, %v1919_v20, %v1915_v42  ;;  %v5004_v45 = vpop.permute.xlu1 %5003 }
 0x30c   : > { %v11400_v57 = vpop.xlane.xlu0 %1872  ;;  %3521 = vadd.xlane.f32.xlu1 %v3520_v61  ;;  %v5066_v14 = vsel %vm1750_vm2, %v5057_v63, -inf  ;;  %v5051_v29 = vmul.f32 %v11413_v13, %v5004_v45 }
 0x30d   : > { %3533 = vadd.xlane.f32.xlu0 %v3532_v49  ;;  %v5067_v6 = vmax.f32 %v5063_v23, %v5066_v14 }
 0x30e   : > { %v5059_v15 = vmul.f32 %v5051_v29, %v11134_v24 }
 0x30f   : > { %v5012_v8 = vpop.permute.xlu1 %5011 }
 0x310   : > { %v4981_v62 = vpop.permute.xlu0 %4980  ;;  %v5053_v18 = vmul.f32 %v11413_v13, %v5012_v8  ;;  %v5076_v45 = vsel %vm1750_vm2, %v5059_v15, -inf }
 0x311   : > { %v5046_v44 = vmul.f32 %v11404_v46, %v4981_v62 }
 0x312   : > { %v5061_v12 = vmul.f32 %v5053_v18, %v11145_v4 }
 0x313   : > { %v5054_v17 = vmul.f32 %v5046_v44, %v11138_v26 }
 0x314   : > { %v4989_v3 = vpop.permute.xlu0 %4988  ;;  %v5079_v61 = vsel %vm1750_vm2, %v5061_v12, -inf }
 0x315   : > { %v5048_v10 = vmul.f32 %v11404_v46, %v4989_v3  ;;  %v5062_v60 = vsel %vm1750_vm2, %v5054_v17, -inf  ;;  %v5080_v59 = vmax.f32 %v5076_v45, %v5079_v61 }
 0x317   : > { %v5056_v19 = vmul.f32 %v5048_v10, %v11148_v32 }
 0x318   : > { %v5000_v37 = vpop.permute.xlu0 %4999 }
 0x319   : > { %v5064_v34 = vsel %vm1750_vm2, %v5056_v19, -inf  ;;  %v5050_v39 = vmul.f32 %v11413_v13, %v5000_v37 }
 0x31a   : > { %v5065_v30 = vmax.f32 %v5062_v60, %v5064_v34 }
 0x31b   : > { %v5058_v48 = vmul.f32 %v5050_v39, %v11138_v26 }
 0x31c   : > { %v5068_v28 = vmax.f32 %v5065_v30, %v5067_v6  ;;  %v5008_v7 = vpop.permute.xlu0 %5007 }
 0x31d   : > { %v5052_v42 = vmul.f32 %v11413_v13, %v5008_v7  ;;  %v5075_v58 = vsel %vm1750_vm2, %v5058_v48, -inf }
 0x31e   : > { %v5069_v20 = vrot.slane %v5068_v28, 4 }
 0x31f   : > { %v5060_v49 = vmul.f32 %v5052_v42, %v11148_v32 }
 0x320   : > { %v5070_v53 = vmax.f32 %v5068_v28, %v5069_v20 }
 0x321   : > { %v5077_v4 = vsel %vm1750_vm2, %v5060_v49, -inf }
 0x322   : > { %v5071_v62 = vrot.slane %v5070_v53, 2  ;;  %v5078_v1 = vmax.f32 %v5075_v58, %v5077_v4 }
 0x324   : > { %v5072_v24 = vmax.f32 %v5070_v53, %v5071_v62  ;;  %v5081_v44 = vmax.f32 %v5078_v1, %v5080_v59 }
 0x326   : > { %v5073_v26 = vrot.slane %v5072_v24, 1  ;;  %v5082_v8 = vrot.slane %v5081_v44, 4 }
 0x328   : > { %v5074_v3 = vmax.f32 %v5072_v24, %v5073_v26  ;;  %v5083_v10 = vmax.f32 %v5081_v44, %v5082_v8 }
 0x32a   : > { %v5088_v14 = vsub.f32 %v5054_v17, %v5074_v3  ;;  %v5089_v18 = vsub.f32 %v5055_v55, %v5074_v3  ;;  %v5090_v23 = vsub.f32 %v5056_v19, %v5074_v3  ;;  %v5091_v32 = vsub.f32 %v5057_v63, %v5074_v3 }
 0x32b   : > { %v5084_v37 = vrot.slane %v5083_v10, 2  ;;  %v6673_v3 = vrot.slane %v11355_v43, %v11107_v16 }
 0x32c   : > { %v5096_v29 = vmul.f32 1.442695, %v5088_v14  ;;  %v5098_v60 = vmul.f32 1.442695, %v5089_v18  ;;  %v5100_v34 = vmul.f32 1.442695, %v5090_v23 }
 0x32d   : > { %v5102_v39 = vmul.f32 1.442695, %v5091_v32  ;;  %v5085_v6 = vmax.f32 %v5083_v10, %v5084_v37  ;;  %v1898_v18 = vadd.s32 4294967280, %v11339_v41 }
 0x32e   : > { %10272 = vpow2.f32 %v5096_v29 }
 0x32f   : > { %10274 = vpow2.f32 %v5098_v60  ;;  %v5086_v30 = vrot.slane %v5085_v6, 1  ;;  %v1905_v60 = vadd.s32 4294967272, %v11339_v41 }
 0x330   : > { %10276 = vpow2.f32 %v5100_v34 }
 0x331   : > { %10278 = vpow2.f32 %v5102_v39  ;;  %v5087_v28 = vmax.f32 %v5085_v6, %v5086_v30  ;;  %v6681_v6 = vrot.slane %v6673_v3, %v11107_v16 }
 0x333   : > { %v5092_v7 = vsub.f32 %v5058_v48, %v5087_v28  ;;  %v5093_v42 = vsub.f32 %v5059_v15, %v5087_v28  ;;  %v5094_v20 = vsub.f32 %v5060_v49, %v5087_v28  ;;  %v5095_v61 = vsub.f32 %v5061_v12, %v5087_v28 }
 0x334   : > { %v11470_v28 = vsub.s32 %v1898_v18, %v11027_v50 }
 0x335   : > { %v5104_v17 = vmul.f32 1.442695, %v5092_v7  ;;  %v5106_v55 = vmul.f32 1.442695, %v5093_v42  ;;  %v5108_v19 = vmul.f32 1.442695, %v5094_v20 }
 0x336   : > { %v5110_v63 = vmul.f32 1.442695, %v5095_v61  ;;  %v11475_v61 = vsub.s32 %v1905_v60, %v11027_v50 }
 0x337   : > { %10280 = vpow2.f32 %v5104_v17 }
 0x338   : > { %v11434_v53 = vpop.eup %10272  ;;  %10282 = vpow2.f32 %v5106_v55  ;;  %v11478_v55 = vrot.slane %v6681_v6, %v11031_v51 }
 0x339   : > { %v11436_v45 = vpop.eup %10274  ;;  %v5112_v58 = vsel %vm1750_vm2, %v11434_v53, 0.0  ;;  %10284 = vpow2.f32 %v5108_v19 }
 0x33a   : > { %v11440_v4 = vpop.eup %10276  ;;  %v5113_v15 = vsel %vm1750_vm2, %v11436_v45, 0.0  ;;  %10286 = vpow2.f32 %v5110_v63  ;;  %v6674_v63 = vcombine.high %v6673_v3, %v6673_v3 }
 0x33b   : > { %v11444_v12 = vpop.eup %10278  ;;  %v5114_v48 = vadd.f32 %v5113_v15, %v5112_v58  ;;  %v5115_v49 = vsel %vm1750_vm2, %v11440_v4, 0.0  ;;  %v1902_v58 = vrot.slane %v11372_v5, %v11470_v28  ;;  %v1924_v15 = vrot.slane %v11400_v57, %v11470_v28 }
 0x33c   : > { %v5117_v62 = vsel %vm1750_vm2, %v11444_v12, 0.0 }
 0x33d   : > { %v5116_v59 = vadd.f32 %v5115_v49, %v5114_v48  ;;  %v1925_v18 = vsel %vm1903_vm4, %v1924_v15, %v11397_v56 }
 0x33f   : > { %v5118_v1 = vadd.f32 %v5117_v62, %v5116_v59 }
 0x340   : > { %v1864_v24 = vpop.xlane.xlu1 %1863 }
 0x341   : > { %v11450_v44 = vpop.eup %10280  ;;  %v5119_v26 = vrot.slane %v5118_v1, 4  ;;  %v1909_v59 = vrot.slane %v1864_v24, %v11475_v61  ;;  %v1904_v24 = vsel %vm1903_vm4, %v1902_v58, %v11370_v2  ;;  %v10319_v58 = vld [vmem:[%s11123_s12 + $0x8] sm:$0xff] }
 0x342   : > { %v11452_v8 = vpop.eup %10282  ;;  %v5125_v10 = vsel %vm1750_vm2, %v11450_v44, 0.0 }
 0x343   : > { %v11458_v14 = vpop.eup %10284  ;;  %v5120_v23 = vadd.f32 %v5119_v26, %v5118_v1  ;;  %v5126_v32 = vsel %vm1750_vm2, %v11452_v8, 0.0 }
 0x344   : > { %v11463_v37 = vpop.eup %10286  ;;  %v5127_v29 = vadd.f32 %v5126_v32, %v5125_v10  ;;  %v6634_v34 = vpop.permute.xlu1 %6633  ;;  %v5128_v43 = vsel %vm1750_vm2, %v11458_v14, 0.0  ;;  %v6688_v10 = vrot.slane %v6674_v63, %v11107_v16  ;;  %v1911_v32 = vsel %vm1910_vm5, %v1909_v59, %v1904_v24 }
 0x345   : > { %v5121_v39 = vrot.slane %v5120_v23, 2  ;;  %v5130_v42 = vsel %vm1750_vm2, %v11463_v37, 0.0  ;;  %v6699_v1 = vmul.f32 %v11478_v55, %v6634_v34 }
 0x346   : > { %v5129_v30 = vadd.f32 %v5128_v43, %v5127_v29  ;;  %v10316_v29 = vld [vmem:[%s11123_s12 + $0x10] sm:$0xff]  ;;  %v10317_v43 = vld [vmem:[%s11123_s12] sm:$0xff] }
 0x347   : > { %v5122_v7 = vadd.f32 %v5121_v39, %v5120_v23  ;;  %v11500_v6 = vmul.f32 %v10317_v43, %v6699_v1 }
 0x348   : > { %v5131_v20 = vadd.f32 %v5130_v42, %v5129_v30  ;;  %v6642_v41 = vpop.permute.xlu1 %6641 }
 0x349   : > { %v5123_v17 = vrot.slane %v5122_v7, 1  ;;  %v6701_v50 = vmul.f32 %v11478_v55, %v6642_v41  ;;  %v11509_v41 = vrot.slane %v6688_v10, %v11031_v51 }
 0x34a   : > { %v5132_v19 = vrot.slane %v5131_v20, 4 }
 0x34b   : > { %v5124_v48 = vadd.f32 %v5123_v17, %v5122_v7  ;;  %v11496_v60 = vmul.f32 %v10316_v29, %v6701_v50  ;;  %v10318_v7 = vld [vmem:[%s11123_s12 + $0x18] sm:$0xff]  ;;  %s10548_s12 = smov 8  }
 0x34c   : > { %v5133_v49 = vadd.f32 %v5132_v19, %v5131_v20  ;;  %v6646_v62 = vpop.permute.xlu1 %6645 }
 0x34d   : > { %10288 = vrcp.f32 %v5124_v48  ;;  %v1876_v26 = vpop.xlane.xlu0 %1875  ;;  %v6702_v5 = vmul.f32 %v11478_v55, %v6646_v62  ;;  %v6717_v63 = vsel %vm1750_vm2, %v11496_v60, -inf }
 0x34e   : > { %v5134_v3 = vrot.slane %v5133_v49, 2  ;;  %v1929_v57 = vrot.slane %v1876_v26, %v11475_v61 }
 0x34f   : > { %v11504_v42 = vmul.f32 %v10318_v7, %v6702_v5 }
 0x350   : > { %v5135_v23 = vadd.f32 %v5134_v3, %v5133_v49  ;;  %v1930_v34 = vsel %vm1910_vm5, %v1929_v57, %v1925_v18  ;;  %v6657_v39 = vpop.permute.xlu1 %6656  ;;  %v6715_v49 = vsel %vm1750_vm2, %v11500_v6, -inf }
 0x351   : > { %v1932_v16 = vsel %vm1931_vm6, %v1930_v34, %v1911_v32  ;;  %v6638_v30 = vpop.permute.xlu0 %6637  ;;  %v6704_v50 = vmul.f32 %v11509_v41, %v6657_v39  ;;  %v6719_v1 = vsel %vm1750_vm2, %v11504_v42, -inf  ;;  %v6718_v57 = vmax.f32 %v6715_v49, %v6717_v63 }
 0x352   : > { %v5136_v2 = vrot.slane %v5135_v23, 1  ;;  %v1933_v56 = vsel %vm1750_vm2, %v1932_v16, 0  ;;  %v6700_v20 = vmul.f32 %v11478_v55, %v6638_v30 }
 0x353   : > { %v11511_v17 = vand.u32 4294901760, %v1933_v56  ;;  %v11535_v34 = vmul.f32 %v10319_v58, %v6704_v50 }
 0x354   : > { %v5137_v19 = vadd.f32 %v5136_v2, %v5135_v23  ;;  %v11516_v15 = vmul.f32 %v10319_v58, %v6700_v20  ;;  %v6665_v48 = vpop.permute.xlu1 %6664 }
 0x355   : > { %v11521_v59 = vsub.f32 %v1933_v56, %v11511_v17  ;;  %v6706_v51 = vmul.f32 %v11509_v41, %v6665_v48  ;;  %v6653_v62 = vpop.permute.xlu0 %6652  ;;  %v6729_v48 = vsel %vm1750_vm2, %v11535_v34, -inf }
 0x356   : > { %10290 = vrcp.f32 %v5137_v19  ;;  %v6716_v26 = vsel %vm1750_vm2, %v11516_v15, -inf  ;;  %v6703_v3 = vmul.f32 %v11509_v41, %v6653_v62 }
 0x357   : > { %v10289_v5 = vpop.eup %10288  ;;  %v6720_v10 = vmax.f32 %v6716_v26, %v6719_v1  ;;  %v2006_v24 = vand.u32 4294901760, %v11521_v59  ;;  %v11531_v18 = vmul.f32 %v10318_v7, %v6706_v51 }
 0x358   : > { %v5141_v23 = vmul.f32 %v10289_v5, %v11436_v45  ;;  %v5140_v32 = vmul.f32 %v10289_v5, %v11434_v53  ;;  %v11540_v2 = vmul.f32 %v10317_v43, %v6703_v3 }
 0x359   : > { %v6721_v39 = vmax.f32 %v6718_v57, %v6720_v10  ;;  %v6661_v16 = vpop.permute.xlu0 %6660  ;;  %v2007_v30 = vsub.f32 %v11521_v59, %v2006_v24  ;;  %v6732_v53 = vsel %vm1750_vm2, %v11531_v18, -inf }
 0x35a   : > { %v6705_v56 = vmul.f32 %v11509_v41, %v6661_v16  ;;  %v5149_v20 = vmul.f32 %v5141_v23, %v11404_v46  ;;  %v5148_v45 = vmul.f32 %v5140_v32, %v11404_v46  ;;  %v6728_v50 = vsel %vm1750_vm2, %v11540_v2, -inf }
 0x35b   : > { %v6722_v7 = vrot.slane %v6721_v39, 4  ;;  %v2008_v19 = vand.u32 4294901760, %v2007_v30  ;;  %v6733_v26 = vmax.f32 %v6729_v48, %v6732_v53 }
 0x35c   : > { %v11547_v63 = vmul.f32 %v10316_v29, %v6705_v56  ;;  %v5157_v58 = vmul.f32 %v5149_v20, %v11196_v31  ;;  %v5156_v49 = vmul.f32 %v5148_v45, %v11199_v33  ;;  %v5142_v29 = vmul.f32 %v10289_v5, %v11440_v4 }
 0x35d   : > { %v6723_v43 = vmax.f32 %v6721_v39, %v6722_v7  ;;  %9147 = vmatmul.mubr.f32.vlgmr.msra.gmra.mrb[2].mxu0 %v2008_v19  ;;  %v5143_v20 = vmul.f32 %v10289_v5, %v11444_v12 }
 0x35e   : > { %v6730_v51 = vsel %vm1750_vm2, %v11547_v63, -inf  ;;  %v5167_v62 = vsel %vm1750_vm2, %v5157_v58, 0.0  ;;  %9770 = vmatpush3.bf16.msra.mxu0 %v11329_v11  ;;  %9157 = vmatprep.mubr.msk.f32.mxu0 %vm10542_vm0, %v10541_v0  ;;  %v5164_v57 = vsel %vm1750_vm2, %v5156_v49, 0.0  ;;  %v5150_v30 = vmul.f32 %v5142_v29, %v11404_v46 }
 0x35f   : > { %v6724_v1 = vrot.slane %v6723_v43, 2  ;;  %v6731_v3 = vmax.f32 %v6728_v50, %v6730_v51  ;;  %5168 = vadd.xlane.f32.xlu0 %v5167_v62  ;;  %9771 = vmatprep.subr.bf16.mxu0 %v10547_v22  ;;  %v5151_v48 = vmul.f32 %v5143_v20, %v11404_v46  ;;  %v11592_v62 = vld [vmem:[%s11191_s23 + $0x10] sm:$0xff] }
 0x360   : > { %v10291_v10 = vpop.eup %10290  ;;  %5165 = vadd.xlane.f32.xlu1 %v5164_v57  ;;  %v5158_v12 = vmul.f32 %v5150_v30, %v11205_v40 }
 0x361   : > { %v6725_v23 = vmax.f32 %v6723_v43, %v6724_v1  ;;  %v6734_v32 = vmax.f32 %v6731_v3, %v6733_v26  ;;  %v5145_v39 = vmul.f32 %v10291_v10, %v11452_v8  ;;  %v5144_v16 = vmul.f32 %v10291_v10, %v11450_v44 }
 0x362   : > { %9773 = vmatpush3.bf16.msra.mxu0 %v11331_v25  ;;  %v5146_v4 = vmul.f32 %v10291_v10, %v11458_v14  ;;  %v5147_v56 = vmul.f32 %v10291_v10, %v11463_v37  ;;  %v5159_v1 = vmul.f32 %v5151_v48, %v11265_v9  ;;  %v5170_v57 = vsel %vm1750_vm2, %v5158_v12, 0.0 }
 0x363   : > { %v6726_v7 = vrot.slane %v6725_v23, 1  ;;  %v6735_v19 = vrot.slane %v6734_v32, 4  ;;  %9774 = vmatprep.subr.bf16.mxu0 %v10547_v22  ;;  %v5153_v45 = vmul.f32 %v5145_v39, %v11413_v13  ;;  %v5152_v8 = vmul.f32 %v5144_v16, %v11413_v13 }
 0x364   : > { %v5154_v44 = vmul.f32 %v5146_v4, %v11413_v13  ;;  %v5155_v5 = vmul.f32 %v5147_v56, %v11413_v13 }
 0x365   : > { %v6727_v53 = vmax.f32 %v6725_v23, %v6726_v7  ;;  %v6736_v58 = vmax.f32 %v6734_v32, %v6735_v19  ;;  %9158 = vmatmul.mubr.f32.vlgmr.msra.gmra.mrb[2].mxu0 %v11511_v17  ;;  %v5161_v14 = vmul.f32 %v5153_v45, %v11196_v31  ;;  %v5160_v37 = vmul.f32 %v5152_v8, %v11199_v33 }
 0x366   : > { %9776 = vmatpush3.bf16.msra.mxu0 %v11333_v27  ;;  %9168 = vmatprep.mubr.msk.f32.mxu0 %vm10542_vm0, %v10541_v0  ;;  %v5162_v13 = vmul.f32 %v11592_v62, %v5154_v44  ;;  %v5173_v32 = vsel %vm1750_vm2, %v5159_v1, 0.0 }
 0x367   : > { %v6741_v43 = vsub.f32 %v11500_v6, %v6727_v53  ;;  %v6742_v49 = vsub.f32 %v11516_v15, %v6727_v53  ;;  %v6743_v50 = vsub.f32 %v11496_v60, %v6727_v53  ;;  %v6744_v31 = vsub.f32 %v11504_v42, %v6727_v53  ;;  %9777 = vmatprep.subr.bf16.mxu0 %v10547_v22 }
 0x368   : > { %v6737_v33 = vrot.slane %v6736_v58, 2  ;;  %v5179_v40 = vsel %vm1750_vm2, %v5161_v14, 0.0  ;;  %v5176_v51 = vsel %vm1750_vm2, %v5160_v37, 0.0  ;;  %v5163_v42 = vmul.f32 %v5155_v5, %v11265_v9 }
 0x369   : > { %v6749_v46 = vmul.f32 1.442695, %v6741_v43  ;;  %v6751_v29 = vmul.f32 1.442695, %v6742_v49  ;;  %v6753_v6 = vmul.f32 1.442695, %v6743_v50  ;;  %5180 = vadd.xlane.f32.xlu0 %v5179_v40  ;;  %5177 = vadd.xlane.f32.xlu1 %v5176_v51 }
 0x36a   : > { %v6755_v15 = vmul.f32 1.442695, %v6744_v31  ;;  %v6738_v60 = vmax.f32 %v6736_v58, %v6737_v33  ;;  %9779 = vmatpush3.bf16.msra.mxu0 %v11335_v35  ;;  %v5182_v3 = vsel %vm1750_vm2, %v5162_v13, 0.0  ;;  %v5185_v23 = vsel %vm1750_vm2, %v5163_v42, 0.0 }
 0x36b   : > { %10292 = vpow2.f32 %v6749_v46  ;;  %9780 = vmatprep.subr.bf16.mxu0 %v10547_v22 }
 0x36c   : > { %10294 = vpow2.f32 %v6751_v29  ;;  %v6739_v26 = vrot.slane %v6738_v60, 1 }
 0x36d   : > { %10296 = vpow2.f32 %v6753_v6  ;;  %5183 = vadd.xlane.f32.xlu0 %v5182_v3  ;;  %5171 = vadd.xlane.f32.xlu1 %v5170_v57 }
 0x36e   : > { %10298 = vpow2.f32 %v6755_v15  ;;  %v6740_v10 = vmax.f32 %v6738_v60, %v6739_v26  ;;  %9169 = vmatmul.mubr.f32.vlgmr.msra.gmra.mrb[2].mxu0 %v11521_v59 }
 0x36f   : > { %9782 = vmatpush3.bf16.msra.mxu0 %v11313_v47  ;;  %9179 = vmatprep.mubr.msk.f32.mxu0 %vm10542_vm0, %v10541_v0 }
 0x370   : > { %v6745_v9 = vsub.f32 %v11540_v2, %v6740_v10  ;;  %v6746_v39 = vsub.f32 %v11535_v34, %v6740_v10  ;;  %v6747_v16 = vsub.f32 %v11547_v63, %v6740_v10  ;;  %v6748_v4 = vsub.f32 %v11531_v18, %v6740_v10  ;;  %9783 = vmatprep.subr.bf16.mxu0 %v10547_v22 }
 0x371   : > { %5186 = vadd.xlane.f32.xlu0 %v5185_v23  ;;  %5174 = vadd.xlane.f32.xlu1 %v5173_v32 }
 0x372   : > { %v6757_v30 = vmul.f32 1.442695, %v6745_v9  ;;  %v6759_v56 = vmul.f32 1.442695, %v6746_v39  ;;  %v6761_v20 = vmul.f32 1.442695, %v6747_v16 }
 0x373   : > { %v6763_v7 = vmul.f32 1.442695, %v6748_v4  ;;  %9785 = vmatpush3.bf16.msra.mxu0 %v11325_v36 }
 0x374   : > { %10300 = vpow2.f32 %v6757_v30  ;;  %9786 = vmatprep.subr.bf16.mxu0 %v10547_v22 }
 0x375   : > { %v11614_v2 = vpop.eup %10292  ;;  %10302 = vpow2.f32 %v6759_v56 }
 0x376   : > { %v10295_v34 = vpop.eup %10294  ;;  %v6765_v18 = vsel %vm1750_vm2, %v11614_v2, 0.0  ;;  %10304 = vpow2.f32 %v6761_v20  ;;  %9180 = vmatmul.mubr.f32.vlgmr.msra.gmra.mrb[2].mxu0 %v2006_v24 }
 0x377   : > { %v11620_v63 = vpop.eup %10296  ;;  %v6766_v19 = vsel %vm1750_vm2, %v10295_v34, 0.0  ;;  %10306 = vpow2.f32 %v6763_v7  ;;  %9788 = vmatpush3.bf16.msra.mxu0 %v11357_v21  ;;  %9190 = vmatprep.mubr.msk.f32.mxu0 %vm10542_vm0, %v10541_v0 }
 0x378   : > { %v11626_v45 = vpop.eup %10298  ;;  %v6767_v8 = vadd.f32 %v6766_v19, %v6765_v18  ;;  %9789 = vmatprep.subr.bf16.mxu0 %v10547_v22  ;;  %v6768_v44 = vsel %vm1750_vm2, %v11620_v63, 0.0 }
 0x379   : > { %v6770_v24 = vsel %vm1750_vm2, %v11626_v45, 0.0 }
 0x37a   : > { %v6769_v59 = vadd.f32 %v6768_v44, %v6767_v8 }
 0x37b   : > { %9791 = vmatpush3.bf16.msra.mxu0 %v11367_v54 }
 0x37c   : > { %v6771_v53 = vadd.f32 %v6770_v24, %v6769_v59  ;;  %9792 = vmatprep.subr.bf16.mxu0 %v10547_v22  ;;  %v10321_v59 = vld [vmem:[%s11191_s23 + $0x8] sm:$0xff]  ;;  %v10322_v24 = vld [vmem:[%s11191_s23] sm:$0xff] }
 0x37e   : > { %v11635_v58 = vpop.eup %10300  ;;  %v6772_v14 = vrot.slane %v6771_v53, 4  ;;  %9191 = vmatmul.mubr.f32.vlgmr.msra.gmra.mrb[2].mxu0 %v11511_v17 }
 0x37f   : > { %v11638_v37 = vpop.eup %10302  ;;  %v6778_v12 = vsel %vm1750_vm2, %v11635_v58, 0.0  ;;  %9794 = vmatpush3.bf16.msra.mxu0 %v11313_v47  ;;  %9201 = vmatprep.mubr.msk.f32.mxu0 %vm10542_vm0, %v10541_v0 }
 0x380   : > { %v11645_v5 = vpop.eup %10304  ;;  %v6773_v48 = vadd.f32 %v6772_v14, %v6771_v53  ;;  %v6779_v43 = vsel %vm1750_vm2, %v11638_v37, 0.0  ;;  %9795 = vmatprep.subr.bf16.mxu0 %v10547_v22 }
 0x381   : > { %v11650_v49 = vpop.eup %10306  ;;  %v6780_v50 = vadd.f32 %v6779_v43, %v6778_v12  ;;  %v6781_v33 = vsel %vm1750_vm2, %v11645_v5, 0.0 }
 0x382   : > { %v6774_v31 = vrot.slane %v6773_v48, 2  ;;  %v6783_v13 = vsel %vm1750_vm2, %v11650_v49, 0.0 }
 0x383   : > { %v6782_v40 = vadd.f32 %v6781_v33, %v6780_v50  ;;  %9797 = vmatpush3.bf16.msra.mxu0 %v11325_v36 }
 0x384   : > { %v6775_v51 = vadd.f32 %v6774_v31, %v6773_v48  ;;  %9798 = vmatprep.subr.bf16.mxu0 %v10547_v22 }
 0x385   : > { %v6784_v46 = vadd.f32 %v6783_v13, %v6782_v40 }
 0x386   : > { %v6776_v29 = vrot.slane %v6775_v51, 1  ;;  %9202 = vmatmul.mubr.f32.vlgmr.msra.gmra.mrb[2].mxu0 %v11511_v17 }
 0x387   : > { %v6785_v6 = vrot.slane %v6784_v46, 4  ;;  %9800 = vmatpush3.bf16.msra.mxu0 %v11313_v47  ;;  %9272 = vmatprep.mubr.msk.f32.mxu0 %vm10542_vm0, %v10541_v0 }
 0x388   : > { %v6777_v15 = vadd.f32 %v6776_v29, %v6775_v51  ;;  %9801 = vmatprep.subr.bf16.mxu0 %v10547_v22 }
 0x389   : > { %v6786_v60 = vadd.f32 %v6785_v6, %v6784_v46 }
 0x38a   : > { %10308 = vrcp.f32 %v6777_v15  ;;  %v3513_v42 = vpop.xlane.xlu0 %3512 }
 0x38b   : > { %v6787_v1 = vrot.slane %v6786_v60, 2  ;;  %9803 = vmatpush3.bf16.msra.mxu0 %v11325_v36  ;;  %v3546_v19 = vrot.slane %v3513_v42, %v11351_v52 }
 0x38c   : > { %9804 = vmatprep.subr.bf16.mxu0 %v10547_v22 }
 0x38d   : > { %v6788_v26 = vadd.f32 %v6787_v1, %v6786_v60 }
 0x38e   : > { %v3525_v3 = vpop.xlane.xlu0 %3524 }
 0x38f   : > { %v6789_v17 = vrot.slane %v6788_v26, 1  ;;  %v3565_v8 = vrot.slane %v3525_v3, %v11351_v52 }
 0x391   : > { %v6790_v57 = vadd.f32 %v6789_v17, %v6788_v26  ;;  %v3516_v10 = vpop.xlane.xlu1 %3515 }
 0x392   : > { %v3528_v23 = vpop.xlane.xlu0 %3527  ;;  %v3550_v30 = vrot.slane %v3516_v10, %v11347_v38 }
 0x393   : > { %10310 = vrcp.f32 %v6790_v57  ;;  %v3569_v4 = vrot.slane %v3528_v23, %v11347_v38 }
 0x394   : > { %v10309_v32 = vpop.eup %10308  ;;  %v3551_v12 = vsel %vm1896_vm3, %v3550_v30, %v3546_v19 }
 0x395   : > { %v3519_v9 = vpop.xlane.xlu1 %3518  ;;  %v6794_v39 = vmul.f32 %v10309_v32, %v10295_v34  ;;  %v6793_v16 = vmul.f32 %v10309_v32, %v11614_v2  ;;  %v3570_v14 = vsel %vm1896_vm3, %v3569_v4, %v3565_v8  ;;  %v6795_v50 = vmul.f32 %v10309_v32, %v11620_v63 }
 0x396   : > { %v3531_v56 = vpop.xlane.xlu0 %3530  ;;  %v3555_v20 = vrot.slane %v3519_v9, %v11470_v28  ;;  %v6796_v17 = vmul.f32 %v10309_v32, %v11626_v45 }
 0x397   : > { %v6802_v7 = vmul.f32 %v6794_v39, %v11478_v55  ;;  %v6801_v18 = vmul.f32 %v6793_v16, %v11478_v55  ;;  %v3574_v44 = vrot.slane %v3531_v56, %v11470_v28  ;;  %v6803_v26 = vmul.f32 %v6795_v50, %v11478_v55 }
 0x398   : > { %v3556_v31 = vsel %vm1903_vm4, %v3555_v20, %v3551_v12  ;;  %v6804_v4 = vmul.f32 %v6796_v17, %v11478_v55  ;;  %v10323_v20 = vld [vmem:[%s11191_s23 + $0x18] sm:$0xff] }
 0x399   : > { %v3522_v34 = vpop.xlane.xlu1 %3521  ;;  %v6810_v2 = vmul.f32 %v10321_v59, %v6802_v7  ;;  %v6809_v53 = vmul.f32 %v10322_v24, %v6801_v18  ;;  %v3575_v13 = vsel %vm1903_vm4, %v3574_v44, %v3570_v14 }
 0x39a   : > { %v3534_v48 = vpop.xlane.xlu0 %3533  ;;  %v3560_v43 = vrot.slane %v3522_v34, %v11475_v61  ;;  %v6812_v7 = vmul.f32 %v10323_v20, %v6804_v4 }
 0x39b   : > { %v3579_v33 = vrot.slane %v3534_v48, %v11475_v61  ;;  %v6820_v40 = vsel %vm1750_vm2, %v6810_v2, 0.0  ;;  %v6817_v51 = vsel %vm1750_vm2, %v6809_v53, 0.0 }
 0x39c   : > { %v3561_v46 = vsel %vm1910_vm5, %v3560_v43, %v3556_v31  ;;  %6821 = vadd.xlane.f32.xlu0 %v6820_v40  ;;  %6818 = vadd.xlane.f32.xlu1 %v6817_v51 }
 0x39d   : > { %v10311_v29 = vpop.eup %10310  ;;  %v3580_v6 = vsel %vm1910_vm5, %v3579_v33, %v3575_v13 }
 0x39e   : > { %v3581_v15 = vsel %vm1931_vm6, %v3580_v6, %v3561_v46  ;;  %v6798_v63 = vmul.f32 %v10311_v29, %v11638_v37  ;;  %v6797_v60 = vmul.f32 %v10311_v29, %v11635_v58  ;;  %v6799_v42 = vmul.f32 %v10311_v29, %v11645_v5 }
 0x39f   : > { %v3582_v1 = vsel %vm1750_vm2, %v3581_v15, 0  ;;  %v6800_v3 = vmul.f32 %v10311_v29, %v11650_v49  ;;  %v6811_v5 = vmul.f32 %v11592_v62, %v6803_v26 }
 0x3a0   : > { %v3653_v57 = vand.u32 4294901760, %v3582_v1  ;;  %v6806_v10 = vmul.f32 %v6798_v63, %v11509_v41  ;;  %v6805_v23 = vmul.f32 %v6797_v60, %v11509_v41  ;;  %v6807_v37 = vmul.f32 %v6799_v42, %v11509_v41 }
 0x3a1   : > { %v6808_v16 = vmul.f32 %v6800_v3, %v11509_v41  ;;  %v6823_v19 = vsel %vm1750_vm2, %v6811_v5, 0.0 }
 0x3a2   : > { %v3654_v9 = vsub.f32 %v3582_v1, %v3653_v57  ;;  %v6814_v58 = vmul.f32 %v10321_v59, %v6806_v10  ;;  %v6813_v39 = vmul.f32 %v10322_v24, %v6805_v23  ;;  %v6815_v32 = vmul.f32 %v11592_v62, %v6807_v37 }
 0x3a3   : > { %v6816_v8 = vmul.f32 %v10323_v20, %v6808_v16  ;;  %v6826_v62 = vsel %vm1750_vm2, %v6812_v7, 0.0 }
 0x3a4   : > { %v6832_v49 = vsel %vm1750_vm2, %v6814_v58, 0.0  ;;  %v6829_v45 = vsel %vm1750_vm2, %v6813_v39, 0.0  ;;  %v3655_v30 = vand.u32 4294901760, %v3654_v9  ;;  %v6835_v18 = vsel %vm1750_vm2, %v6815_v32, 0.0 }
 0x3a5   : > { %6833 = vadd.xlane.f32.xlu0 %v6832_v49  ;;  %6830 = vadd.xlane.f32.xlu1 %v6829_v45  ;;  %v6838_v55 = vsel %vm1750_vm2, %v6816_v8, 0.0 }
 0x3a6   : > { %v3656_v56 = vsub.f32 %v3654_v9, %v3655_v30 }
 0x3a8   : > { %v3657_v41 = vand.u32 4294901760, %v3656_v56 }
 0x3a9   : > { %6836 = vadd.xlane.f32.xlu0 %v6835_v18  ;;  %6824 = vadd.xlane.f32.xlu1 %v6823_v19 }
 0x3aa   : > { %9273 = vmatmul.mubr.f32.vlgmr.msra.gmra.mrb[4].mxu0 %v3657_v41 }
 0x3ab   : > { %9806 = vmatpush3.bf16.msra.mxu0 %v11329_v11  ;;  %9283 = vmatprep.mubr.msk.f32.mxu0 %vm10542_vm0, %v10541_v0 }
 0x3ac   : > { %9807 = vmatprep.subr.bf16.mxu0 %v10547_v22 }
 0x3ad   : > { %6839 = vadd.xlane.f32.xlu0 %v6838_v55  ;;  %6827 = vadd.xlane.f32.xlu1 %v6826_v62 }
 0x3af   : > { %9809 = vmatpush3.bf16.msra.mxu0 %v11331_v25 }
 0x3b0   : > { %9810 = vmatprep.subr.bf16.mxu0 %v10547_v22 }
 0x3b2   : > { %9284 = vmatmul.mubr.f32.vlgmr.msra.gmra.mrb[4].mxu0 %v3653_v57 }
 0x3b3   : > { %9812 = vmatpush3.bf16.msra.mxu0 %v11333_v27  ;;  %9294 = vmatprep.mubr.msk.f32.mxu0 %vm10542_vm0, %v10541_v0 }
 0x3b4   : > { %9813 = vmatprep.subr.bf16.mxu0 %v10547_v22 }
 0x3b7   : > { %9815 = vmatpush3.bf16.msra.mxu0 %v11335_v35 }
 0x3b8   : > { %9816 = vmatprep.subr.bf16.mxu0 %v10547_v22 }
 0x3ba   : > { %9295 = vmatmul.mubr.f32.vlgmr.msra.gmra.mrb[4].mxu0 %v3654_v9 }
 0x3bb   : > { %9818 = vmatpush3.bf16.msra.mxu0 %v11313_v47  ;;  %9305 = vmatprep.mubr.msk.f32.mxu0 %vm10542_vm0, %v10541_v0 }
 0x3bc   : > { %9819 = vmatprep.subr.bf16.mxu0 %v10547_v22 }
 0x3bf   : > { %9821 = vmatpush3.bf16.msra.mxu0 %v11325_v36 }
 0x3c0   : > { %9822 = vmatprep.subr.bf16.mxu0 %v10547_v22 }
 0x3c2   : > { %9306 = vmatmul.mubr.f32.vlgmr.msra.gmra.mrb[4].mxu0 %v3655_v30 }
 0x3c3   : > { %9824 = vmatpush3.bf16.msra.mxu0 %v11357_v21  ;;  %9316 = vmatprep.mubr.msk.f32.mxu0 %vm10542_vm0, %v10541_v0 }
 0x3c4   : > { %9825 = vmatprep.subr.bf16.mxu0 %v10547_v22 }
 0x3c7   : > { %9827 = vmatpush3.bf16.msra.mxu0 %v11367_v54 }
 0x3c8   : > { %9828 = vmatprep.subr.bf16.mxu0 %v10547_v22 }
 0x3ca   : > { %9317 = vmatmul.mubr.f32.vlgmr.msra.gmra.mrb[4].mxu0 %v3653_v57 }
 0x3cb   : > { %9830 = vmatpush3.bf16.msra.mxu0 %v11313_v47  ;;  %9327 = vmatprep.mubr.msk.f32.mxu0 %vm10542_vm0, %v10541_v0 }
 0x3cc   : > { %9831 = vmatprep.subr.bf16.mxu0 %v10547_v22 }
 0x3cf   : > { %9833 = vmatpush3.bf16.msra.mxu0 %v11325_v36 }
 0x3d0   : > { %9834 = vmatprep.subr.bf16.mxu0 %v10547_v22 }
 0x3d2   : > { %9328 = vmatmul.mubr.f32.vlgmr.msra.gmra.mrb[4].mxu0 %v3653_v57 }
 0x3d3   : > { %9836 = vmatpush3.bf16.msra.mxu0 %v11313_v47  ;;  %9398 = vmatprep.mubr.msk.f32.mxu0 %vm10542_vm0, %v10541_v0 }
 0x3d4   : > { %9837 = vmatprep.subr.bf16.mxu0 %v10547_v22 }
 0x3d7   : > { %9839 = vmatpush3.bf16.msra.mxu0 %v11325_v36 }
 0x3d8   : > { %9840 = vmatprep.subr.bf16.mxu0 %v10547_v22 }
 0x3ec   : > { %v5169_v34 = vpop.xlane.xlu0 %5168 }
 0x3ed   : > { %v5166_v44 = vpop.xlane.xlu1 %5165  ;;  %v5203_v12 = vrot.slane %v5169_v34, %v11347_v38 }
 0x3ee   : > { %v5199_v14 = vrot.slane %v5166_v44, %v11351_v52 }
 0x3f0   : > { %v5204_v51 = vsel %vm1896_vm3, %v5203_v12, %v5199_v14 }
 0x3f6   : > { %v5178_v59 = vpop.xlane.xlu1 %5177  ;;  %v5181_v2 = vpop.xlane.xlu0 %5180 }
 0x3f7   : > { %v5218_v48 = vrot.slane %v5178_v59, %v11351_v52  ;;  %v5222_v43 = vrot.slane %v5181_v2, %v11347_v38 }
 0x3f9   : > { %v5223_v13 = vsel %vm1896_vm3, %v5222_v43, %v5218_v48  ;;  %v10324_v48 = vld [vmem:[%s10870_s20] sm:$0x3]  ;;  %s712_s20 = scalar_lea.vmem [#allocation11], %s8753_s26 }
 0x3fa   : > { %v5172_v24 = vpop.xlane.xlu1 %5171  ;;  %v5184_v53 = vpop.xlane.xlu0 %5183 }
 0x3fb   : > { %v5208_v50 = vrot.slane %v5172_v24, %v11470_v28  ;;  %v5227_v31 = vrot.slane %v5184_v53, %v11470_v28 }
 0x3fd   : > { %v5209_v6 = vsel %vm1903_vm4, %v5208_v50, %v5204_v51  ;;  %v5228_v15 = vsel %vm1903_vm4, %v5227_v31, %v5223_v13 }
 0x3fe   : > { %v5175_v33 = vpop.xlane.xlu1 %5174  ;;  %v5187_v40 = vpop.xlane.xlu0 %5186 }
 0x3ff   : > { %v5213_v46 = vrot.slane %v5175_v33, %v11475_v61  ;;  %v5232_v29 = vrot.slane %v5187_v40, %v11475_v61 }
 0x401   : > { %v5214_v63 = vsel %vm1910_vm5, %v5213_v46, %v5209_v6  ;;  %v5233_v60 = vsel %vm1910_vm5, %v5232_v29, %v5228_v15  ;;  %v7414_v46 = vld [vmem:[%s734_s14] sm:$0xff]  ;;  %v7415_v29 = vld [vmem:[%s734_s14 + $0x8] sm:$0xff]  ;;  %v7416_v6 = vld [vmem:[%s734_s14 + $0x10] sm:$0xff] }
 0x402   : > { %v5234_v42 = vsel %vm1931_vm6, %v5233_v60, %v5214_v63  ;;  %v7429_v15 = vand.u32 4294901760, %v7414_v46  ;;  %v7432_v63 = vand.u32 4294901760, %v7415_v29  ;;  %v7417_v60 = vld [vmem:[%s734_s14 + $0x18] sm:$0xff]  ;;  %s748_s14 = scalar_lea.vmem %s12159_s22, %s10861_s19 }
 0x403   : > { %v5235_v1 = vsel %vm1750_vm2, %v5234_v42, 0  ;;  %v7435_v42 = vand.u32 4294901760, %v7416_v6 }
 0x404   : > { %v5306_v26 = vand.u32 4294901760, %v5235_v1 }
 0x406   : > { %v5307_v3 = vsub.f32 %v5235_v1, %v5306_v26  ;;  %v7438_v1 = vand.u32 4294901760, %v7417_v60 }
 0x408   : > { %v5308_v17 = vand.u32 4294901760, %v5307_v3 }
 0x40a   : > { %v5309_v57 = vsub.f32 %v5307_v3, %v5308_v17 }
 0x40c   : > { %v5310_v10 = vand.u32 4294901760, %v5309_v57  ;;  %v7523_v57 = vsub.f32 %v7416_v6, %v7435_v42 }
 0x40e   : > { %9399 = vmatmul.mubr.f32.vlgmr.msra.gmra.mrb[6].mxu0 %v5310_v10  ;;  %v7530_v10 = vsub.f32 %v7417_v60, %v7438_v1 }
 0x40f   : > { %9842 = vmatpush3.bf16.msra.mxu0 %v11329_v11  ;;  %9409 = vmatprep.mubr.msk.f32.mxu0 %vm10542_vm0, %v10541_v0 }
 0x410   : > { %9843 = vmatprep.subr.bf16.mxu0 %v10547_v22 }
 0x413   : > { %9845 = vmatpush3.bf16.msra.mxu0 %v11331_v25 }
 0x414   : > { %9846 = vmatprep.subr.bf16.mxu0 %v10547_v22 }
 0x416   : > { %9410 = vmatmul.mubr.f32.vlgmr.msra.gmra.mrb[6].mxu0 %v5306_v26 }
 0x417   : > { %9848 = vmatpush3.bf16.msra.mxu0 %v11333_v27  ;;  %9420 = vmatprep.mubr.msk.f32.mxu0 %vm10542_vm0, %v10541_v0 }
 0x418   : > { %9849 = vmatprep.subr.bf16.mxu0 %v10547_v22 }
 0x41b   : > { %9851 = vmatpush3.bf16.msra.mxu0 %v11335_v35 }
 0x41c   : > { %9852 = vmatprep.subr.bf16.mxu0 %v10547_v22 }
 0x41e   : > { %9421 = vmatmul.mubr.f32.vlgmr.msra.gmra.mrb[6].mxu0 %v5307_v3  ;;  %v7509_v3 = vsub.f32 %v7414_v46, %v7429_v15 }
 0x41f   : > { %9854 = vmatpush3.bf16.msra.mxu0 %v11313_v47  ;;  %9431 = vmatprep.mubr.msk.f32.mxu0 %vm10542_vm0, %v10541_v0 }
 0x420   : > { %9855 = vmatprep.subr.bf16.mxu0 %v10547_v22 }
 0x423   : > { %9857 = vmatpush3.bf16.msra.mxu0 %v11325_v36 }
 0x424   : > { %9858 = vmatprep.subr.bf16.mxu0 %v10547_v22 }
 0x426   : > { %9432 = vmatmul.mubr.f32.vlgmr.msra.gmra.mrb[6].mxu0 %v5308_v17  ;;  %v7516_v17 = vsub.f32 %v7415_v29, %v7432_v63 }
 0x427   : > { %9860 = vmatpush3.bf16.msra.mxu0 %v11357_v21  ;;  %9442 = vmatprep.mubr.msk.f32.mxu0 %vm10542_vm0, %v10541_v0 }
 0x428   : > { %9861 = vmatprep.subr.bf16.mxu0 %v10547_v22 }
 0x429   : > { %v6819_v23 = vpop.xlane.xlu1 %6818  ;;  %v6822_v37 = vpop.xlane.xlu0 %6821 }
 0x42a   : > { %v6852_v39 = vrot.slane %v6819_v23, %v11351_v52  ;;  %v6856_v4 = vrot.slane %v6822_v37, %v11347_v38  ;;  %v11855_v23 = vpack.c.bf16 %v7438_v1, %v7435_v42  ;;  %v7510_v37 = vand.u32 4294901760, %v7509_v3 }
 0x42b   : > { %9863 = vmatpush3.bf16.msra.mxu0 %v11367_v54 }
 0x42c   : > { %9864 = vmatprep.subr.bf16.mxu0 %v10547_v22  ;;  %v6857_v7 = vsel %vm1896_vm3, %v6856_v4, %v6852_v39  ;;  %v7524_v4 = vand.u32 4294901760, %v7523_v57 }
 0x42e   : > { %9443 = vmatmul.mubr.f32.vlgmr.msra.gmra.mrb[6].mxu0 %v5306_v26 }
 0x42f   : > { %9866 = vmatpush3.bf16.msra.mxu0 %v11313_v47  ;;  %9453 = vmatprep.mubr.msk.f32.mxu0 %vm10542_vm0, %v10541_v0 }
 0x430   : > { %9867 = vmatprep.subr.bf16.mxu0 %v10547_v22 }
 0x432   : > { %v6831_v9 = vpop.xlane.xlu1 %6830  ;;  %v6834_v58 = vpop.xlane.xlu0 %6833 }
 0x433   : > { %9869 = vmatpush3.bf16.msra.mxu0 %v11325_v36  ;;  %v6871_v49 = vrot.slane %v6831_v9, %v11351_v52  ;;  %v6875_v45 = vrot.slane %v6834_v58, %v11347_v38  ;;  %v7517_v9 = vand.u32 4294901760, %v7516_v17  ;;  %v7511_v58 = vsub.f32 %v7509_v3, %v7510_v37 }
 0x434   : > { %9870 = vmatprep.subr.bf16.mxu0 %v10547_v22 }
 0x435   : > { %v6876_v18 = vsel %vm1896_vm3, %v6875_v45, %v6871_v49  ;;  %v7518_v39 = vsub.f32 %v7516_v17, %v7517_v9  ;;  %v7531_v49 = vand.u32 4294901760, %v7530_v10 }
 0x436   : > { %9454 = vmatmul.mubr.f32.vlgmr.msra.gmra.mrb[6].mxu0 %v5306_v26  ;;  %v6825_v5 = vpop.xlane.xlu1 %6824  ;;  %v6837_v16 = vpop.xlane.xlu0 %6836  ;;  %v11852_v26 = vpack.c.bf16 %v7432_v63, %v7429_v15 }
 0x437   : > { %9872 = vmatpush3.bf16.msra.mxu0 %v11313_v47  ;;  %9524 = vmatprep.mubr.msk.f32.mxu0 %vm10542_vm0, %v10541_v0  ;;  %v6861_v32 = vrot.slane %v6825_v5, %v11470_v28  ;;  %v6880_v30 = vrot.slane %v6837_v16, %v11470_v28  ;;  %v7512_v5 = vand.u32 4294901760, %v7511_v58  ;;  %v7519_v16 = vand.u32 4294901760, %v7518_v39 }
 0x438   : > { %9873 = vmatprep.subr.bf16.mxu0 %v10547_v22  ;;  %9908 = vmatpush3.bf16.msra.mxu1 %v11852_v26 }
 0x439   : > { %v6862_v19 = vsel %vm1903_vm4, %v6861_v32, %v6857_v7  ;;  %v6881_v8 = vsel %vm1903_vm4, %v6880_v30, %v6876_v18  ;;  %9909 = vmatprep.subr.bf16.mxu1 %v10547_v22  ;;  %v9913_v45 = vpack.c.bf16 %v7519_v16, %v7512_v5  ;;  %v7525_v32 = vsub.f32 %v7523_v57, %v7524_v4 }
 0x43a   : > { %v6828_v56 = vpop.xlane.xlu1 %6827  ;;  %v6840_v20 = vpop.xlane.xlu0 %6839  ;;  %v7532_v30 = vsub.f32 %v7530_v10, %v7531_v49  ;;  %v9919_v18 = vpack.c.bf16 %v7516_v17, %v7509_v3 }
 0x43b   : > { %v6866_v52 = vrot.slane %v6828_v56, %v11475_v61  ;;  %v6885_v38 = vrot.slane %v6840_v20, %v11475_v61  ;;  %9875 = vmatpush3.bf16.msra.mxu0 %v11325_v36  ;;  %v7526_v56 = vand.u32 4294901760, %v7525_v32 }
 0x43c   : > { %9876 = vmatprep.subr.bf16.mxu0 %v10547_v22  ;;  %9911 = vmatpush3.bf16.msra.mxu1 %v11855_v23  ;;  %v7533_v20 = vand.u32 4294901760, %v7532_v30 }
 0x43d   : > { %v6867_v28 = vsel %vm1910_vm5, %v6866_v52, %v6862_v19  ;;  %v6886_v41 = vsel %vm1910_vm5, %v6885_v38, %v6881_v8  ;;  %9912 = vmatprep.subr.bf16.mxu1 %v10547_v22  ;;  %v9922_v52 = vpack.c.bf16 %v7530_v10, %v7523_v57  ;;  %v9931_v38 = vpack.c.bf16 %v7517_v9, %v7510_v37 }
 0x43e   : > { %v6887_v55 = vsel %vm1931_vm6, %v6886_v41, %v6867_v28  ;;  %v9916_v7 = vpack.c.bf16 %v7533_v20, %v7526_v56  ;;  %v9934_v19 = vpack.c.bf16 %v7531_v49, %v7524_v4 }
 0x43f   : > { %v6888_v62 = vsel %vm1750_vm2, %v6887_v55, 0 }
 0x440   : > { %v6959_v44 = vand.u32 4294901760, %v6888_v62 }
 0x442   : > { %v6960_v34 = vsub.f32 %v6888_v62, %v6959_v44  ;;  %v8764_v62 = vld [vmem:[%s604_s11] ss:$0 sm:$0xff]  ;;  %s8777_s11 = sshll.u32 %s10861_s19, 6 }
 0x443   : > { %s11879_s21 = scalar_lea.vmem %s12156_s6, %s8777_s11  ;;  %s12160_s11 = sld [smem:[#allocation21_spill]] }
 0x444   : > { %v6961_v59 = vand.u32 4294901760, %v6960_v34  ;;  %v7918_v57 = vld [vmem:[%s11879_s21 + $0x20] sm:$0xff]  ;;  %v7919_v10 = vld [vmem:[%s11879_s21 + $0x28] sm:$0xff]  ;;  %v7920_v39 = vld [vmem:[%s11879_s21 + $0x30] sm:$0xff]  ;;  %s8516_s6 = sshll.u32 %s712_s20, 4  ;;  %s12051_s6 = int_to_ptr.vmem [resolvable:$true] %s8516_s6 }
 0x445   : > { %v7949_v37 = vand.u32 4294901760, %v7919_v10  ;;  %v7921_v5 = vld [vmem:[%s11879_s21 + $0x38] sm:$0xff]  ;;  %v7952_v49 = vand.u32 4294901760, %v7920_v39  ;;  %s10445_s17 = scalar_lea.vmem %s12051_s6, 32 }
 0x446   : > { %v6962_v61 = vsub.f32 %v6960_v34, %v6961_v59  ;;  %p10446_p1 = scmp.ne.s32.totalorder %s12051_s6, %s10445_s17 }
 0x447   : > { %v11958_v58 = vsub.f32 %v7919_v10, %v7949_v37  ;;  %v11966_v56 = vsub.f32 %v7920_v39, %v7952_v49 }
 0x448   : > { %v6963_v2 = vand.u32 4294901760, %v6962_v61 }
 0x449   : > { %v8054_v4 = vand.u32 4294901760, %v11958_v58  ;;  %p12163_p8 = scmp.ne.s32.totalorder %s12160_s11, 0 }
 0x44a   : > { %9525 = vmatmul.mubr.f32.vlgmr.msra.gmra.mrb[8].mxu0 %v6963_v2 }
 0x44b   : > { %9878 = vmatpush3.bf16.msra.mxu0 %v11329_v11  ;;  %9535 = vmatprep.mubr.msk.f32.mxu0 %vm10542_vm0, %v10541_v0  ;;  %v8055_v30 = vsub.f32 %v11958_v58, %v8054_v4  ;;  %p10447_p9 = pnand %p10446_p1, %p12163_p8 }
 0x44c   : > { %9879 = vmatprep.subr.bf16.mxu0 %v10547_v22 }
 0x44d   : > { %p10448_p10 = pneg %p10447_p9 }
 0x44f   : > { %9881 = vmatpush3.bf16.msra.mxu0 %v11331_v25 }
 0x450   : > { %9882 = vmatprep.subr.bf16.mxu0 %v10547_v22 }
 0x452   : > { %9536 = vmatmul.mubr.f32.vlgmr.msra.gmra.mrb[8].mxu0 %v6959_v44 }
 0x453   : > { %9884 = vmatpush3.bf16.msra.mxu0 %v11333_v27  ;;  %9546 = vmatprep.mubr.msk.f32.mxu0 %vm10542_vm0, %v10541_v0 }
 0x454   : > { %9885 = vmatprep.subr.bf16.mxu0 %v10547_v22 }
 0x457   : > { %9887 = vmatpush3.bf16.msra.mxu0 %v11335_v35 }
 0x458   : > { %9888 = vmatprep.subr.bf16.mxu0 %v10547_v22 }
 0x459   : > { %v2416_v11 = vpop.f32.mrb[2].mxu0 }
 0x45a   : > { %2421 = vst.msk [vmem:[#allocation2] sm:$0x3] %vm2420_vm7, %v2416_v11  ;;  %9547 = vmatmul.mubr.f32.vlgmr.msra.gmra.mrb[8].mxu0 %v6960_v34  ;;  %v9203_v24 = vpop.f32.mrb[3].mxu0  ;;  %v8765_v34 = vld [vmem:[%s612_s27] ss:$0 sm:$0xff]  ;;  %s8771_s27 = sshll.u32 %s10527_s16, 5 }
 0x45b   : > { %9890 = vmatpush3.bf16.msra.mxu0 %v11313_v47  ;;  %9557 = vmatprep.mubr.msk.f32.mxu0 %vm10542_vm0, %v10541_v0  ;;  %s10551_s16 = smov [#allocation11]  }
 0x45c   : > { %9891 = vmatprep.subr.bf16.mxu0 %v10547_v22  ;;  %s10449_s26 = sshll.u32 %s10551_s16, 4  ;;  %s10450_s26 = int_to_ptr.vmem [resolvable:$false] %s10449_s26 }
 0x45d   : > { %s10451_s29 = scalar_lea.vmem %s10450_s26, 64  ;;  %p10452_p0 = scmp.lt.s32.totalorder %s12051_s6, %s10450_s26 }
 0x45e   : > { %p10453_p5 = scmp.lt.s32.totalorder %s10451_s29, %s10445_s17 }
 0x45f   : > { %9893 = vmatpush3.bf16.msra.mxu0 %v11325_v36 }
 0x460   : > { %9894 = vmatprep.subr.bf16.mxu0 %v10547_v22  ;;  %p10454_p2 = por %p10453_p5, %p10452_p0 }
 0x462   : > { %9558 = vmatmul.mubr.f32.vlgmr.msra.gmra.mrb[8].mxu0 %v6961_v59  ;;  %p10455_p13 = pnand %p10454_p2, %p10448_p10 }
 0x463   : > { %9896 = vmatpush3.bf16.msra.mxu0 %v11357_v21  ;;  %9568 = vmatprep.mubr.msk.f32.mxu0 %vm10542_vm0, %v10541_v0 }
 0x464   : > { %9897 = vmatprep.subr.bf16.mxu0 %v10547_v22 }
 0x467   : > { %9899 = vmatpush3.bf16.msra.mxu0 %v11367_v54 }
 0x468   : > { %9900 = vmatprep.subr.bf16.mxu0 %v10547_v22 }
 0x46a   : > { %9569 = vmatmul.mubr.f32.vlgmr.msra.gmra.mrb[8].mxu0 %v6959_v44 }
 0x46b   : > { %9902 = vmatpush3.bf16.msra.mxu0 %v11313_v47  ;;  %9579 = vmatprep.mubr.msk.f32.mxu0 %vm10542_vm0, %v10541_v0 }
 0x46c   : > { %9903 = vmatprep.subr.bf16.mxu0 %v10547_v22 }
 0x46f   : > { %9905 = vmatpush3.bf16.msra.mxu0 %v11325_v36 }
 0x470   : > { %9942 = vmatprep.subr.bf16.mxu0 %v10547_v22 }
 0x472   : > { %9580 = vmatmul.mubr.f32.vlgmr.msra.gmra.mrb[8].mxu0 %v6959_v44 }
 0x473   : > { %9664 = vmatprep.mubr.msk.f32.mxu0 %vm10542_vm0, %v10541_v0 }
 0x4a5   : > { %v4065_v25 = vpop.f32.mrb[4].mxu0 }
 0x4a6   : > { %4070 = vrot.lane.b32.xlu1 %v4065_v25, %s10548_s12  ;;  %v9329_v27 = vpop.f32.mrb[5].mxu0  ;;  %s12158_s12 = sld [smem:[#allocation27_spill]] }
 0x509   : > { %v5718_v35 = vpop.f32.mrb[6].mxu0 }
 0x50a   : > { %5723 = vrot.lane.b32.xlu0 %v5718_v35, %s10549_s28  ;;  %v9455_v47 = vpop.f32.mrb[7].mxu0  ;;  %s745_s28 = scalar_lea.vmem %s12158_s12, %s10861_s19  ;;  %s8502_s19 = scalar_lea.sflag [#allocation5], %s10833_s13 }
 0x50b   : > { %v11883_v47 = vld [vmem:[%s11879_s21] sm:$0xff] }
 0x518   : > { %v4071_v21 = vpop.permute.xlu1 %4070 }
 0x519   : > { %4074 = vst.msk [vmem:[#allocation2] sm:$0x3] %vm4073_vm8, %v4071_v21  ;;  %v11886_v21 = vld [vmem:[%s11879_s21 + $0x8] sm:$0xff] }
 0x545   : > { %v7371_v54 = vpop.f32.mrb[8].mxu0 }
 0x546   : > { %7376 = vrot.lane.b32.xlu1 %v7371_v54, %s10550_s25  ;;  %v9581_v36 = vpop.f32.mrb[9].mxu0  ;;  %v7934_v54 = vand.u32 4294901760, %v11883_v47 }
 0x547   : > { %v7937_v36 = vand.u32 4294901760, %v11886_v21 }
 0x57c   : > { %v5724_v53 = vpop.permute.xlu0 %5723 }
 0x57d   : > { %5727 = vst.msk [vmem:[#allocation2] sm:$0x3] %vm5726_vm9, %v5724_v53  ;;  %v11895_v53 = vld [vmem:[%s11879_s21 + $0x10] sm:$0xff] }
 0x5b8   : > { %v7377_v14 = vpop.permute.xlu1 %7376 }
 0x5b9   : > { %7380 = vst.msk [vmem:[#allocation2] sm:$0x3] %vm7379_vm10, %v7377_v14  ;;  %v11898_v14 = vld [vmem:[%s11879_s21 + $0x18] sm:$0xff] }
 0x5c0   : > { %v7381_v12 = vld [vmem:[#allocation2] sm:$0x3] }
 0x5c1   : > { %v7382_v43 = vadd.f32 %v10324_v48, %v7381_v12  ;;  %v11904_v12 = vsub.f32 %v11883_v47, %v7934_v54  ;;  %v11909_v48 = vsub.f32 %v11886_v21, %v7937_v36 }
 0x5c3   : > { %v7386_v50 = vsel %vm7385_vm11, %v7382_v43, 0.0 }
 0x5c4   : > { %7387 = vadd.xlane.f32.xlu1 %v7386_v50  ;;  %v7943_v50 = vand.u32 4294901760, %v11898_v14 }
 0x651   : > { %v7388_v31 = vpop.xlane.xlu1 %7387 }
 0x652   : > { %v7390_v33 = vmul.f32 0.03125, %v7388_v31  ;;  %v8019_v31 = vand.u32 4294901760, %v11904_v12 }
 0x654   : > { %v7391_v40 = vsub.f32 %v7382_v43, %v7390_v33  ;;  %v7940_v43 = vand.u32 4294901760, %v11895_v53  ;;  %v8026_v33 = vand.u32 4294901760, %v11909_v48 }
 0x656   : > { %v7392_v51 = vmul.f32 %v7391_v40, %v7391_v40  ;;  %v8027_v46 = vsub.f32 %v11909_v48, %v8026_v33 }
 0x658   : > { %v7393_v13 = vsel %vm7385_vm11, %v7392_v51, 0.0  ;;  %v11926_v51 = vsub.f32 %v11898_v14, %v7943_v50  ;;  %v8028_v63 = vand.u32 4294901760, %v8027_v46  ;;  %v9967_v46 = vpack.c.bf16 %v11909_v48, %v11904_v12 }
 0x659   : > { %7394 = vadd.xlane.f32.xlu0 %v7393_v13  ;;  %v8020_v13 = vsub.f32 %v11904_v12, %v8019_v31 }
 0x65a   : > { %v8040_v6 = vand.u32 4294901760, %v11926_v51 }
 0x65b   : > { %v8021_v15 = vand.u32 4294901760, %v8020_v13 }
 0x65c   : > { %v8041_v42 = vsub.f32 %v11926_v51, %v8040_v6 }
 0x65d   : > { %v9955_v1 = vpack.c.bf16 %v8028_v63, %v8021_v15 }
 0x65e   : > { %v8042_v3 = vand.u32 4294901760, %v8041_v42 }
 0x6e6   : > { %v7395_v8 = vpop.xlane.xlu0 %7394 }
 0x6e7   : > { %v7396_v28 = vmul.f32 0.03125, %v7395_v8 }
 0x6e9   : > { %v7397_v41 = vadd.f32 1e-05, %v7396_v28 }
 0x6eb   : > { %10312 = vrsqrt.f32 %v7397_v41 }
 0x6f5   : > { %v10313_v55 = vpop.eup %10312 }
 0x6f6   : > { %v7399_v44 = vmul.f32 %v10313_v55, %v7391_v40  ;;  %v11921_v40 = vsub.f32 %v11895_v53, %v7940_v43 }
 0x6f8   : > { %v7406_v59 = vmul.f32 %v8764_v62, %v7399_v44  ;;  %v8033_v29 = vand.u32 4294901760, %v11921_v40  ;;  %v9946_v44 = vpack.c.bf16 %v7943_v50, %v7940_v43  ;;  %v9970_v63 = vpack.c.bf16 %v11926_v51, %v11921_v40 }
 0x6fa   : > { %v11864_v61 = vadd.f32 %v8765_v34, %v7406_v59  ;;  %v8034_v60 = vsub.f32 %v11921_v40, %v8033_v29  ;;  %v9994_v42 = vpack.c.bf16 %v8040_v6, %v8033_v29 }
 0x6fc   : > { %v7426_v2 = vsel %vm1750_vm2, %v11864_v61, 0 }
 0x6fd   : > { %v7497_v11 = vand.u32 4294901760, %v7426_v2 }
 0x6ff   : > { %v7498_v24 = vsub.f32 %v7426_v2, %v7497_v11 }
 0x701   : > { %v7499_v25 = vand.u32 4294901760, %v7498_v24 }
 0x703   : > { %v7500_v27 = vsub.f32 %v7498_v24, %v7499_v25 }
 0x705   : > { %v7501_v35 = vand.u32 4294901760, %v7500_v27 }
 0x707   : > { %9591 = vmatmul.mubr.f32.vlgmr.msra.gmra.mrb[14].mxu1 %v7501_v35  ;;  %v8766_v35 = vld [vmem:[%s620_s10] ss:$0 sm:$0xff] }
 0x708   : > { %9914 = vmatpush3.bf16.msra.mxu1 %v9913_v45  ;;  %9601 = vmatprep.mubr.msk.f32.mxu1 %vm10542_vm0, %v10541_v0  ;;  %v7955_v45 = vand.u32 4294901760, %v7921_v5 }
 0x709   : > { %9915 = vmatprep.subr.bf16.mxu1 %v10547_v22 }
 0x70a   : > { %v11968_v20 = vsub.f32 %v7921_v5, %v7955_v45  ;;  %v9952_v2 = vpack.c.bf16 %v7955_v45, %v7952_v49 }
 0x70c   : > { %9917 = vmatpush3.bf16.msra.mxu1 %v9916_v7 }
 0x70d   : > { %9918 = vmatprep.subr.bf16.mxu1 %v10547_v22 }
 0x70f   : > { %9602 = vmatmul.mubr.f32.vlgmr.msra.gmra.mrb[14].mxu1 %v7497_v11 }
 0x710   : > { %9920 = vmatpush3.bf16.msra.mxu1 %v9919_v18  ;;  %9612 = vmatprep.mubr.msk.f32.mxu1 %vm10542_vm0, %v10541_v0  ;;  %v8056_v18 = vand.u32 4294901760, %v8055_v30 }
 0x711   : > { %9921 = vmatprep.subr.bf16.mxu1 %v10547_v22 }
 0x714   : > { %9923 = vmatpush3.bf16.msra.mxu1 %v9922_v52  ;;  %v8061_v52 = vand.u32 4294901760, %v11966_v56 }
 0x715   : > { %9924 = vmatprep.subr.bf16.mxu1 %v10547_v22 }
 0x716   : > { %v8062_v28 = vsub.f32 %v11966_v56, %v8061_v52 }
 0x717   : > { %9613 = vmatmul.mubr.f32.vlgmr.msra.gmra.mrb[14].mxu1 %v7498_v24  ;;  %v9976_v24 = vpack.c.bf16 %v11968_v20, %v11966_v56 }
 0x718   : > { %9926 = vmatpush3.bf16.msra.mxu1 %v11852_v26  ;;  %9623 = vmatprep.mubr.msk.f32.mxu1 %vm10542_vm0, %v10541_v0  ;;  %v8063_v55 = vand.u32 4294901760, %v8062_v28 }
 0x719   : > { %9927 = vmatprep.subr.bf16.mxu1 %v10547_v22 }
 0x71c   : > { %9929 = vmatpush3.bf16.msra.mxu1 %v11855_v23 }
 0x71d   : > { %9930 = vmatprep.subr.bf16.mxu1 %v10547_v22 }
 0x71f   : > { %9624 = vmatmul.mubr.f32.vlgmr.msra.gmra.mrb[14].mxu1 %v7499_v25 }
 0x720   : > { %9932 = vmatpush3.bf16.msra.mxu1 %v9931_v38  ;;  %9634 = vmatprep.mubr.msk.f32.mxu1 %vm10542_vm0, %v10541_v0  ;;  %v8068_v38 = vand.u32 4294901760, %v11968_v20 }
 0x721   : > { %9933 = vmatprep.subr.bf16.mxu1 %v10547_v22 }
 0x722   : > { %v8069_v41 = vsub.f32 %v11968_v20, %v8068_v38  ;;  %v10000_v27 = vpack.c.bf16 %v8068_v38, %v8061_v52  ;;  %v8768_v20 = vld [vmem:[%s745_s28] ss:$0 sm:$0xff] }
 0x724   : > { %9935 = vmatpush3.bf16.msra.mxu1 %v9934_v19  ;;  %v9943_v19 = vpack.c.bf16 %v7937_v36, %v7934_v54  ;;  %v8070_v62 = vand.u32 4294901760, %v8069_v41 }
 0x725   : > { %9936 = vmatprep.subr.bf16.mxu1 %v10547_v22 }
 0x726   : > { %9944 = vmatpush3.bf16.msra.mxu0 %v9943_v19  ;;  %v9964_v34 = vpack.c.bf16 %v8070_v62, %v8063_v55 }
 0x727   : > { %9635 = vmatmul.mubr.f32.vlgmr.msra.gmra.mrb[14].mxu1 %v7497_v11  ;;  %9945 = vmatprep.subr.bf16.mxu0 %v10547_v22 }
 0x728   : > { %9938 = vmatpush3.bf16.msra.mxu1 %v11852_v26  ;;  %9645 = vmatprep.mubr.msk.f32.mxu1 %vm10542_vm0, %v10541_v0  ;;  %v8035_v26 = vand.u32 4294901760, %v8034_v60  ;;  %v9991_v60 = vpack.c.bf16 %v8026_v33, %v8019_v31  ;;  %v8767_v31 = vld [vmem:[%s742_s15] ss:$0 sm:$0xff]  ;;  %s12049_s15 = scalar_lea.hbm %s12161_s18, %s8771_s27 }
 0x729   : > { %9939 = vmatprep.subr.bf16.mxu1 %v10547_v22 }
 0x72a   : > { %v9958_v17 = vpack.c.bf16 %v8042_v3, %v8035_v26  ;;  %9947 = vmatpush3.bf16.msra.mxu0 %v9946_v44 }
 0x72b   : > { %9948 = vmatprep.subr.bf16.mxu0 %v10547_v22 }
 0x72c   : > { %9941 = vmatpush3.bf16.msra.mxu1 %v11855_v23  ;;  %v7946_v23 = vand.u32 4294901760, %v7918_v57 }
 0x72d   : > { %9954 = vmatprep.subr.bf16.mxu1 %v10547_v22 }
 0x72e   : > { %v11956_v9 = vsub.f32 %v7918_v57, %v7946_v23  ;;  %v9949_v59 = vpack.c.bf16 %v7949_v37, %v7946_v23 }
 0x72f   : > { %9646 = vmatmul.mubr.f32.vlgmr.msra.gmra.mrb[14].mxu1 %v7497_v11 }
 0x730   : > { %9956 = vmatpush3.bf16.msra.mxu1 %v9955_v1  ;;  %9683 = vmatprep.mubr.msk.f32.mxu1 %vm10542_vm0, %v10541_v0  ;;  %v8047_v16 = vand.u32 4294901760, %v11956_v9  ;;  %v9973_v11 = vpack.c.bf16 %v11958_v58, %v11956_v9 }
 0x731   : > { %9957 = vmatprep.subr.bf16.mxu1 %v10547_v22  ;;  %9950 = vmatpush3.bf16.msra.mxu0 %v9949_v59 }
 0x732   : > { %v8048_v32 = vsub.f32 %v11956_v9, %v8047_v16  ;;  %9951 = vmatprep.subr.bf16.mxu0 %v10547_v22  ;;  %v9997_v25 = vpack.c.bf16 %v8054_v4, %v8047_v16 }
 0x734   : > { %9959 = vmatpush3.bf16.msra.mxu1 %v9958_v17  ;;  %v8049_v7 = vand.u32 4294901760, %v8048_v32 }
 0x735   : > { %9960 = vmatprep.subr.bf16.mxu1 %v10547_v22  ;;  %9953 = vmatpush3.bf16.msra.mxu0 %v9952_v2 }
 0x736   : > { %v9961_v8 = vpack.c.bf16 %v8056_v18, %v8049_v7  ;;  %9966 = vmatprep.subr.bf16.mxu0 %v10547_v22  ;;  %v8769_v18 = vld [vmem:[%s748_s14] ss:$0 sm:$0xff] }
 0x738   : > { %9962 = vmatpush3.bf16.msra.mxu1 %v9961_v8 }
 0x739   : > { %9963 = vmatprep.subr.bf16.mxu1 %v10547_v22 }
 0x73c   : > { %9965 = vmatpush3.bf16.msra.mxu1 %v9964_v34 }
 0x73d   : > { %9978 = vmatprep.subr.bf16.mxu1 %v10547_v22 }
 0x802   : > { %v7909_v47 = vpop.f32.mrb[14].mxu1 }
 0x803   : > { %v10014_v21 = vadd.f32 %v8766_v35, %v7909_v47  ;;  %v9647_v54 = vpop.f32.mrb[15].mxu1 }
 0x805   : > { %v7913_v36 = vmax.f32 %v10014_v21, 0.0 }
 0x807   : > { %v7931_v53 = vsel %vm7929_vm12, %v7913_v36, 0 }
 0x808   : > { %v8006_v14 = vand.u32 4294901760, %v7931_v53 }
 0x80a   : > { %v8007_v43 = vsub.f32 %v7931_v53, %v8006_v14  ;;  %9684 = vmatmul.mubr.f32.vlgmr.msra.gmra.mrb[16].mxu1 %v8006_v14 }
 0x80b   : > { %9980 = vmatpush3.bf16.msra.mxu1 %v9943_v19  ;;  %9721 = vmatprep.mubr.msk.f32.mxu1 %vm10542_vm0, %v10541_v0 }
 0x80c   : > { %v8008_v50 = vand.u32 4294901760, %v8007_v43  ;;  %9981 = vmatprep.subr.bf16.mxu1 %v10547_v22 }
 0x80e   : > { %v8009_v13 = vsub.f32 %v8007_v43, %v8008_v50 }
 0x80f   : > { %9983 = vmatpush3.bf16.msra.mxu1 %v9946_v44 }
 0x810   : > { %9984 = vmatprep.subr.bf16.mxu1 %v10547_v22  ;;  %v8010_v15 = vand.u32 4294901760, %v8009_v13 }
 0x812   : > { %9665 = vmatmul.mubr.f32.vlgmr.msra.gmra.mrb[10].mxu0 %v8010_v15 }
 0x813   : > { %9968 = vmatpush3.bf16.msra.mxu0 %v9967_v46  ;;  %9986 = vmatpush3.bf16.msra.mxu1 %v9949_v59 }
 0x814   : > { %9969 = vmatprep.subr.bf16.mxu0 %v10547_v22  ;;  %9987 = vmatprep.subr.bf16.mxu1 %v10547_v22 }
 0x815   : > { %9702 = vmatprep.mubr.msk.f32.mxu0 %vm10542_vm0, %v10541_v0 }
 0x817   : > { %9971 = vmatpush3.bf16.msra.mxu0 %v9970_v63  ;;  %9989 = vmatpush3.bf16.msra.mxu1 %v9952_v2 }
 0x818   : > { %9972 = vmatprep.subr.bf16.mxu0 %v10547_v22  ;;  %10002 = vmatprep.subr.bf16.mxu1 %v10547_v22 }
 0x81a   : > { %9722 = vmatmul.mubr.f32.vlgmr.msra.gmra.mrb[18].mxu1 %v8008_v50 }
 0x81b   : > { %9974 = vmatpush3.bf16.msra.mxu0 %v9973_v11  ;;  %10004 = vmatpush3.bf16.msra.mxu1 %v9943_v19 }
 0x81c   : > { %9975 = vmatprep.subr.bf16.mxu0 %v10547_v22  ;;  %10005 = vmatprep.subr.bf16.mxu1 %v10547_v22 }
 0x81d   : > { %9759 = vmatprep.mubr.msk.f32.mxu1 %vm10542_vm0, %v10541_v0 }
 0x81f   : > { %9977 = vmatpush3.bf16.msra.mxu0 %v9976_v24  ;;  %10007 = vmatpush3.bf16.msra.mxu1 %v9946_v44 }
 0x820   : > { %9990 = vmatprep.subr.bf16.mxu0 %v10547_v22  ;;  %10008 = vmatprep.subr.bf16.mxu1 %v10547_v22 }
 0x822   : > { %9703 = vmatmul.mubr.f32.vlgmr.msra.gmra.mrb[12].mxu0 %v8007_v43 }
 0x823   : > { %9992 = vmatpush3.bf16.msra.mxu0 %v9991_v60  ;;  %10010 = vmatpush3.bf16.msra.mxu1 %v9949_v59 }
 0x824   : > { %9993 = vmatprep.subr.bf16.mxu0 %v10547_v22  ;;  %10011 = vmatprep.subr.bf16.mxu1 %v10547_v22 }
 0x825   : > { %9740 = vmatprep.mubr.msk.f32.mxu0 %vm10542_vm0, %v10541_v0 }
 0x827   : > { %9995 = vmatpush3.bf16.msra.mxu0 %v9994_v42  ;;  %10013 = vmatpush3.bf16.msra.mxu1 %v9952_v2 }
 0x828   : > { %9996 = vmatprep.subr.bf16.mxu0 %v10547_v22 }
 0x82a   : > { %9760 = vmatmul.mubr.f32.vlgmr.msra.gmra.mrb[20].mxu1 %v8006_v14 }
 0x82b   : > { %9998 = vmatpush3.bf16.msra.mxu0 %v9997_v25 }
 0x82c   : > { %9999 = vmatprep.subr.bf16.mxu0 %v10547_v22 }
 0x82f   : > { %10001 = vmatpush3.bf16.msra.mxu0 %v10000_v27 }
 0x832   : > { %9741 = vmatmul.mubr.f32.vlgmr.msra.gmra.mrb[14].mxu0 %v8006_v14 }
 0x8dd   : > { %v8123_v12 = vpop.f32.mrb[16].mxu1 }
 0x8de   : > { %v9685_v48 = vpop.f32.mrb[17].mxu1 }
 0x8e5   : > { %v8012_v33 = vpop.f32.mrb[10].mxu0 }
 0x8e6   : > { %v8013_v40 = vadd.f32 %v8767_v31, %v8012_v33  ;;  %v9666_v0 = vpop.f32.mrb[11].mxu0 }
 0x8e8   : > { %v8124_v51 = vadd.f32 %v8123_v12, %v8013_v40 }
 0x8ed   : > { %v8292_v29 = vpop.f32.mrb[18].mxu1 }
 0x8ee   : > { %v9723_v6 = vpop.f32.mrb[19].mxu1 }
 0x8f5   : > { %v8211_v1 = vpop.f32.mrb[12].mxu0 }
 0x8f6   : > { %v8212_v26 = vadd.f32 %v8211_v1, %v8124_v51  ;;  %v9704_v3 = vpop.f32.mrb[13].mxu0 }
 0x8f8   : > { %v8293_v17 = vadd.f32 %v8292_v29, %v8212_v26 }
 0x8fd   : > { %v8466_v22 = vpop.f32.mrb[20].mxu1 }
 0x8fe   : > { %v9761_v57 = vpop.f32.mrb[21].mxu1 }
 0x905   : > { %v8387_v10 = vpop.f32.mrb[14].mxu0 }
 0x906   : > { %v8388_v23 = vadd.f32 %v8387_v10, %v8293_v17  ;;  %v9742_v37 = vpop.f32.mrb[15].mxu0 }
 0x908   : > { %v8467_v9 = vadd.f32 %v8466_v22, %v8388_v23 }
 0x90a   : > { %v8470_v58 = vadd.f32 %v8467_v9, %v11864_v61 }
 0x90c   : > { %v8473_v39 = vsel %vm7385_vm11, %v8470_v58, 0.0 }
 0x90d   : > { %8474 = vadd.xlane.f32.xlu0 %v8473_v39 }
 0x99a   : > { %v8475_v5 = vpop.xlane.xlu0 %8474 }
 0x99b   : > { %v8476_v16 = vmul.f32 0.03125, %v8475_v5 }
 0x99d   : > { %v8477_v4 = vsub.f32 %v8470_v58, %v8476_v16 }
 0x99f   : > { %v8478_v49 = vmul.f32 %v8477_v4, %v8477_v4 }
 0x9a1   : > { %v8479_v45 = vsel %vm7385_vm11, %v8478_v49, 0.0 }
 0x9a2   : > { %8480 = vadd.xlane.f32.xlu1 %v8479_v45 }
 0xa2f   : > { %v8481_v32 = vpop.xlane.xlu1 %8480 }
 0xa30   : > { %v8482_v30 = vmul.f32 0.03125, %v8481_v32 }
 0xa32   : > { %v8483_v56 = vadd.f32 1e-05, %v8482_v30 }
 0xa34   : > { %10314 = vrsqrt.f32 %v8483_v56 }
 0xa3e   : > { %v10315_v61 = vpop.eup %10314 }
 0xa3f   : > { %v8485_v7 = vmul.f32 %v10315_v61, %v8477_v4 }
 0xa41   : > { %v8492_v52 = vmul.f32 %v8768_v20, %v8485_v7 }
 0xa43   : > { %v8499_v38 = vadd.f32 %v8769_v18, %v8492_v52 }
 0xa45   : > { %8500 = vst.msk [vmem:[%s712_s20] sm:$0x3] %vm7385_vm11, %v8499_v38 }
 0xa46   : > { %10458 = shalt.err (!%p10455_p13)
}
 0xa47   : > { %s10459_s13 = scalar_lea.hbm %s12049_s15, 32  ;;  %s10463_s25 = scalar_lea.hbm %s12162_s24, 64 }
 0xa48   : > { %p10460_p11 = scmp.ne.s32.totalorder %s12049_s15, %s10459_s13  ;;  %p10464_p6 = scmp.lt.u32.totalorder %s12049_s15, %s12162_s24 }
 0xa49   : > { %p10465_p3 = scmp.lt.u32.totalorder %s10463_s25, %s10459_s13  ;;  %p10467_p1 = scmp.lt.u32.totalorder %s10459_s13, %s12049_s15 }
 0xa4a   : > { %p10461_p7 = pnand %p10460_p11, %p12163_p8 }
 0xa4b   : > { %p10466_p4 = por %p10465_p3, %p10464_p6 }
 0xa4c   : > { %p10462_p12 = pneg %p10461_p7 }
 0xa4d   : > { %p10468_p9 = por %p10467_p1, %p10466_p4 }
 0xa4f   : > { %p10469_p10 = pnand %p10468_p9, %p10462_p12 }
 0xa51   : > { %10472 = shalt.err (!%p10469_p10)
}
 0xa52   : > { %10153 = dma.vmem_to_hbm [thread:$0]  (%p12163_p8), %s12051_s6, 32, %s12049_s15, %s8502_s19  }
 0xa53 PF: > { %s12164_s14 = sld [smem:[#allocation16_spill]]  ;;  %s12165_s27 = sld [smem:[#allocation23_spill]] }
 0xa54   : > { %s12166_s20 = sld [smem:[#allocation19_spill]] }
 0xa59   : > { %s8528_s21 = sand.u32 1, %s12164_s14   ;;  %p12167_p0 = scmp.ne.s32.totalorder %s12165_s27, 0 }
 0xa5a   : > { %p12168_p5 = scmp.ge.s32.totalorder %s12166_s20, 2  ;;  %s8529_s10 = scalar_lea.sflag [#allocation5], %s8528_s21 }
 0xa5c   : > { %p10169_p2 = pnand %p12168_p5, %p12167_p0 }
 0xa5e   : > { %10510 = dma.done.wait (!%p10169_p2), %s8529_s10, 32  }
 0xa5f   : > { %10512 = vsyncadd (!%p10169_p2), %s8529_s10, 4294967264  ;;  %s36_s18 = sadd.s32 1, %s12166_s20   ;;  %s12169_s17 = sld [smem:[#allocation17_spill]] }
 0xa60   : > { %p33_p13 = scmp.ge.s32.totalorder %s36_s18, 4   ;;  %s12170_s15 = sld [smem:[#allocation22_spill]] }
 0xa61   : > { %s12171_s16 = sld [smem:[#allocation18_spill]]  ;;  %s12172_s11 = sld [smem:[#allocation20_spill]] }
 0xa62   : > { %s12173_s29 = smov %s10519_s30  ;;  %35 = sbr.rel (!%p33_p13) target bundleno = 17 (0x11), region = 182 }
 0xa65   : > { %s12174_s30 = smov %s12169_s17 }
 0xa67   : > { %s12175_s17 = smov %s12172_s11 }
 0xa69   :  { %8534 = vsyncpa [#allocation4], 1 }
 0xa6a   :  { %8536 = vsyncpa [#allocation4 + $0x1], 1 }
 0xa6b   :  { %8537 = vsyncpa [#allocation7], 1 }
 0xa6c   :  { %8539 = vsyncpa [#allocation7 + $0x1], 1 }
 0xa6d   :  { %8540 = vsyncpa [#allocation10], 1 }
 0xa6e   :  { %8542 = vsyncpa [#allocation10 + $0x1], 1 }
 0xa6f   :  { %8543 = vsyncpa [#allocation5], 1 }
 0xa70   :  { %8545 = vsyncpa [#allocation5 + $0x1], 1 }

</bundles_post_ra>
